<compile_context>
chip_gen: v6e
topology: v6e:2x2x1
jax: 0.10.0
libtpu: 0.0.40
codegen_flags: <defaults>
</compile_context>

<pallas_src>
import jax
import jax.numpy as jnp
from jax.experimental import pallas as pl
from jax.experimental.pallas import tpu as pltpu

ATOM_FDIM = 16
BOND_FDIM = 8
HIDDEN = 32
DEPTH = 3              # -> DEPTH - 1 = 2 message-passing iterations
HP = 128               # hidden dim zero-padded to a full 128-lane width
EDGE_CHUNK = 128       # lane-aligned E chunk for the running segment-max


def mpn_kernel(node_attr_ref, edge_attr_ref, edge_attr_rev_ref,
               dst_ne_ref, ed_dst_ref, ed_src_ref,
               readout_ref, inv_cnt_ref,
               wia_ref, wib_ref, wh_ref, wlo_ref,
               out_ref,
               hke_scr):
    f32 = jnp.float32
    bf16 = jnp.bfloat16
    relu = lambda x: jnp.maximum(x, 0.0)
    dot = lambda a, b: jnp.dot(a, b, preferred_element_type=f32)

    N, E = dst_ne_ref.shape            # E is the lane-padded edge count
    HPk = wia_ref.shape[1]             # padded hidden width (128)
    CE = min(E, EDGE_CHUNK)
    num_chunks = E // CE

    # ---- h_0 / h_k init (biases are identically zero -> omitted) -----------
    h0_n = relu(dot(node_attr_ref[...], wia_ref[...]))           # (N, HP)
    hk_n = h0_n
    h0_e = relu(dot(edge_attr_ref[...], wib_ref[...]))           # (E, HP)
    h0_e_rev = relu(dot(edge_attr_rev_ref[...], wib_ref[...]))   # == h0_e[rev]
    hk_e = h0_e
    hk_e_rev = h0_e_rev                # invariant: hk_e_rev[e] == hk_e[rev(e)]

    def node_aggregate(hk_e_cur):
        """m_k(node) = (sum over incoming edges) * (max over incoming edges)."""
        # sum: one bf16 x bf16 -> f32 MXU matmul fed straight from the bf16 ref.
        h_sum = dot(dst_ne_ref[...], hk_e_cur.astype(bf16))      # (N, HP)
        # max: chunked running max over E with a 0 identity.  Exact because
        # hk_e is post-ReLU (>= 0); if the activation ever changes this
        # identity must be revisited.
        # TODO(synk): zero-in-degree nodes get 0 here (DGL also fills 0;
        # jax.ops.segment_max would give -inf) -- not hit by molecular graphs.
        # The scratch is only a vectorized chunk-slicing source, not the
        # per-row gather staging of earlier versions.
        hke_scr[...] = hk_e_cur

        def chunk_body(c, h_max):
            start = pl.multiple_of(c * CE, CE)
            mask = dst_ne_ref[:, pl.ds(start, CE)].astype(f32)   # (N, CE)
            vals = hke_scr[pl.ds(start, CE), :]                  # (CE, HP)
            # HP = 128 sits on the lane axis -> fully lane-dense mask-multiply.
            cand = jnp.max(mask[:, :, None] * vals[None, :, :], axis=1)
            return jnp.maximum(h_max, cand)

        h_max = jax.lax.fori_loop(0, num_chunks, chunk_body,
                                  jnp.zeros((N, HPk), f32))
        return h_sum * h_max                                     # m_k (nodes)

    # ---- DEPTH-1 message-passing iterations --------------------------------
    for k in range(DEPTH - 1):
        hk_n = hk_n + node_aggregate(hk_e)
        hk_n_bf = hk_n.astype(bf16)
        # One-hot gathers on the MXU (no serial loop, no scatter):
        g_dst = dot(ed_dst_ref[...], hk_n_bf)    # (E, HP) = hk_n[dst(e)]
        g_src = dot(ed_src_ref[...], hk_n_bf)    # (E, HP) = hk_n[src(e)] = hk_n[dst(rev(e))]
        w = wh_ref[k]                            # (HP, HP), f32
        # h_k[e]      = act(h_0[e]      + W_h (hk_n[dst(e)] - hk_e[rev(e)]))
        # h_k[rev(e)] = act(h_0[rev(e)] + W_h (hk_n[src(e)] - hk_e[e]))
        new_e = relu(h0_e + dot(g_dst - hk_e_rev, w))
        new_e_rev = relu(h0_e_rev + dot(g_src - hk_e, w))
        hk_e, hk_e_rev = new_e, new_e_rev        # dropout p=0 -> identity

    # ---- final aggregation + fused output projection ------------------------
    m_node = node_aggregate(hk_e)
    cat = jnp.concatenate([m_node, hk_n, h0_n], axis=1)          # (N, 3*HP)
    # linear -> w_o with no activation in between: fused to one K=3*HP matmul.
    hidden = relu(dot(cat, wlo_ref[...]))                        # (N, HP)
    # Mean readout: exact f32 one-hot sum, then exact f32 1/|V| scale.
    out_ref[...] = dot(readout_ref[...], hidden) * inv_cnt_ref[...]   # (G, HP)


def _pick_vmem_limit():
    """~3/4 of physical VMEM: ~96 MiB on v5e/v6e (128 MiB), ~48 MiB on v7x (64 MiB)."""
    cap = None
    get_info = getattr(pltpu, "get_tpu_info", None)
    if get_info is not None:
        try:
            cap = getattr(get_info(), "vmem_capacity_bytes", None)
        except Exception:
            cap = None
    if not cap:
        cap = 64 * 1024 * 1024       # assume the smallest per-core VMEM if unknown
    return int(min(96 * 1024 * 1024, (cap * 3) // 4))


def mpn_encoder_pallas(node_attr, edge_attr, dst, rev_idx, graph_ids,
                       num_graphs, params):
    f32 = jnp.float32
    bf16 = jnp.bfloat16
    N = node_attr.shape[0]
    E = edge_attr.shape[0]
    H = params["wia"].shape[1]

    # ---- lane-align the edge dimension; padded edges are isolated & zero ----
    E_pad = max(EDGE_CHUNK, ((E + EDGE_CHUNK - 1) // EDGE_CHUNK) * EDGE_CHUNK)
    pad = E_pad - E
    dst = dst.astype(jnp.int32)
    rev_idx = rev_idx.astype(jnp.int32)
    src = dst[rev_idx]                                     # src(e) = dst(rev(e))
    neg = -jnp.ones((pad,), jnp.int32)                     # one_hot(-1) -> all-zero row
    dst_p = jnp.concatenate([dst, neg])
    src_p = jnp.concatenate([src, neg])
    zpad_attr = jnp.zeros((pad, edge_attr.shape[1]), edge_attr.dtype)
    edge_attr_p = jnp.concatenate([edge_attr, zpad_attr], axis=0)
    edge_attr_rev_p = jnp.concatenate([edge_attr[rev_idx], zpad_attr], axis=0)

    # 0/1 incidence / gather matrices, stored bf16 (exact) -> MXU fast path.
    ed_dst = jax.nn.one_hot(dst_p, N, dtype=f32).astype(bf16)    # (E_pad, N)
    ed_src = jax.nn.one_hot(src_p, N, dtype=f32).astype(bf16)    # (E_pad, N)
    dst_ne = jnp.transpose(ed_dst)                               # (N, E_pad)

    # Exact f32 mean-readout operands (bf16 1/|V| would be lossy in general).
    g_onehot = jax.nn.one_hot(graph_ids, num_graphs, dtype=f32).T    # (G, N)
    inv_cnt = 1.0 / g_onehot.sum(axis=1, keepdims=True)              # (G, 1)

    # ---- zero-pad the hidden dim to a full 128-lane width -------------------
    wia_p = jnp.zeros((node_attr.shape[1], HP), f32).at[:, :H].set(params["wia"])
    wib_p = jnp.zeros((edge_attr.shape[1], HP), f32).at[:, :H].set(params["wib"])
    wh_p = jnp.zeros((DEPTH - 1, HP, HP), f32).at[:, :H, :H].set(params["wh"])
    # linear -> w_o fusion (no activation between them in the reference module).
    wlo = params["wl"] @ params["wo"]                            # (3H, H)
    wlo_p = jnp.zeros((3 * HP, HP), f32)
    for b in range(3):
        wlo_p = wlo_p.at[b * HP:b * HP + H, :H].set(wlo[b * H:(b + 1) * H])

    vmem = pl.BlockSpec(memory_space=pltpu.MemorySpace.VMEM)
    inputs = (node_attr, edge_attr_p, edge_attr_rev_p,
              dst_ne, ed_dst, ed_src, g_onehot, inv_cnt,
              wia_p, wib_p, wh_p, wlo_p)

    # TODO(synk): for graphs that do not fit VMEM, replace the dense incidence
    # with a CSR / fixed-degree layout driven by PrefetchScalarGridSpec, tile E
    # with an accumulator grid axis, and add a 'parallel' grid axis so v7x's
    # second TensorCore is used.
    out = pl.pallas_call(
        mpn_kernel,
        out_shape=jax.ShapeDtypeStruct((num_graphs, HP), f32),
        in_specs=[vmem] * len(inputs),
        out_specs=vmem,
        scratch_shapes=[pltpu.VMEM((E_pad, HP), f32)],   # chunk-slicing source
        compiler_params=pltpu.CompilerParams(
            vmem_limit_bytes=_pick_vmem_limit()),
    )(*inputs)
    return out[:, :H]


# ------------------------- pure-JAX reference --------------------------------
def mpn_encoder_ref(node_attr, edge_attr, dst, rev_idx, graph_ids, num_graphs,
                    params):
    relu = jax.nn.relu
    N = node_attr.shape[0]
    h0_n = relu(node_attr @ params["wia"])
    hk_n = h0_n
    h0_e = relu(edge_attr @ params["wib"])
    hk_e = h0_e
    for k in range(DEPTH - 1):
        h_sum = jax.ops.segment_sum(hk_e, dst, num_segments=N)
        h_max = jax.ops.segment_max(hk_e, dst, num_segments=N)
        m_node = h_sum * h_max
        hk_n = hk_n + m_node
        m_e = hk_n[dst] - hk_e[rev_idx]
        hk_e = relu(h0_e + m_e @ params["wh"][k])
    h_sum = jax.ops.segment_sum(hk_e, dst, num_segments=N)
    h_max = jax.ops.segment_max(hk_e, dst, num_segments=N)
    m_node = h_sum * h_max
    hidden = jnp.concatenate([m_node, hk_n, h0_n], axis=1) @ params["wl"]
    hidden = relu(hidden @ params["wo"])
    g_onehot = jax.nn.one_hot(graph_ids, num_graphs, dtype=jnp.float32).T
    return (g_onehot @ hidden) / g_onehot.sum(axis=1, keepdims=True)


# ------------------------- deterministic init --------------------------------
def xavier_normal(key, fan_in, fan_out, gain):
    std = gain * (2.0 / (fan_in + fan_out)) ** 0.5
    # stored as (in, out): torch nn.Linear weight (out, in) transposed
    return std * jax.random.normal(key, (fan_in, fan_out), dtype=jnp.float32)


def init_params(key):
    gain = 2.0 ** 0.5  # nn.init.calculate_gain('relu')
    ks = jax.random.split(key, 6)
    H = HIDDEN
    wh = jnp.stack([xavier_normal(ks[2 + d], H, H, gain) for d in range(DEPTH - 1)])
    return {
        "wia": xavier_normal(ks[0], ATOM_FDIM, H, gain),
        "wib": xavier_normal(ks[1], BOND_FDIM, H, gain),
        "wh": wh,                                     # (DEPTH-1, H, H)
        "wl": xavier_normal(ks[4], 3 * H, H, gain),   # linear on cat([m, hk, h0])
        "wo": xavier_normal(ks[5], H, H, gain),
        # all biases are zero after reset_parameters() -> not materialized
    }


if __name__ == "__main__":
    key = jax.random.PRNGKey(0)
    k_params, k_node, k_edge = jax.random.split(key, 3)
    params = init_params(k_params)

    # Two molecules, 4 atoms each, arranged as rings so every node has
    # in-edges.  Each undirected bond -> two directed edges stored adjacently
    # (2j, 2j+1), matching the reverse-pair convention of edge_message.
    bonds = [(0, 1), (1, 2), (2, 3), (3, 0),
             (4, 5), (5, 6), (6, 7), (7, 4)]
    src_l, dst_l = [], []
    for (u, v) in bonds:
        src_l += [u, v]
        dst_l += [v, u]
    dst = jnp.array(dst_l, jnp.int32)
    E = dst.shape[0]
    rev_idx = jnp.array([e ^ 1 for e in range(E)], jnp.int32)
    graph_ids = jnp.array([0, 0, 0, 0, 1, 1, 1, 1], jnp.int32)
    num_graphs = 2
    N = graph_ids.shape[0]

    node_attr = jax.random.normal(k_node, (N, ATOM_FDIM), dtype=jnp.float32)
    edge_attr = jax.random.normal(k_edge, (E, BOND_FDIM), dtype=jnp.float32)

    out = mpn_encoder_pallas(node_attr, edge_attr, dst, rev_idx, graph_ids,
                             num_graphs, params)
    out = jax.block_until_ready(out)

    ref = mpn_encoder_ref(node_attr, edge_attr, dst, rev_idx, graph_ids,
                          num_graphs, params)
    ref = jax.block_until_ready(ref)

    assert out.shape == (num_graphs, HIDDEN)
    # bf16 MXU feeds on the aggregation/gather matmuls -> compare with a
    # max-magnitude-normalized tolerance (sound for bf16 matmul kernels).
    err = float(jnp.max(jnp.abs(out - ref)))
    scale = float(jnp.max(jnp.abs(ref)))
    assert err <= 2e-2 * scale + 2e-2, (
        f"mismatch vs reference: max|err|={err:.4e}, max|ref|={scale:.4e}")
    print("KERNEL_OK")
</pallas_src>

<mosaic_0001>
module attributes {stable_mosaic.version = 11 : i64} {
  func.func @mpn_kernel(%arg0: memref<8x16xf32, #tpu.memory_space<vmem>>, %arg1: memref<128x8xf32, #tpu.memory_space<vmem>>, %arg2: memref<128x8xf32, #tpu.memory_space<vmem>>, %arg3: memref<8x128xbf16, #tpu.memory_space<vmem>>, %arg4: memref<128x8xbf16, #tpu.memory_space<vmem>>, %arg5: memref<128x8xbf16, #tpu.memory_space<vmem>>, %arg6: memref<2x8xf32, #tpu.memory_space<vmem>>, %arg7: memref<2x1xf32, #tpu.memory_space<vmem>>, %arg8: memref<16x128xf32, #tpu.memory_space<vmem>>, %arg9: memref<8x128xf32, #tpu.memory_space<vmem>>, %arg10: memref<2x128x128xf32, #tpu.memory_space<vmem>>, %arg11: memref<384x128xf32, #tpu.memory_space<vmem>>, %arg12: memref<2x128xf32, #tpu.memory_space<vmem>>, %arg13: memref<128x128xf32, #tpu.memory_space<vmem>>) attributes {dimension_semantics = [], scalar_prefetch = 0 : i64, scratch_operands = 1 : i64, tpu.core_type = #tpu.core_type<tc>} {
    %c0 = arith.constant 0 : index
    %c0_0 = arith.constant 0 : index
    %0 = vector.load %arg0[%c0, %c0_0] : memref<8x16xf32, #tpu.memory_space<vmem>>, vector<8x16xf32>
    %c0_1 = arith.constant 0 : index
    %c0_2 = arith.constant 0 : index
    %1 = vector.load %arg8[%c0_1, %c0_2] : memref<16x128xf32, #tpu.memory_space<vmem>>, vector<16x128xf32>
    %cst = arith.constant dense<0.000000e+00> : vector<8x128xf32>
    %2 = tpu.matmul %0, %1, %cst {dimension_numbers = #tpu.dot_dimension_numbers<[1], [0], [0], [1], [0, 0, 1, 1], [], []>} : vector<8x16xf32>, vector<16x128xf32>, vector<8x128xf32> -> vector<8x128xf32>
    %cst_3 = arith.constant 0.000000e+00 : f32
    %3 = vector.broadcast %cst_3 : f32 to vector<8x128xf32>
    %4 = arith.maximumf %2, %3 : vector<8x128xf32>
    %c0_4 = arith.constant 0 : index
    %c0_5 = arith.constant 0 : index
    %5 = vector.load %arg1[%c0_4, %c0_5] : memref<128x8xf32, #tpu.memory_space<vmem>>, vector<128x8xf32>
    %c0_6 = arith.constant 0 : index
    %c0_7 = arith.constant 0 : index
    %6 = vector.load %arg9[%c0_6, %c0_7] : memref<8x128xf32, #tpu.memory_space<vmem>>, vector<8x128xf32>
    %cst_8 = arith.constant dense<0.000000e+00> : vector<128x128xf32>
    %7 = tpu.matmul %5, %6, %cst_8 {dimension_numbers = #tpu.dot_dimension_numbers<[1], [0], [0], [1], [0, 0, 1, 1], [], []>} : vector<128x8xf32>, vector<8x128xf32>, vector<128x128xf32> -> vector<128x128xf32>
    %cst_9 = arith.constant 0.000000e+00 : f32
    %8 = vector.broadcast %cst_9 : f32 to vector<128x128xf32>
    %9 = arith.maximumf %7, %8 : vector<128x128xf32>
    %c0_10 = arith.constant 0 : index
    %c0_11 = arith.constant 0 : index
    %10 = vector.load %arg2[%c0_10, %c0_11] : memref<128x8xf32, #tpu.memory_space<vmem>>, vector<128x8xf32>
    %c0_12 = arith.constant 0 : index
    %c0_13 = arith.constant 0 : index
    %11 = vector.load %arg9[%c0_12, %c0_13] : memref<8x128xf32, #tpu.memory_space<vmem>>, vector<8x128xf32>
    %cst_14 = arith.constant dense<0.000000e+00> : vector<128x128xf32>
    %12 = tpu.matmul %10, %11, %cst_14 {dimension_numbers = #tpu.dot_dimension_numbers<[1], [0], [0], [1], [0, 0, 1, 1], [], []>} : vector<128x8xf32>, vector<8x128xf32>, vector<128x128xf32> -> vector<128x128xf32>
    %cst_15 = arith.constant 0.000000e+00 : f32
    %13 = vector.broadcast %cst_15 : f32 to vector<128x128xf32>
    %14 = arith.maximumf %12, %13 : vector<128x128xf32>
    %c0_16 = arith.constant 0 : index
    %c0_17 = arith.constant 0 : index
    %15 = vector.load %arg3[%c0_16, %c0_17] : memref<8x128xbf16, #tpu.memory_space<vmem>>, vector<8x128xbf16>
    %16 = arith.truncf %9 : vector<128x128xf32> to vector<128x128xbf16>
    %cst_18 = arith.constant dense<0.000000e+00> : vector<8x128xf32>
    %17 = tpu.matmul %15, %16, %cst_18 {dimension_numbers = #tpu.dot_dimension_numbers<[1], [0], [0], [1], [0, 0, 1, 1], [], []>} : vector<8x128xbf16>, vector<128x128xbf16>, vector<8x128xf32> -> vector<8x128xf32>
    %c0_19 = arith.constant 0 : index
    %c0_20 = arith.constant 0 : index
    %18 = vector.load %arg13[%c0_19, %c0_20] : memref<128x128xf32, #tpu.memory_space<vmem>>, vector<128x128xf32>
    tpu.vector_store %arg13[%c0_19, %c0_20], %9 {strides = array<i32>} : memref<128x128xf32, #tpu.memory_space<vmem>>, vector<128x128xf32>,
    %cst_21 = arith.constant 0.000000e+00 : f32
    %19 = vector.broadcast %cst_21 : f32 to vector<8x128xf32>
    %c0_i32 = arith.constant 0 : i32
    %c128_i32 = arith.constant 128 : i32
    %20 = arith.muli %c0_i32, %c128_i32 : i32
    %21 = tpu.assume_multiple %20, 128 : i32
    %c0_22 = arith.constant 0 : index
    %22 = arith.index_cast %21 : i32 to index
    %23 = vector.load %arg3[%c0_22, %22] : memref<8x128xbf16, #tpu.memory_space<vmem>>, vector<8x128xbf16>
    %24 = arith.extf %23 : vector<8x128xbf16> to vector<8x128xf32>
    %25 = arith.index_cast %21 : i32 to index
    %c0_23 = arith.constant 0 : index
    %26 = vector.load %arg13[%25, %c0_23] : memref<128x128xf32, #tpu.memory_space<vmem>>, vector<128x128xf32>
    %27 = vector.shape_cast %24 : vector<8x128xf32> to vector<8x128x1xf32>
    %28 = vector.shape_cast %26 : vector<128x128xf32> to vector<1x128x128xf32>
    %29 = vector.broadcast %27 : vector<8x128x1xf32> to vector<8x128x128xf32>
    %30 = vector.broadcast %28 : vector<1x128x128xf32> to vector<8x128x128xf32>
    %31 = arith.mulf %29, %30 : vector<8x128x128xf32>
    %cst_24 = arith.constant dense<0xFF800000> : vector<8x128xf32>
    %32 = vector.multi_reduction <maximumf>, %31, %cst_24 [1] : vector<8x128x128xf32> to vector<8x128xf32>
    %33 = arith.maximumf %19, %32 : vector<8x128xf32>
    %c1_i32 = arith.constant 1 : i32
    %34 = arith.mulf %17, %33 : vector<8x128xf32>
    %35 = arith.addf %4, %34 : vector<8x128xf32>
    %36 = arith.truncf %35 : vector<8x128xf32> to vector<8x128xbf16>
    %c0_25 = arith.constant 0 : index
    %c0_26 = arith.constant 0 : index
    %37 = vector.load %arg4[%c0_25, %c0_26] : memref<128x8xbf16, #tpu.memory_space<vmem>>, vector<128x8xbf16>
    %cst_27 = arith.constant dense<0.000000e+00> : vector<128x128xf32>
    %38 = tpu.matmul %37, %36, %cst_27 {dimension_numbers = #tpu.dot_dimension_numbers<[1], [0], [0], [1], [0, 0, 1, 1], [], []>} : vector<128x8xbf16>, vector<8x128xbf16>, vector<128x128xf32> -> vector<128x128xf32>
    %c0_28 = arith.constant 0 : index
    %c0_29 = arith.constant 0 : index
    %39 = vector.load %arg5[%c0_28, %c0_29] : memref<128x8xbf16, #tpu.memory_space<vmem>>, vector<128x8xbf16>
    %cst_30 = arith.constant dense<0.000000e+00> : vector<128x128xf32>
    %40 = tpu.matmul %39, %36, %cst_30 {dimension_numbers = #tpu.dot_dimension_numbers<[1], [0], [0], [1], [0, 0, 1, 1], [], []>} : vector<128x8xbf16>, vector<8x128xbf16>, vector<128x128xf32> -> vector<128x128xf32>
    %c0_31 = arith.constant 0 : index
    %c0_32 = arith.constant 0 : index
    %c0_33 = arith.constant 0 : index
    %41 = vector.load %arg10[%c0_31, %c0_32, %c0_33] : memref<2x128x128xf32, #tpu.memory_space<vmem>>, vector<1x128x128xf32>
    %42 = vector.shape_cast %41 : vector<1x128x128xf32> to vector<128x128xf32>
    %43 = arith.subf %38, %14 : vector<128x128xf32>
    %cst_34 = arith.constant dense<0.000000e+00> : vector<128x128xf32>
    %44 = tpu.matmul %43, %42, %cst_34 {dimension_numbers = #tpu.dot_dimension_numbers<[1], [0], [0], [1], [0, 0, 1, 1], [], []>} : vector<128x128xf32>, vector<128x128xf32>, vector<128x128xf32> -> vector<128x128xf32>
    %45 = arith.addf %9, %44 : vector<128x128xf32>
    %cst_35 = arith.constant 0.000000e+00 : f32
    %46 = vector.broadcast %cst_35 : f32 to vector<128x128xf32>
    %47 = arith.maximumf %45, %46 : vector<128x128xf32>
    %48 = arith.subf %40, %9 : vector<128x128xf32>
    %cst_36 = arith.constant dense<0.000000e+00> : vector<128x128xf32>
    %49 = tpu.matmul %48, %42, %cst_36 {dimension_numbers = #tpu.dot_dimension_numbers<[1], [0], [0], [1], [0, 0, 1, 1], [], []>} : vector<128x128xf32>, vector<128x128xf32>, vector<128x128xf32> -> vector<128x128xf32>
    %50 = arith.addf %14, %49 : vector<128x128xf32>
    %cst_37 = arith.constant 0.000000e+00 : f32
    %51 = vector.broadcast %cst_37 : f32 to vector<128x128xf32>
    %52 = arith.maximumf %50, %51 : vector<128x128xf32>
    %c0_38 = arith.constant 0 : index
    %c0_39 = arith.constant 0 : index
    %53 = vector.load %arg3[%c0_38, %c0_39] : memref<8x128xbf16, #tpu.memory_space<vmem>>, vector<8x128xbf16>
    %54 = arith.truncf %47 : vector<128x128xf32> to vector<128x128xbf16>
    %cst_40 = arith.constant dense<0.000000e+00> : vector<8x128xf32>
    %55 = tpu.matmul %53, %54, %cst_40 {dimension_numbers = #tpu.dot_dimension_numbers<[1], [0], [0], [1], [0, 0, 1, 1], [], []>} : vector<8x128xbf16>, vector<128x128xbf16>, vector<8x128xf32> -> vector<8x128xf32>
    %c0_41 = arith.constant 0 : index
    %c0_42 = arith.constant 0 : index
    %56 = vector.load %arg13[%c0_41, %c0_42] : memref<128x128xf32, #tpu.memory_space<vmem>>, vector<128x128xf32>
    tpu.vector_store %arg13[%c0_41, %c0_42], %47 {strides = array<i32>} : memref<128x128xf32, #tpu.memory_space<vmem>>, vector<128x128xf32>,
    %cst_43 = arith.constant 0.000000e+00 : f32
    %57 = vector.broadcast %cst_43 : f32 to vector<8x128xf32>
    %c0_i32_44 = arith.constant 0 : i32
    %c128_i32_45 = arith.constant 128 : i32
    %58 = arith.muli %c0_i32_44, %c128_i32_45 : i32
    %59 = tpu.assume_multiple %58, 128 : i32
    %c0_46 = arith.constant 0 : index
    %60 = arith.index_cast %59 : i32 to index
    %61 = vector.load %arg3[%c0_46, %60] : memref<8x128xbf16, #tpu.memory_space<vmem>>, vector<8x128xbf16>
    %62 = arith.extf %61 : vector<8x128xbf16> to vector<8x128xf32>
    %63 = arith.index_cast %59 : i32 to index
    %c0_47 = arith.constant 0 : index
    %64 = vector.load %arg13[%63, %c0_47] : memref<128x128xf32, #tpu.memory_space<vmem>>, vector<128x128xf32>
    %65 = vector.shape_cast %62 : vector<8x128xf32> to vector<8x128x1xf32>
    %66 = vector.shape_cast %64 : vector<128x128xf32> to vector<1x128x128xf32>
    %67 = vector.broadcast %65 : vector<8x128x1xf32> to vector<8x128x128xf32>
    %68 = vector.broadcast %66 : vector<1x128x128xf32> to vector<8x128x128xf32>
    %69 = arith.mulf %67, %68 : vector<8x128x128xf32>
    %cst_48 = arith.constant dense<0xFF800000> : vector<8x128xf32>
    %70 = vector.multi_reduction <maximumf>, %69, %cst_48 [1] : vector<8x128x128xf32> to vector<8x128xf32>
    %71 = arith.maximumf %57, %70 : vector<8x128xf32>
    %c1_i32_49 = arith.constant 1 : i32
    %72 = arith.mulf %55, %71 : vector<8x128xf32>
    %73 = arith.addf %35, %72 : vector<8x128xf32>
    %74 = arith.truncf %73 : vector<8x128xf32> to vector<8x128xbf16>
    %c0_50 = arith.constant 0 : index
    %c0_51 = arith.constant 0 : index
    %75 = vector.load %arg4[%c0_50, %c0_51] : memref<128x8xbf16, #tpu.memory_space<vmem>>, vector<128x8xbf16>
    %cst_52 = arith.constant dense<0.000000e+00> : vector<128x128xf32>
    %76 = tpu.matmul %75, %74, %cst_52 {dimension_numbers = #tpu.dot_dimension_numbers<[1], [0], [0], [1], [0, 0, 1, 1], [], []>} : vector<128x8xbf16>, vector<8x128xbf16>, vector<128x128xf32> -> vector<128x128xf32>
    %c1 = arith.constant 1 : index
    %c0_53 = arith.constant 0 : index
    %c0_54 = arith.constant 0 : index
    %77 = vector.load %arg10[%c1, %c0_53, %c0_54] : memref<2x128x128xf32, #tpu.memory_space<vmem>>, vector<1x128x128xf32>
    %78 = vector.shape_cast %77 : vector<1x128x128xf32> to vector<128x128xf32>
    %79 = arith.subf %76, %52 : vector<128x128xf32>
    %cst_55 = arith.constant dense<0.000000e+00> : vector<128x128xf32>
    %80 = tpu.matmul %79, %78, %cst_55 {dimension_numbers = #tpu.dot_dimension_numbers<[1], [0], [0], [1], [0, 0, 1, 1], [], []>} : vector<128x128xf32>, vector<128x128xf32>, vector<128x128xf32> -> vector<128x128xf32>
    %81 = arith.addf %9, %80 : vector<128x128xf32>
    %cst_56 = arith.constant 0.000000e+00 : f32
    %82 = vector.broadcast %cst_56 : f32 to vector<128x128xf32>
    %83 = arith.maximumf %81, %82 : vector<128x128xf32>
    %c0_57 = arith.constant 0 : index
    %c0_58 = arith.constant 0 : index
    %84 = vector.load %arg3[%c0_57, %c0_58] : memref<8x128xbf16, #tpu.memory_space<vmem>>, vector<8x128xbf16>
    %85 = arith.truncf %83 : vector<128x128xf32> to vector<128x128xbf16>
    %cst_59 = arith.constant dense<0.000000e+00> : vector<8x128xf32>
    %86 = tpu.matmul %84, %85, %cst_59 {dimension_numbers = #tpu.dot_dimension_numbers<[1], [0], [0], [1], [0, 0, 1, 1], [], []>} : vector<8x128xbf16>, vector<128x128xbf16>, vector<8x128xf32> -> vector<8x128xf32>
    %c0_60 = arith.constant 0 : index
    %c0_61 = arith.constant 0 : index
    %87 = vector.load %arg13[%c0_60, %c0_61] : memref<128x128xf32, #tpu.memory_space<vmem>>, vector<128x128xf32>
    tpu.vector_store %arg13[%c0_60, %c0_61], %83 {strides = array<i32>} : memref<128x128xf32, #tpu.memory_space<vmem>>, vector<128x128xf32>,
    %cst_62 = arith.constant 0.000000e+00 : f32
    %88 = vector.broadcast %cst_62 : f32 to vector<8x128xf32>
    %c0_i32_63 = arith.constant 0 : i32
    %c128_i32_64 = arith.constant 128 : i32
    %89 = arith.muli %c0_i32_63, %c128_i32_64 : i32
    %90 = tpu.assume_multiple %89, 128 : i32
    %c0_65 = arith.constant 0 : index
    %91 = arith.index_cast %90 : i32 to index
    %92 = vector.load %arg3[%c0_65, %91] : memref<8x128xbf16, #tpu.memory_space<vmem>>, vector<8x128xbf16>
    %93 = arith.extf %92 : vector<8x128xbf16> to vector<8x128xf32>
    %94 = arith.index_cast %90 : i32 to index
    %c0_66 = arith.constant 0 : index
    %95 = vector.load %arg13[%94, %c0_66] : memref<128x128xf32, #tpu.memory_space<vmem>>, vector<128x128xf32>
    %96 = vector.shape_cast %93 : vector<8x128xf32> to vector<8x128x1xf32>
    %97 = vector.shape_cast %95 : vector<128x128xf32> to vector<1x128x128xf32>
    %98 = vector.broadcast %96 : vector<8x128x1xf32> to vector<8x128x128xf32>
    %99 = vector.broadcast %97 : vector<1x128x128xf32> to vector<8x128x128xf32>
    %100 = arith.mulf %98, %99 : vector<8x128x128xf32>
    %cst_67 = arith.constant dense<0xFF800000> : vector<8x128xf32>
    %101 = vector.multi_reduction <maximumf>, %100, %cst_67 [1] : vector<8x128x128xf32> to vector<8x128xf32>
    %102 = arith.maximumf %88, %101 : vector<8x128xf32>
    %c1_i32_68 = arith.constant 1 : i32
    %103 = arith.mulf %86, %102 : vector<8x128xf32>
    %104 = tpu.concatenate %103, %73, %4 in 1 : vector<8x128xf32>, vector<8x128xf32>, vector<8x128xf32> -> vector<8x384xf32>
    %c0_69 = arith.constant 0 : index
    %c0_70 = arith.constant 0 : index
    %105 = vector.load %arg11[%c0_69, %c0_70] : memref<384x128xf32, #tpu.memory_space<vmem>>, vector<384x128xf32>
    %cst_71 = arith.constant dense<0.000000e+00> : vector<8x128xf32>
    %106 = tpu.matmul %104, %105, %cst_71 {dimension_numbers = #tpu.dot_dimension_numbers<[1], [0], [0], [1], [0, 0, 1, 1], [], []>} : vector<8x384xf32>, vector<384x128xf32>, vector<8x128xf32> -> vector<8x128xf32>
    %cst_72 = arith.constant 0.000000e+00 : f32
    %107 = vector.broadcast %cst_72 : f32 to vector<8x128xf32>
    %108 = arith.maximumf %106, %107 : vector<8x128xf32>
    %c0_73 = arith.constant 0 : index
    %c0_74 = arith.constant 0 : index
    %109 = vector.load %arg6[%c0_73, %c0_74] : memref<2x8xf32, #tpu.memory_space<vmem>>, vector<2x8xf32>
    %cst_75 = arith.constant dense<0.000000e+00> : vector<2x128xf32>
    %110 = tpu.matmul %109, %108, %cst_75 {dimension_numbers = #tpu.dot_dimension_numbers<[1], [0], [0], [1], [0, 0, 1, 1], [], []>} : vector<2x8xf32>, vector<8x128xf32>, vector<2x128xf32> -> vector<2x128xf32>
    %c0_76 = arith.constant 0 : index
    %c0_77 = arith.constant 0 : index
    %111 = vector.load %arg7[%c0_76, %c0_77] : memref<2x1xf32, #tpu.memory_space<vmem>>, vector<2x1xf32>
    %112 = vector.broadcast %111 : vector<2x1xf32> to vector<2x128xf32>
    %113 = arith.mulf %110, %112 : vector<2x128xf32>
    %c0_78 = arith.constant 0 : index
    %c0_79 = arith.constant 0 : index
    %114 = vector.load %arg12[%c0_78, %c0_79] : memref<2x128xf32, #tpu.memory_space<vmem>>, vector<2x128xf32>
    tpu.vector_store %arg12[%c0_78, %c0_79], %113 {strides = array<i32>} : memref<2x128xf32, #tpu.memory_space<vmem>>, vector<2x128xf32>,
    return
  }
}

</mosaic_0001>

<bundles_post_ra>
// kernel: tpu_custom_call.1
= control target key start
LH: loop header
LB: loop body
LE: loop exit
PB: predicated region body
PF: predicated region fallthrough
CT: control target
= control target key end

     0   :  { %17 = vsyncpa [#allocation4], 0  ;;  %s8871_s0 = inlined_call_operand.vmem [shape: f32[8,16], index: 0, kind: input, shape index: {}]   ;;  %s8872_s1 = inlined_call_operand.vmem [shape: f32[128,8], index: 1, kind: input, shape index: {}]   ;;  %s8873_s2 = inlined_call_operand.vmem [shape: f32[128,8], index: 2, kind: input, shape index: {}]   ;;  %s8874_s3 = inlined_call_operand.vmem [shape: bf16[8,128], index: 3, kind: input, shape index: {}]   ;;  %s8875_s4 = inlined_call_operand.vmem [shape: bf16[128,8], index: 4, kind: input, shape index: {}]   ;;  %s8876_s5 = inlined_call_operand.vmem [shape: bf16[128,8], index: 5, kind: input, shape index: {}]   ;;  %s8877_s6 = inlined_call_operand.vmem [shape: f32[2,8], index: 6, kind: input, shape index: {}]   ;;  %s8878_s7 = inlined_call_operand.vmem [shape: f32[2,1], index: 7, kind: input, shape index: {}]   ;;  %s8879_s8 = inlined_call_operand.vmem [shape: f32[16,128], index: 8, kind: input, shape index: {}]   ;;  %s8880_s9 = inlined_call_operand.vmem [shape: f32[8,128], index: 9, kind: input, shape index: {}]   ;;  %s8881_s10 = inlined_call_operand.hbm [shape: f32[2,128,128], index: 10, kind: input, shape index: {}]   ;;  %s8882_s11 = inlined_call_operand.vmem [shape: f32[384,128], index: 11, kind: input, shape index: {}]   ;;  %s8883_s12 = inlined_call_operand.hbm [shape: f32[2,128], index: 12, kind: output, shape index: {}]  }
   0x1   :  { %18 = vsyncpa [#allocation5], 0  ;;  %s5637_s21 = smov [#allocation3]  }
   0x2   :  { %s44_s22 = sshll.u32 %s5637_s21, 4  ;;  %s45_s22 = int_to_ptr.vmem [resolvable:$true] %s44_s22 }
   0x3   :  { %s5601_s23 = scalar_lea.vmem %s45_s22, 4096  ;;  %p5606_p1 = scmp.lt.s32.totalorder %s45_s22, %s45_s22 }
   0x4   :  { %p5602_p0 = scmp.ne.s32.totalorder %s45_s22, %s5601_s23  ;;  %p5607_p2 = scmp.lt.s32.totalorder %s5601_s23, %s5601_s23 }
   0x6   :  { %p5608_p3 = por %p5607_p2, %p5606_p1 }
   0x8   :  { %p5609_p4 = pnand %p5608_p3, %p5602_p0 }
   0xa   :  { %5612 = shalt.err (!%p5609_p4)
}
   0xb   :  { %s5638_s24 = smov 128   ;;  %s5639_s25 = smov 8  }
   0xc   :  { %50 = dma.hbm_to_vmem [thread:$0]  %s8881_s10, 4096, %s45_s22, [#allocation4], %s5638_s24, %s5638_s24, %s5639_s25  }
   0xd   :  { %5633 = dma.done.wait [#allocation4], 4096  }
   0xe   :  { %5634 = vsyncadd [#allocation4], 4294963200  ;;  %v670_v0 = vlaneseq  ;;  %vm152_vm0 = vcmask 64512   ;;  %v5717_v2 = vld [vmem:[%s8880_s9] sm:$0xff]  ;;  %v136_v4 = vld [vmem:[%s8872_s1 + $0x8] sm:$0xff]  ;;  %v8884_v37 = vmov 0.0  }
   0xf   :  { %v135_v3 = vld [vmem:[%s8872_s1] sm:$0xff]  ;;  %5184 = vmatprep.subr.mxu1 %v5717_v2  ;;  %v137_v8 = vld [vmem:[%s8872_s1 + $0x10] sm:$0xff]  ;;  %v138_v12 = vld [vmem:[%s8872_s1 + $0x18] sm:$0xff]  ;;  %5177 = vmatprep.subr.mxu0 %v8884_v37  ;;  %vm5641_vm1 = vmmov 0   ;;  %vm60_vm2 = vcmask 130048   ;;  %vm1518_vm3 = vcmask 1041409  }
  0x10   :  { %v5712_v1 = vshrl.u32 %v670_v0, 7  ;;  %5186 = vmatprep.mubr.msk.f32.mxu1 %vm152_vm0, %v135_v3  ;;  %v652_v7 = vld [vmem:[%s8874_s3] sm:$0xf]  ;;  %5185 = vmatpush3.msra.mxu1 %v5717_v2  ;;  %v140_v17 = vld [vmem:[%s8872_s1 + $0x28] sm:$0xff]  ;;  %v141_v18 = vld [vmem:[%s8872_s1 + $0x30] sm:$0xff]  ;;  %vm1520_vm4 = vcmask 1042434  }
  0x11   :  { %v5740_v9 = vunpack.c.l.bf16 %v652_v7  ;;  %5187 = vmatmul.mubr.msk.f32.vlgmr.msra.gmra.mxu1 %vm152_vm0, %v136_v4  ;;  %v139_v13 = vld [vmem:[%s8872_s1 + $0x20] sm:$0xff]  ;;  %v142_v20 = vld [vmem:[%s8872_s1 + $0x38] sm:$0xff]  ;;  %v144_v22 = vld [vmem:[%s8872_s1 + $0x48] sm:$0xff]  ;;  %5236 = vmatprep.subr.bf16.mxu1 %v8884_v37  ;;  %vm1522_vm5 = vcmask 1043459   ;;  %vm1524_vm6 = vcmask 1044484   ;;  %vm1526_vm7 = vcmask 1045509  }
  0x12   :  { %v5726_v5 = vsub.s32 1, %v5712_v1  ;;  %v5729_v6 = vsub.s32 0, %v5712_v1  ;;  %5189 = vmatprep.mubr.msk.f32.mxu1 %vm152_vm0, %v137_v8  ;;  %v5759_v14 = vsub.s32 2, %v5712_v1  ;;  %v5762_v15 = vsub.s32 3, %v5712_v1  ;;  %v143_v21 = vld [vmem:[%s8872_s1 + $0x40] sm:$0xff]  ;;  %v145_v23 = vld [vmem:[%s8872_s1 + $0x50] sm:$0xff]  ;;  %5181 = vmatprep.mubr.msk.f32.mxu0 %vm5641_vm1, %v8884_v37 }
  0x13   :  { %v5765_v16 = vsub.s32 4, %v5712_v1  ;;  %v146_v25 = vld [vmem:[%s8872_s1 + $0x58] sm:$0xff]  ;;  %v147_v26 = vld [vmem:[%s8872_s1 + $0x60] sm:$0xff]  ;;  %v148_v28 = vld [vmem:[%s8872_s1 + $0x68] sm:$0xff]  ;;  %v5839_v31 = vsub.s32 5, %v5712_v1  ;;  %v5851_v33 = vsub.s32 6, %v5712_v1 }
  0x14   :  { %8987 = vst [vmem:[#allocation9_spill] sm:$0xff] %v5726_v5  ;;  %8988 = vst [vmem:[#allocation10_spill] sm:$0xff] %v5729_v6  ;;  %v5745_v10 = vrot.slane %v5740_v9, %v5726_v5  ;;  %v5749_v11 = vrot.slane %v5740_v9, %v5729_v6  ;;  %v5781_v19 = vrot.slane %v5740_v9, %v5759_v14  ;;  %v149_v29 = vld [vmem:[%s8872_s1 + $0x70] sm:$0xff]  ;;  %v150_v30 = vld [vmem:[%s8872_s1 + $0x78] sm:$0xff]  ;;  %v5864_v35 = vsub.s32 7, %v5712_v1  ;;  %s5643_s18 = smov [#allocation6]  }
  0x15   :  { %8989 = vst [vmem:[#allocation11_spill] sm:$0xff] %v5759_v14  ;;  %8990 = vst [vmem:[#allocation12_spill] sm:$0xff] %v5762_v15  ;;  %5190 = vmatmul.mubr.msk.f32.gmra.mxu1 %vm152_vm0, %v138_v12  ;;  %v5805_v24 = vrot.slane %v5740_v9, %v5762_v15  ;;  %v5819_v27 = vrot.slane %v5740_v9, %v5765_v16  ;;  %v5846_v32 = vrot.slane %v5740_v9, %v5839_v31  ;;  %v59_v44 = vld [vmem:[%s8879_s8 + $0x8] sm:$0xff]  ;;  %v58_v47 = vld [vmem:[%s8879_s8] sm:$0xff]  ;;  %vm1528_vm8 = vcmask 1046534   ;;  %s4845_s19 = sshll.u32 %s5643_s18, 4  ;;  %s4846_s19 = int_to_ptr.vmem [resolvable:$true] %s4845_s19 }
  0x16   :  { %8991 = vst [vmem:[#allocation13_spill] sm:$0xff] %v5765_v16  ;;  %742 = vbcast.lane.b32.xlu1 %v5745_v10, 256  ;;  %675 = vbcast.lane.b32.xlu0 %v5749_v11, 256  ;;  %8992 = vst [vmem:[#allocation14_spill] sm:$0xff] %v5839_v31  ;;  %v5857_v34 = vrot.slane %v5740_v9, %v5851_v33  ;;  %v5870_v36 = vrot.slane %v5740_v9, %v5864_v35  ;;  %v57_v48 = vld [vmem:[%s8871_s0] sm:$0xff]  ;;  %vm1530_vm9 = vcmask 1047559   ;;  %p5618_p6 = scmp.lt.s32.totalorder %s4846_s19, %s4846_s19 }
  0x17   :  { %5192 = vmatprep.mubr.msk.f32.mxu1 %vm152_vm0, %v139_v13  ;;  %8993 = vst [vmem:[#allocation15_spill] sm:$0xff] %v5851_v33  ;;  %8994 = vst [vmem:[#allocation16_spill] sm:$0xff] %v5864_v35  ;;  %5178 = vmatpush3.msra.mxu0 %v59_v44  ;;  %vm1616_vm10 = vcmask 1043456  }
  0x18   :  { %5179 = vmatprep.subr.mxu0 %v8884_v37 }
  0x19   :  { %5193 = vmatmul.mubr.msk.f32.gmra.mxu1 %vm152_vm0, %v140_v17  ;;  %5180 = vmatpush3.msra.mxu0 %v58_v47 }
  0x1a   :  { %746 = vbcast.lane.b32.xlu1 %v5745_v10, 264  ;;  %679 = vbcast.lane.b32.xlu0 %v5749_v11, 264 }
  0x1b   :  { %5195 = vmatprep.mubr.msk.f32.mxu1 %vm152_vm0, %v141_v18  ;;  %5182 = vmatmul.mubr.msk.f32.vlgmr.msra.gmra.mxu0 %vm60_vm2, %v57_v48 }
  0x1c   :  { %5210 = vmatprep.subr.mxu0 %v5717_v2 }
  0x1d   :  { %5196 = vmatmul.mubr.msk.f32.gmra.mxu1 %vm152_vm0, %v142_v20  ;;  %5211 = vmatpush3.msra.mxu0 %v5717_v2 }
  0x1e   :  { %813 = vbcast.lane.b32.xlu1 %v5781_v19, 264  ;;  %809 = vbcast.lane.b32.xlu0 %v5781_v19, 256 }
  0x1f   :  { %5198 = vmatprep.mubr.msk.f32.mxu1 %vm152_vm0, %v143_v21 }
  0x21   :  { %5199 = vmatmul.mubr.msk.f32.gmra.mxu1 %vm152_vm0, %v144_v22 }
  0x22   :  { %750 = vbcast.lane.b32.xlu1 %v5745_v10, 272  ;;  %683 = vbcast.lane.b32.xlu0 %v5749_v11, 272 }
  0x23   :  { %5201 = vmatprep.mubr.msk.f32.mxu1 %vm152_vm0, %v145_v23 }
  0x25   :  { %5202 = vmatmul.mubr.msk.f32.gmra.mxu1 %vm152_vm0, %v146_v25 }
  0x26   :  { %880 = vbcast.lane.b32.xlu1 %v5805_v24, 264  ;;  %876 = vbcast.lane.b32.xlu0 %v5805_v24, 256 }
  0x27   :  { %5204 = vmatprep.mubr.msk.f32.mxu1 %vm152_vm0, %v147_v26 }
  0x29   :  { %5205 = vmatmul.mubr.msk.f32.gmra.mxu1 %vm152_vm0, %v148_v28 }
  0x2a   :  { %943 = vbcast.lane.b32.xlu1 %v5819_v27, 256  ;;  %817 = vbcast.lane.b32.xlu0 %v5781_v19, 272 }
  0x2b   :  { %5207 = vmatprep.mubr.msk.f32.mxu1 %vm152_vm0, %v149_v29 }
  0x2d   :  { %5208 = vmatmul.mubr.msk.f32.gmra.mxu1 %vm152_vm0, %v150_v30 }
  0x2e   :  { %687 = vbcast.lane.b32.xlu1 %v5749_v11, 280  ;;  %947 = vbcast.lane.b32.xlu0 %v5819_v27, 264 }
  0x2f   :  { %5252 = vmatprep.mubr.msk.bf16.mxu1 %vm5641_vm1, %v8884_v37 }
  0x32   :  { %884 = vbcast.lane.b32.xlu1 %v5805_v24, 272  ;;  %754 = vbcast.lane.b32.xlu0 %v5745_v10, 280 }
  0x36   :  { %1014 = vbcast.lane.b32.xlu1 %v5846_v32, 264  ;;  %1010 = vbcast.lane.b32.xlu0 %v5846_v32, 256 }
  0x3a   :  { %951 = vbcast.lane.b32.xlu1 %v5819_v27, 272  ;;  %821 = vbcast.lane.b32.xlu0 %v5781_v19, 280 }
  0x3e   :  { %1081 = vbcast.lane.b32.xlu1 %v5857_v34, 264  ;;  %1077 = vbcast.lane.b32.xlu0 %v5857_v34, 256 }
  0x42   :  { %758 = vbcast.lane.b32.xlu1 %v5745_v10, 288  ;;  %691 = vbcast.lane.b32.xlu0 %v5749_v11, 288 }
  0x46   :  { %1018 = vbcast.lane.b32.xlu1 %v5846_v32, 272  ;;  %888 = vbcast.lane.b32.xlu0 %v5805_v24, 280 }
  0x4a   :  { %1148 = vbcast.lane.b32.xlu1 %v5870_v36, 264  ;;  %1144 = vbcast.lane.b32.xlu0 %v5870_v36, 256 }
  0x4e   :  { %955 = vbcast.lane.b32.xlu1 %v5819_v27, 280  ;;  %825 = vbcast.lane.b32.xlu0 %v5781_v19, 288 }
  0x52   :  { %695 = vbcast.lane.b32.xlu1 %v5749_v11, 296  ;;  %1085 = vbcast.lane.b32.xlu0 %v5857_v34, 272 }
  0x56   :  { %892 = vbcast.lane.b32.xlu1 %v5805_v24, 288  ;;  %762 = vbcast.lane.b32.xlu0 %v5745_v10, 296 }
  0x5a   :  { %1152 = vbcast.lane.b32.xlu1 %v5870_v36, 272  ;;  %1022 = vbcast.lane.b32.xlu0 %v5846_v32, 280 }
  0x5e   :  { %959 = vbcast.lane.b32.xlu1 %v5819_v27, 288  ;;  %829 = vbcast.lane.b32.xlu0 %v5781_v19, 296 }
  0x62   :  { %699 = vbcast.lane.b32.xlu1 %v5749_v11, 304  ;;  %1089 = vbcast.lane.b32.xlu0 %v5857_v34, 280 }
  0x66   :  { %896 = vbcast.lane.b32.xlu1 %v5805_v24, 296  ;;  %766 = vbcast.lane.b32.xlu0 %v5745_v10, 304 }
  0x6a   :  { %1156 = vbcast.lane.b32.xlu1 %v5870_v36, 280  ;;  %1026 = vbcast.lane.b32.xlu0 %v5846_v32, 288 }
  0x6e   :  { %963 = vbcast.lane.b32.xlu1 %v5819_v27, 296  ;;  %833 = vbcast.lane.b32.xlu0 %v5781_v19, 304 }
  0x72   :  { %703 = vbcast.lane.b32.xlu1 %v5749_v11, 312  ;;  %1093 = vbcast.lane.b32.xlu0 %v5857_v34, 288 }
  0x76   :  { %900 = vbcast.lane.b32.xlu1 %v5805_v24, 304  ;;  %770 = vbcast.lane.b32.xlu0 %v5745_v10, 312 }
  0x7a   :  { %1160 = vbcast.lane.b32.xlu1 %v5870_v36, 288  ;;  %1030 = vbcast.lane.b32.xlu0 %v5846_v32, 296 }
  0x7e   :  { %967 = vbcast.lane.b32.xlu1 %v5819_v27, 304  ;;  %837 = vbcast.lane.b32.xlu0 %v5781_v19, 312 }
  0x82   :  { %707 = vbcast.lane.b32.xlu1 %v5749_v11, 320  ;;  %1097 = vbcast.lane.b32.xlu0 %v5857_v34, 296 }
  0x86   :  { %904 = vbcast.lane.b32.xlu1 %v5805_v24, 312  ;;  %774 = vbcast.lane.b32.xlu0 %v5745_v10, 320 }
  0x88   :  { %v5906_v38 = vpop.permute.xlu1 %742  ;;  %v5908_v39 = vpop.permute.xlu0 %675 }
  0x8a   :  { %1164 = vbcast.lane.b32.xlu1 %v5870_v36, 296  ;;  %1034 = vbcast.lane.b32.xlu0 %v5846_v32, 304 }
  0x8c   :  { %v5912_v40 = vpop.permute.xlu1 %746  ;;  %v5914_v41 = vpop.permute.xlu0 %679 }
  0x8e   :  { %971 = vbcast.lane.b32.xlu1 %v5819_v27, 312  ;;  %841 = vbcast.lane.b32.xlu0 %v5781_v19, 320 }
  0x90   :  { %v5918_v42 = vpop.permute.xlu1 %813  ;;  %v5920_v43 = vpop.permute.xlu0 %809 }
  0x92   :  { %711 = vbcast.lane.b32.xlu1 %v5749_v11, 328  ;;  %1101 = vbcast.lane.b32.xlu0 %v5857_v34, 304 }
  0x94   :  { %v5927_v45 = vpop.permute.xlu1 %750  ;;  %v5929_v46 = vpop.permute.xlu0 %683 }
  0x96   :  { %908 = vbcast.lane.b32.xlu1 %v5805_v24, 320  ;;  %778 = vbcast.lane.b32.xlu0 %v5745_v10, 328 }
  0x98   :  { %v5944_v49 = vpop.permute.xlu1 %880  ;;  %v5946_v50 = vpop.permute.xlu0 %876 }
  0x9a   :  { %1168 = vbcast.lane.b32.xlu1 %v5870_v36, 304  ;;  %1038 = vbcast.lane.b32.xlu0 %v5846_v32, 312 }
  0x9c   :  { %v5952_v51 = vpop.permute.xlu1 %943  ;;  %v5954_v52 = vpop.permute.xlu0 %817 }
  0x9e   :  { %975 = vbcast.lane.b32.xlu1 %v5819_v27, 320  ;;  %845 = vbcast.lane.b32.xlu0 %v5781_v19, 328 }
  0xa0   :  { %v5958_v53 = vpop.permute.xlu1 %687  ;;  %v5960_v54 = vpop.permute.xlu0 %947 }
  0xa2   :  { %715 = vbcast.lane.b32.xlu1 %v5749_v11, 336  ;;  %1105 = vbcast.lane.b32.xlu0 %v5857_v34, 312 }
  0xa4   :  { %v5964_v55 = vpop.permute.xlu1 %884  ;;  %v5966_v56 = vpop.permute.xlu0 %754 }
  0xa6   :  { %912 = vbcast.lane.b32.xlu1 %v5805_v24, 328  ;;  %782 = vbcast.lane.b32.xlu0 %v5745_v10, 336 }
  0xa8   :  { %v5970_v57 = vpop.permute.xlu1 %1014  ;;  %v5972_v58 = vpop.permute.xlu0 %1010 }
  0xaa   :  { %1172 = vbcast.lane.b32.xlu1 %v5870_v36, 312  ;;  %1042 = vbcast.lane.b32.xlu0 %v5846_v32, 320 }
  0xac   :  { %v5976_v59 = vpop.permute.xlu1 %951  ;;  %v5978_v60 = vpop.permute.xlu0 %821 }
  0xad   :  { %8995 = vst [vmem:[#allocation17_spill] sm:$0xff] %v5978_v60 }
  0xae   :  { %979 = vbcast.lane.b32.xlu1 %v5819_v27, 328  ;;  %849 = vbcast.lane.b32.xlu0 %v5781_v19, 336 }
  0xb0   :  { %v5982_v61 = vpop.permute.xlu1 %1081  ;;  %v5984_v62 = vpop.permute.xlu0 %1077 }
  0xb2   :  { %719 = vbcast.lane.b32.xlu1 %v5749_v11, 344  ;;  %1109 = vbcast.lane.b32.xlu0 %v5857_v34, 320 }
  0xb4   :  { %v5988_v63 = vpop.permute.xlu1 %758  ;;  %v5990_v0 = vpop.permute.xlu0 %691 }
  0xb6   :  { %916 = vbcast.lane.b32.xlu1 %v5805_v24, 336  ;;  %786 = vbcast.lane.b32.xlu0 %v5745_v10, 344 }
  0xb8   :  { %v5994_v1 = vpop.permute.xlu1 %1018  ;;  %v5996_v2 = vpop.permute.xlu0 %888 }
  0xb9   :  { %8996 = vst [vmem:[#allocation18_spill] sm:$0xff] %v5994_v1 }
  0xba   :  { %1176 = vbcast.lane.b32.xlu1 %v5870_v36, 320  ;;  %1046 = vbcast.lane.b32.xlu0 %v5846_v32, 328 }
  0xbc   :  { %v6000_v3 = vpop.permute.xlu1 %1148  ;;  %v6002_v4 = vpop.permute.xlu0 %1144 }
  0xbe   :  { %983 = vbcast.lane.b32.xlu1 %v5819_v27, 336  ;;  %853 = vbcast.lane.b32.xlu0 %v5781_v19, 344 }
  0xc0   :  { %v6006_v7 = vpop.permute.xlu1 %955  ;;  %v6008_v8 = vpop.permute.xlu0 %825 }
  0xc1   :  { %8997 = vst [vmem:[#allocation19_spill] sm:$0xff] %v6008_v8 }
  0xc2   :  { %723 = vbcast.lane.b32.xlu1 %v5749_v11, 352  ;;  %1113 = vbcast.lane.b32.xlu0 %v5857_v34, 328 }
  0xc4   :  { %v6012_v9 = vpop.permute.xlu1 %695  ;;  %v6014_v12 = vpop.permute.xlu0 %1085 }
  0xc6   :  { %920 = vbcast.lane.b32.xlu1 %v5805_v24, 344  ;;  %790 = vbcast.lane.b32.xlu0 %v5745_v10, 352 }
  0xc8   :  { %v6018_v13 = vpop.permute.xlu1 %892  ;;  %v6020_v17 = vpop.permute.xlu0 %762 }
  0xc9   :  { %8998 = vst [vmem:[#allocation20_spill] sm:$0xff] %v6018_v13  ;;  %8999 = vst [vmem:[#allocation21_spill] sm:$0xff] %v6020_v17 }
  0xca   :  { %1180 = vbcast.lane.b32.xlu1 %v5870_v36, 328  ;;  %1050 = vbcast.lane.b32.xlu0 %v5846_v32, 336 }
  0xcc   :  { %v6024_v18 = vpop.permute.xlu1 %1152  ;;  %v6026_v20 = vpop.permute.xlu0 %1022 }
  0xcd   :  { %9000 = vst [vmem:[#allocation22_spill] sm:$0xff] %v6026_v20 }
  0xce   :  { %987 = vbcast.lane.b32.xlu1 %v5819_v27, 344  ;;  %857 = vbcast.lane.b32.xlu0 %v5781_v19, 352 }
  0xd0   :  { %v6030_v21 = vpop.permute.xlu1 %959  ;;  %v6032_v22 = vpop.permute.xlu0 %829 }
  0xd1   :  { %9001 = vst [vmem:[#allocation23_spill] sm:$0xff] %v6030_v21  ;;  %9002 = vst [vmem:[#allocation24_spill] sm:$0xff] %v6032_v22  ;;  %v6036_v23 = vpop.f32.mrf.mxu1 }
  0xd2   :  { %727 = vbcast.lane.b32.xlu1 %v5749_v11, 360  ;;  %1117 = vbcast.lane.b32.xlu0 %v5857_v34, 336 }
  0xd3   :  { %v6042_v28 = vpop.f32.mrf.mxu1 }
  0xd4   :  { %v6038_v25 = vpop.permute.xlu1 %699  ;;  %v6040_v26 = vpop.permute.xlu0 %1089 }
  0xd5   :  { %9003 = vst [vmem:[#allocation25_spill] sm:$0xff] %v6038_v25  ;;  %v6046_v29 = vpop.f32.mrf.mxu1 }
  0xd6   :  { %924 = vbcast.lane.b32.xlu1 %v5805_v24, 352  ;;  %794 = vbcast.lane.b32.xlu0 %v5745_v10, 360 }
  0xd7   :  { %v6052_v47 = vpop.f32.mrf.mxu1 }
  0xd8   :  { %v6048_v30 = vpop.permute.xlu1 %896  ;;  %v6050_v44 = vpop.permute.xlu0 %766 }
  0xd9   :  { %9004 = vst [vmem:[#allocation26_spill] sm:$0xff] %v6048_v30  ;;  %9005 = vst [vmem:[#allocation27_spill] sm:$0xff] %v6050_v44  ;;  %v6056_v48 = vpop.f32.mrf.mxu1 }
  0xda   :  { %1184 = vbcast.lane.b32.xlu1 %v5870_v36, 336  ;;  %1054 = vbcast.lane.b32.xlu0 %v5846_v32, 344 }
  0xdb   :  { %v6062_v33 = vpop.f32.mrf.mxu1 }
  0xdc   :  { %v6058_v37 = vpop.permute.xlu1 %1156  ;;  %v6060_v35 = vpop.permute.xlu0 %1026 }
  0xdd   :  { %9006 = vst [vmem:[#allocation28_spill] sm:$0xff] %v6060_v35  ;;  %v6066_v31 = vpop.f32.mrf.mxu1 }
  0xde   :  { %991 = vbcast.lane.b32.xlu1 %v5819_v27, 352  ;;  %861 = vbcast.lane.b32.xlu0 %v5781_v19, 360 }
  0xdf   :  { %v297_v22 = vpop.f32.mrf.mxu1 }
  0xe0   :  { %v6068_v16 = vpop.permute.xlu1 %963  ;;  %v6070_v15 = vpop.permute.xlu0 %833 }
  0xe1   :  { %9007 = vst [vmem:[#allocation29_spill] sm:$0xff] %v6068_v16  ;;  %9008 = vst [vmem:[#allocation30_spill] sm:$0xff] %v6070_v15  ;;  %v5200_v14 = vpop.f32.mrf.mxu1 }
  0xe2   :  { %731 = vbcast.lane.b32.xlu1 %v5749_v11, 368  ;;  %1121 = vbcast.lane.b32.xlu0 %v5857_v34, 344 }
  0xe3   :  { %v307_v20 = vpop.f32.mrf.mxu1 }
  0xe4   :  { %v6074_v44 = vpop.permute.xlu1 %703  ;;  %v6076_v35 = vpop.permute.xlu0 %1093 }
  0xe5   :  { %9009 = vst [vmem:[#allocation31_spill] sm:$0xff] %v6074_v44  ;;  %9010 = vst [vmem:[#allocation32_spill] sm:$0xff] %v6076_v35  ;;  %v5203_v17 = vpop.f32.mrf.mxu1 }
  0xe6   :  { %928 = vbcast.lane.b32.xlu1 %v5805_v24, 360  ;;  %798 = vbcast.lane.b32.xlu0 %v5745_v10, 368 }
  0xe7   :  { %v317_v15 = vpop.f32.mrf.mxu1 }
  0xe8   :  { %v6080_v25 = vpop.permute.xlu1 %900  ;;  %v6082_v16 = vpop.permute.xlu0 %770 }
  0xe9   :  { %9011 = vst [vmem:[#allocation33_spill] sm:$0xff] %v6080_v25  ;;  %9012 = vst [vmem:[#allocation34_spill] sm:$0xff] %v6082_v16  ;;  %v5206_v8 = vpop.f32.mrf.mxu1 }
  0xea   :  { %1188 = vbcast.lane.b32.xlu1 %v5870_v36, 344  ;;  %1058 = vbcast.lane.b32.xlu0 %v5846_v32, 352 }
  0xeb   :  { %v327_v35 = vpop.f32.mrf.mxu1 }
  0xec   :  { %v6086_v5 = vpop.permute.xlu1 %1160  ;;  %v6088_v44 = vpop.permute.xlu0 %1030  ;;  %v6108_v1 = vmax.f32 %v327_v35, 0.0  ;;  %v6125_v35 = vmax.f32 %v5203_v17, 0.0 }
  0xed   :  { %9013 = vst [vmem:[#allocation35_spill] sm:$0xff] %v6086_v5  ;;  %9014 = vst [vmem:[#allocation36_spill] sm:$0xff] %v6088_v44  ;;  %v5209_v13 = vpop.f32.mrf.mxu1 }
  0xee   :  { %995 = vbcast.lane.b32.xlu1 %v5819_v27, 360  ;;  %865 = vbcast.lane.b32.xlu0 %v5781_v19, 368  ;;  %v6096_v30 = vmax.f32 %v5209_v13, 0.0  ;;  %9019 = vst [vmem:[#allocation41_spill] sm:$0xff] %v6108_v1  ;;  %v6112_v13 = vmax.f32 %v5206_v8, 0.0  ;;  %9023 = vst [vmem:[#allocation44_spill] sm:$0xff] %v6125_v35 }
  0xef   :  { %v337_v16 = vpop.f32.mrf.mxu1 }
  0xf0   :  { %v6092_v60 = vpop.permute.xlu1 %967  ;;  %v6094_v25 = vpop.permute.xlu0 %837  ;;  %9016 = vst [vmem:[#allocation38_spill] sm:$0xff] %v6096_v30  ;;  %v6100_v5 = vmax.f32 %v337_v16, 0.0  ;;  %9020 = vst [vmem:[#allocation42_spill] sm:$0xff] %v6112_v13 }
  0xf1   :  { %9015 = vst [vmem:[#allocation37_spill] sm:$0xff] %v6094_v25  ;;  %v9021_v25 = vmov 0.0  }
  0xf2   :  { %735 = vbcast.lane.b32.xlu1 %v5749_v11, 376  ;;  %1125 = vbcast.lane.b32.xlu0 %v5857_v34, 352  ;;  %9017 = vst [vmem:[#allocation39_spill] sm:$0xff] %v6100_v5  ;;  %v595_v21 = vpack.c.bf16 %v6096_v30, %v6100_v5  ;;  %v594_v30 = vpack.c.bf16 %v6112_v13, %v6108_v1  ;;  %v6138_v5 = vmax.f32 %v5200_v14, 0.0  ;;  %v6145_v13 = vmax.f32 %v297_v22, 0.0 }
  0xf3   :  { %v6160_v22 = vmax.f32 %v6062_v33, 0.0  ;;  %v6175_v33 = vmax.f32 %v6052_v47, 0.0  ;;  %v6190_v47 = vmax.f32 %v6042_v28, 0.0 }
  0xf4   :  { %v6102_v44 = vpop.permute.xlu1 %707  ;;  %v6104_v6 = vpop.permute.xlu0 %1097  ;;  %5237 = vmatpush3.bf16.msra.mxu1 %v595_v21  ;;  %v6132_v21 = vmax.f32 %v307_v20, 0.0  ;;  %9025 = vst [vmem:[#allocation46_spill] sm:$0xff] %v6138_v5  ;;  %9026 = vst [vmem:[#allocation47_spill] sm:$0xff] %v6145_v13 }
  0xf5   :  { %9018 = vst [vmem:[#allocation40_spill] sm:$0xff] %v6102_v44  ;;  %5238 = vmatprep.subr.bf16.mxu1 %v9021_v25  ;;  %v6119_v44 = vmax.f32 %v317_v15, 0.0  ;;  %9028 = vst [vmem:[#allocation49_spill] sm:$0xff] %v6160_v22 }
  0xf6   :  { %932 = vbcast.lane.b32.xlu1 %v5805_v24, 368  ;;  %802 = vbcast.lane.b32.xlu0 %v5745_v10, 376  ;;  %9024 = vst [vmem:[#allocation45_spill] sm:$0xff] %v6132_v21  ;;  %v592_v20 = vpack.c.bf16 %v6138_v5, %v6132_v21  ;;  %9031 = vst [vmem:[#allocation52_spill] sm:$0xff] %v6175_v33 }
  0xf7   :  { %9022 = vst [vmem:[#allocation43_spill] sm:$0xff] %v6119_v44  ;;  %v593_v15 = vpack.c.bf16 %v6125_v35, %v6119_v44  ;;  %9035 = vst [vmem:[#allocation56_spill] sm:$0xff] %v6190_v47 }
  0xf8   :  { %v6114_v11 = vpop.permute.xlu1 %904  ;;  %v6116_v16 = vpop.permute.xlu0 %774  ;;  %5239 = vmatpush3.bf16.msra.mxu1 %v594_v30 }
  0xf9   :  { %5240 = vmatprep.subr.bf16.mxu1 %v9021_v25 }
  0xfa   :  { %1192 = vbcast.lane.b32.xlu1 %v5870_v36, 352  ;;  %1062 = vbcast.lane.b32.xlu0 %v5846_v32, 360 }
  0xfc   :  { %v6127_v10 = vpop.permute.xlu1 %1164  ;;  %v6129_v8 = vpop.permute.xlu0 %1034  ;;  %5241 = vmatpush3.bf16.msra.mxu1 %v593_v15 }
  0xfd   :  { %5242 = vmatprep.subr.bf16.mxu1 %v9021_v25 }
  0xfe   :  { %999 = vbcast.lane.b32.xlu1 %v5819_v27, 368  ;;  %869 = vbcast.lane.b32.xlu0 %v5781_v19, 376  ;;  %v6152_v19 = vmax.f32 %v6066_v31, 0.0 }
 0x100   :  { %v6140_v17 = vpop.permute.xlu1 %971  ;;  %v6142_v30 = vpop.permute.xlu0 %841  ;;  %9027 = vst [vmem:[#allocation48_spill] sm:$0xff] %v6152_v19  ;;  %5243 = vmatpush3.bf16.msra.mxu1 %v592_v20  ;;  %v591_v1 = vpack.c.bf16 %v6152_v19, %v6145_v13 }
 0x101   :  { %5244 = vmatprep.subr.bf16.mxu1 %v9021_v25 }
 0x102   :  { %936 = vbcast.lane.b32.xlu1 %v5805_v24, 376  ;;  %1129 = vbcast.lane.b32.xlu0 %v5857_v34, 360  ;;  %v6167_v24 = vmax.f32 %v6056_v48, 0.0  ;;  %v6182_v48 = vmax.f32 %v6046_v29, 0.0 }
 0x104   :  { %v6154_v14 = vpop.permute.xlu1 %711  ;;  %v6156_v15 = vpop.permute.xlu0 %1101  ;;  %9029 = vst [vmem:[#allocation50_spill] sm:$0xff] %v6167_v24  ;;  %5245 = vmatpush3.bf16.msra.mxu1 %v591_v1  ;;  %v590_v35 = vpack.c.bf16 %v6167_v24, %v6160_v22  ;;  %9032 = vst [vmem:[#allocation53_spill] sm:$0xff] %v6182_v48 }
 0x105   :  { %5246 = vmatprep.subr.bf16.mxu1 %v9021_v25 }
 0x106   :  { %1196 = vbcast.lane.b32.xlu1 %v5870_v36, 360  ;;  %1066 = vbcast.lane.b32.xlu0 %v5846_v32, 368 }
 0x108   :  { %v6169_v31 = vpop.permute.xlu1 %908  ;;  %v6171_v20 = vpop.permute.xlu0 %778  ;;  %5247 = vmatpush3.bf16.msra.mxu1 %v590_v35 }
 0x109   :  { %9030 = vst [vmem:[#allocation51_spill] sm:$0xff] %v6171_v20  ;;  %5248 = vmatprep.subr.bf16.mxu1 %v9021_v25  ;;  %v589_v20 = vpack.c.bf16 %v6182_v48, %v6175_v33 }
 0x10a   :  { %1133 = vbcast.lane.b32.xlu1 %v5857_v34, 368  ;;  %1003 = vbcast.lane.b32.xlu0 %v5819_v27, 376  ;;  %v6197_v27 = vmax.f32 %v6036_v23, 0.0  ;;  %v363_v23 = vld [vmem:[%s8873_s2 + $0x8] sm:$0xff] }
 0x10c   :  { %v6184_v1 = vpop.permute.xlu1 %1168  ;;  %v6186_v44 = vpop.permute.xlu0 %1038  ;;  %9036 = vst [vmem:[#allocation57_spill] sm:$0xff] %v6197_v27  ;;  %5249 = vmatpush3.bf16.msra.mxu1 %v589_v20  ;;  %v588_v28 = vpack.c.bf16 %v6197_v27, %v6190_v47  ;;  %v364_v20 = vld [vmem:[%s8873_s2 + $0x10] sm:$0xff] }
 0x10d   :  { %9033 = vst [vmem:[#allocation54_spill] sm:$0xff] %v6184_v1  ;;  %9034 = vst [vmem:[#allocation55_spill] sm:$0xff] %v6186_v44  ;;  %5250 = vmatprep.subr.bf16.mxu1 %v9021_v25  ;;  %v587_v25 = vld [vmem:[%s8874_s3] sm:$0xf] }
 0x10e   :  { %1200 = vbcast.lane.b32.xlu1 %v5870_v36, 368  ;;  %1070 = vbcast.lane.b32.xlu0 %v5846_v32, 376  ;;  %v362_v32 = vld [vmem:[%s8873_s2] sm:$0xff] }
 0x10f   :  { %5212 = vmatprep.mubr.msk.f32.mxu0 %vm152_vm0, %v362_v32 }
 0x110   :  { %v6199_v29 = vpop.permute.xlu1 %975  ;;  %v6201_v35 = vpop.permute.xlu0 %845  ;;  %5251 = vmatpush3.bf16.msra.mxu1 %v588_v28  ;;  %5213 = vmatmul.mubr.msk.f32.vlgmr.msra.gmra.mxu0 %vm152_vm0, %v363_v23  ;;  %v366_v28 = vld [vmem:[%s8873_s2 + $0x20] sm:$0xff]  ;;  %v367_v23 = vld [vmem:[%s8873_s2 + $0x28] sm:$0xff] }
 0x111   :  { %9037 = vst [vmem:[#allocation58_spill] sm:$0xff] %v6199_v29  ;;  %9038 = vst [vmem:[#allocation59_spill] sm:$0xff] %v6201_v35  ;;  %5215 = vmatprep.mubr.msk.f32.mxu0 %vm152_vm0, %v364_v20  ;;  %v365_v35 = vld [vmem:[%s8873_s2 + $0x18] sm:$0xff] }
 0x112   :  { %1204 = vbcast.lane.b32.xlu1 %v5870_v36, 376  ;;  %1137 = vbcast.lane.b32.xlu0 %v5857_v34, 376 }
 0x113   :  { %5253 = vmatmul.mubr.bf16.vlgmr.msra.gmra.mxu1 %v587_v25  ;;  %v368_v25 = vld [vmem:[%s8873_s2 + $0x30] sm:$0xff] }
 0x114   :  { %v6221_v34 = vpop.permute.xlu1 %715  ;;  %v6223_v36 = vpop.permute.xlu0 %1105  ;;  %5216 = vmatmul.mubr.msk.f32.gmra.mxu0 %vm152_vm0, %v365_v35  ;;  %v369_v35 = vld [vmem:[%s8873_s2 + $0x38] sm:$0xff] }
 0x115   :  { %9039 = vst [vmem:[#allocation60_spill] sm:$0xff] %v6221_v34  ;;  %9040 = vst [vmem:[#allocation61_spill] sm:$0xff] %v6223_v36  ;;  %5218 = vmatprep.mubr.msk.f32.mxu0 %vm152_vm0, %v366_v28  ;;  %v370_v28 = vld [vmem:[%s8873_s2 + $0x40] sm:$0xff] }
 0x118   :  { %v6233_v29 = vpop.permute.xlu1 %912  ;;  %v6235_v32 = vpop.permute.xlu0 %782  ;;  %5219 = vmatmul.mubr.msk.f32.gmra.mxu0 %vm152_vm0, %v367_v23  ;;  %v371_v23 = vld [vmem:[%s8873_s2 + $0x48] sm:$0xff] }
 0x119   :  { %9041 = vst [vmem:[#allocation62_spill] sm:$0xff] %v6233_v29  ;;  %9042 = vst [vmem:[#allocation63_spill] sm:$0xff] %v6235_v32  ;;  %5221 = vmatprep.mubr.msk.f32.mxu0 %vm152_vm0, %v368_v25  ;;  %v372_v25 = vld [vmem:[%s8873_s2 + $0x50] sm:$0xff] }
 0x11c   :  { %v6245_v20 = vpop.permute.xlu1 %1172  ;;  %v6247_v36 = vpop.permute.xlu0 %1042  ;;  %5222 = vmatmul.mubr.msk.f32.gmra.mxu0 %vm152_vm0, %v369_v35  ;;  %v373_v35 = vld [vmem:[%s8873_s2 + $0x58] sm:$0xff] }
 0x11d   :  { %9043 = vst [vmem:[#allocation64_spill] sm:$0xff] %v6245_v20  ;;  %9044 = vst [vmem:[#allocation65_spill] sm:$0xff] %v6247_v36  ;;  %5224 = vmatprep.mubr.msk.f32.mxu0 %vm152_vm0, %v370_v28  ;;  %v374_v28 = vld [vmem:[%s8873_s2 + $0x60] sm:$0xff] }
 0x120   :  { %v6257_v32 = vpop.permute.xlu1 %979  ;;  %v6259_v29 = vpop.permute.xlu0 %849  ;;  %5225 = vmatmul.mubr.msk.f32.gmra.mxu0 %vm152_vm0, %v371_v23 }
 0x121   :  { %9045 = vst [vmem:[#allocation66_spill] sm:$0xff] %v6257_v32  ;;  %9046 = vst [vmem:[#allocation67_spill] sm:$0xff] %v6259_v29  ;;  %5227 = vmatprep.mubr.msk.f32.mxu0 %vm152_vm0, %v372_v25 }
 0x124   :  { %v6269_v36 = vpop.permute.xlu1 %719  ;;  %v6271_v20 = vpop.permute.xlu0 %1109  ;;  %5228 = vmatmul.mubr.msk.f32.gmra.mxu0 %vm152_vm0, %v373_v35 }
 0x125   :  { %9047 = vst [vmem:[#allocation68_spill] sm:$0xff] %v6269_v36  ;;  %9048 = vst [vmem:[#allocation69_spill] sm:$0xff] %v6271_v20  ;;  %5230 = vmatprep.mubr.msk.f32.mxu0 %vm152_vm0, %v374_v28 }
 0x128   :  { %v6281_v29 = vpop.permute.xlu1 %916  ;;  %v6283_v32 = vpop.permute.xlu0 %786 }
 0x129   :  { %9049 = vst [vmem:[#allocation70_spill] sm:$0xff] %v6281_v29  ;;  %9050 = vst [vmem:[#allocation71_spill] sm:$0xff] %v6283_v32 }
 0x12c   :  { %v6287_v20 = vpop.permute.xlu1 %1176  ;;  %v6289_v23 = vpop.permute.xlu0 %1046 }
 0x12d   :  { %9051 = vst [vmem:[#allocation72_spill] sm:$0xff] %v6287_v20  ;;  %9052 = vst [vmem:[#allocation73_spill] sm:$0xff] %v6289_v23 }
 0x130   :  { %v6291_v25 = vpop.permute.xlu0 %853  ;;  %v6293_v36 = vpop.permute.xlu1 %983 }
 0x131   :  { %9053 = vst [vmem:[#allocation74_spill] sm:$0xff] %v6291_v25  ;;  %9054 = vst [vmem:[#allocation75_spill] sm:$0xff] %v6293_v36 }
 0x134   :  { %v6295_v34 = vpop.permute.xlu0 %1113  ;;  %v6297_v44 = vpop.permute.xlu1 %723 }
 0x135   :  { %9055 = vst [vmem:[#allocation76_spill] sm:$0xff] %v6295_v34  ;;  %9056 = vst [vmem:[#allocation77_spill] sm:$0xff] %v6297_v44 }
 0x138   :  { %v6299_v1 = vpop.permute.xlu0 %790  ;;  %v6301_v29 = vpop.permute.xlu1 %920 }
 0x139   :  { %9057 = vst [vmem:[#allocation78_spill] sm:$0xff] %v6299_v1  ;;  %9058 = vst [vmem:[#allocation79_spill] sm:$0xff] %v6301_v29  ;;  %v6321_v1 = vpop.f32.mrf.mxu0 }
 0x13a   :  { %9066 = vst [vmem:[#allocation87_spill] sm:$0xff] %v6321_v1 }
 0x13c   :  { %v6303_v32 = vpop.permute.xlu0 %1050  ;;  %v6305_v35 = vpop.permute.xlu1 %1180 }
 0x13d   :  { %9059 = vst [vmem:[#allocation80_spill] sm:$0xff] %v6303_v32  ;;  %v5183_v32 = vpop.f32.mrf.mxu0 }
 0x13e   :  { %v5569_v32 = vld [vmem:[%s8875_s4] sm:$0xff]  }
 0x140   :  { %v6307_v28 = vpop.permute.xlu0 %857  ;;  %v6309_v20 = vpop.permute.xlu1 %987 }
 0x141   :  { %9060 = vst [vmem:[#allocation81_spill] sm:$0xff] %v6307_v28  ;;  %v375_v28 = vld [vmem:[%s8873_s2 + $0x68] sm:$0xff] }
 0x142   :  { %5231 = vmatmul.mubr.msk.f32.gmra.mxu0 %vm152_vm0, %v375_v28 }
 0x144   :  { %v6311_v23 = vpop.permute.xlu0 %1117  ;;  %v6313_v25 = vpop.permute.xlu1 %727 }
 0x145   :  { %9061 = vst [vmem:[#allocation82_spill] sm:$0xff] %v6311_v23  ;;  %9062 = vst [vmem:[#allocation83_spill] sm:$0xff] %v6313_v25  ;;  %v376_v23 = vld [vmem:[%s8873_s2 + $0x70] sm:$0xff]  ;;  %v1206_v25 = vmul.f32 %v5908_v39, %v6190_v47  ;;  %v1271_v39 = vmul.f32 %v5960_v54, %v6197_v27 }
 0x146   :  { %5233 = vmatprep.mubr.msk.f32.mxu0 %vm152_vm0, %v376_v23 }
 0x148   :  { %v6315_v36 = vpop.permute.xlu0 %794  ;;  %v6317_v34 = vpop.permute.xlu1 %924 }
 0x149   :  { %9063 = vst [vmem:[#allocation84_spill] sm:$0xff] %v6315_v36  ;;  %9064 = vst [vmem:[#allocation85_spill] sm:$0xff] %v6317_v34 }
 0x14c   :  { %v6319_v44 = vpop.permute.xlu0 %1054  ;;  %v6323_v29 = vpop.permute.xlu1 %1184 }
 0x14d   :  { %9065 = vst [vmem:[#allocation86_spill] sm:$0xff] %v6319_v44  ;;  %9067 = vst [vmem:[#allocation88_spill] sm:$0xff] %v6323_v29  ;;  %v377_v44 = vld [vmem:[%s8873_s2 + $0x78] sm:$0xff]  ;;  %v5570_v29 = vld [vmem:[%s8876_s5] sm:$0xff]  }
 0x14e   :  { %5234 = vmatmul.mubr.msk.f32.gmra.mxu0 %vm152_vm0, %v377_v44  ;;  %5276 = vmatprep.mubr.msk.bf16.mxu1 %vm152_vm0, %v5570_v29  ;;  %v1318_v44 = vmul.f32 %v6002_v4, %v6190_v47  ;;  %v1319_v29 = vmul.f32 %v6000_v3, %v6197_v27  ;;  %v1303_v4 = vmul.f32 %v5982_v61, %v6197_v27 }
 0x14f   :  { %5258 = vmatprep.mubr.msk.bf16.mxu0 %vm152_vm0, %v5569_v32  ;;  %v1270_v32 = vmul.f32 %v5952_v51, %v6190_v47  ;;  %v1255_v3 = vmul.f32 %v5944_v49, %v6197_v27  ;;  %v1222_v51 = vmul.f32 %v5906_v38, %v6190_v47  ;;  %v1254_v61 = vmul.f32 %v5946_v50, %v6190_v47 }
 0x150   :  { %v6336_v1 = vpop.permute.xlu0 %861  ;;  %v6346_v28 = vpop.permute.xlu1 %991  ;;  %v1481_v54 = vmax.f32 %v1318_v44, %v1319_v29  ;;  %v1224_v49 = vmul.f32 %v5927_v45, %v6175_v33  ;;  %v1286_v38 = vmul.f32 %v5972_v58, %v6190_v47  ;;  %v1320_v44 = vmul.f32 %v6024_v18, %v6175_v33 }
 0x151   :  { %9068 = vst [vmem:[#allocation89_spill] sm:$0xff] %v6336_v1  ;;  %v1209_v50 = vmul.f32 %v5958_v53, %v6182_v48  ;;  %v1238_v58 = vmul.f32 %v5920_v43, %v6190_v47  ;;  %v1304_v29 = vmul.f32 %v6014_v12, %v6175_v33  ;;  %v6415_v53 = vmul.f32 %v6058_v37, %v6182_v48 }
 0x152   :  { %v1239_v43 = vmul.f32 %v5918_v42, %v6197_v27  ;;  %v1240_v12 = vmul.f32 %v5954_v52, %v6175_v33  ;;  %v1225_v37 = vmul.f32 %v5966_v56, %v6182_v48  ;;  %v2361_v42 = vld [vmem:[%s8874_s3] sm:$0xf]  ;;  %v1211_v52 = vmul.f32 %v6012_v9, %v6167_v24  ;;  %v9074_v56 = vld [vmem:[#allocation18_spill] sm:$0xff] }
 0x153   :  { %v9076_v9 = vld [vmem:[#allocation10_spill] sm:$0xff] }
 0x154   :  { %v6349_v23 = vpop.permute.xlu0 %1121  ;;  %v6351_v36 = vpop.permute.xlu1 %731 }
 0x155   :  { %9069 = vst [vmem:[#allocation90_spill] sm:$0xff] %v6349_v23  ;;  %9070 = vst [vmem:[#allocation91_spill] sm:$0xff] %v6351_v36  ;;  %v1207_v23 = vmul.f32 %v5914_v41, %v6197_v27  ;;  %v1302_v41 = vmul.f32 %v5984_v62, %v6190_v47  ;;  %v1272_v62 = vmul.f32 %v5976_v59, %v6175_v33 }
 0x156   :  { %v6407_v59 = vmul.f32 %v6040_v26, %v6182_v48  ;;  %v1210_v26 = vmul.f32 %v5990_v0, %v6160_v22 }
 0x158   :  { %v6353_v1 = vpop.permute.xlu0 %798  ;;  %v6355_v34 = vpop.permute.xlu1 %928 }
 0x159   :  { %9071 = vst [vmem:[#allocation92_spill] sm:$0xff] %v6353_v1  ;;  %9072 = vst [vmem:[#allocation93_spill] sm:$0xff] %v6355_v34  ;;  %v1208_v1 = vmul.f32 %v5929_v46, %v6175_v33  ;;  %v1334_v34 = vmax.f32 %v1206_v25, %v1207_v23  ;;  %v1223_v46 = vmul.f32 %v5912_v40, %v6197_v27 }
 0x15a   :  { %v1273_v40 = vmul.f32 %v6006_v7, %v6182_v48  ;;  %v1418_v23 = vmax.f32 %v1270_v32, %v1271_v39  ;;  %v1460_v7 = vmax.f32 %v1302_v41, %v1303_v4  ;;  %v1397_v4 = vmax.f32 %v1254_v61, %v1255_v3 }
 0x15b   :  { %v1355_v45 = vmax.f32 %v1222_v51, %v1223_v46  ;;  %v1257_v51 = vmul.f32 %v5996_v2, %v6182_v48  ;;  %v1376_v41 = vmax.f32 %v1238_v58, %v1239_v43  ;;  %v1226_v2 = vmul.f32 %v5988_v63, %v6160_v22  ;;  %v9077_v63 = vld [vmem:[#allocation26_spill] sm:$0xff] }
 0x15c   :  { %v6369_v36 = vpop.permute.xlu0 %1058  ;;  %v6391_v25 = vpop.permute.xlu1 %1188  ;;  %v1419_v32 = vmax.f32 %v1418_v23, %v1272_v62  ;;  %v1461_v0 = vmax.f32 %v1460_v7, %v1304_v29  ;;  %v9075_v23 = vld [vmem:[#allocation23_spill] sm:$0xff]  ;;  %v1259_v7 = vmul.f32 %v9077_v63, %v6167_v24  ;;  %v9084_v63 = vld [vmem:[#allocation32_spill] sm:$0xff] }
 0x15d   :  { %9073 = vst [vmem:[#allocation94_spill] sm:$0xff] %v6369_v36  ;;  %v1287_v36 = vmul.f32 %v5970_v57, %v6197_v27  ;;  %v1335_v57 = vmax.f32 %v1334_v34, %v1208_v1  ;;  %v1256_v1 = vmul.f32 %v5964_v55, %v6175_v33  ;;  %v1356_v18 = vmax.f32 %v1355_v45, %v1224_v49 }
 0x15e   :  { %v6423_v55 = vmax.f32 %v1481_v54, %v1320_v44  ;;  %v6436_v54 = vunpack.c.l.bf16 %v2361_v42  ;;  %v1288_v49 = vmul.f32 %v9074_v56, %v6175_v33  ;;  %v1377_v62 = vmax.f32 %v1376_v41, %v1240_v12  ;;  %v9079_v12 = vld [vmem:[#allocation20_spill] sm:$0xff]  ;;  %v9082_v41 = vld [vmem:[#allocation29_spill] sm:$0xff] }
 0x15f   :  { %v1336_v39 = vmax.f32 %v1335_v57, %v1209_v50  ;;  %v1398_v3 = vmax.f32 %v1397_v4, %v1256_v1  ;;  %v1357_v61 = vmax.f32 %v1356_v18, %v1225_v37  ;;  %v1274_v57 = vmul.f32 %v9075_v23, %v6160_v22  ;;  %v9078_v18 = vld [vmem:[#allocation17_spill] sm:$0xff] }
 0x160   :  { %v6411_v34 = vpop.permute.xlu0 %865  ;;  %v6429_v46 = vpop.permute.xlu1 %995  ;;  %v1420_v44 = vmax.f32 %v1419_v32, %v1273_v40  ;;  %v6448_v58 = vrot.slane %v6436_v54, %v9076_v9  ;;  %v1483_v29 = vmax.f32 %v6423_v55, %v6415_v53  ;;  %v1439_v1 = vmax.f32 %v1286_v38, %v1287_v36  ;;  %v9081_v55 = vld [vmem:[#allocation19_spill] sm:$0xff] }
 0x161   :  { %v1337_v50 = vmax.f32 %v1336_v39, %v1210_v26  ;;  %v1241_v43 = vmul.f32 %v9078_v18, %v6182_v48  ;;  %v1258_v40 = vmul.f32 %v9079_v12, %v6160_v22  ;;  %v1399_v32 = vmax.f32 %v1398_v3, %v1257_v51  ;;  %v9080_v26 = vld [vmem:[#allocation9_spill] sm:$0xff]  ;;  %v9087_v12 = vld [vmem:[#allocation27_spill] sm:$0xff] }
 0x162   :  { %2388 = vbcast.lane.b32.xlu1 %v6448_v58, 264  ;;  %2384 = vbcast.lane.b32.xlu0 %v6448_v58, 256  ;;  %v6462_v39 = vrot.slane %v6436_v54, %v9080_v26  ;;  %v1358_v53 = vmax.f32 %v1357_v61, %v1226_v2  ;;  %v1440_v4 = vmax.f32 %v1439_v1, %v1288_v49  ;;  %v9083_v3 = vld [vmem:[#allocation25_spill] sm:$0xff]  ;;  %v9092_v26 = vld [vmem:[#allocation31_spill] sm:$0xff] }
 0x163   :  { %v1242_v36 = vmul.f32 %v9081_v55, %v6160_v22  ;;  %v1378_v38 = vmax.f32 %v1377_v62, %v1241_v43  ;;  %v1275_v42 = vmul.f32 %v9082_v41, %v6167_v24  ;;  %v1421_v51 = vmax.f32 %v1420_v44, %v1274_v57  ;;  %v9085_v61 = vld [vmem:[#allocation21_spill] sm:$0xff]  ;;  %v9086_v62 = vld [vmem:[#allocation22_spill] sm:$0xff] }
 0x164   :  { %v6444_v45 = vpop.permute.xlu0 %1125  ;;  %v6466_v37 = vpop.permute.xlu1 %735  ;;  %v1212_v56 = vmul.f32 %v9083_v3, %v6145_v13  ;;  %v1338_v23 = vmax.f32 %v1337_v50, %v1211_v52  ;;  %v1306_v18 = vmul.f32 %v9084_v63, %v6160_v22  ;;  %v1462_v2 = vmax.f32 %v1461_v0, %v6407_v59  ;;  %v9088_v52 = vld [vmem:[#allocation11_spill] sm:$0xff]  ;;  %v9089_v0 = vld [vmem:[#allocation28_spill] sm:$0xff]  ;;  %v9090_v63 = vld [vmem:[#allocation33_spill] sm:$0xff] }
 0x165   :  { %v1227_v49 = vmul.f32 %v9085_v61, %v6167_v24  ;;  %v1289_v1 = vmul.f32 %v9086_v62, %v6182_v48  ;;  %v1400_v43 = vmax.f32 %v1399_v32, %v1258_v40  ;;  %v1228_v55 = vmul.f32 %v9087_v12, %v6145_v13  ;;  %v9091_v62 = vld [vmem:[#allocation35_spill] sm:$0xff] }
 0x166   :  { %2455 = vbcast.lane.b32.xlu1 %v6462_v39, 264  ;;  %2451 = vbcast.lane.b32.xlu0 %v6462_v39, 256  ;;  %v6487_v44 = vrot.slane %v6436_v54, %v9088_v52  ;;  %v1290_v50 = vmul.f32 %v9089_v0, %v6160_v22  ;;  %v1379_v3 = vmax.f32 %v1378_v38, %v1242_v36  ;;  %v9093_v52 = vld [vmem:[#allocation34_spill] sm:$0xff] }
 0x167   :  { %v1359_v59 = vmax.f32 %v1358_v53, %v1227_v49  ;;  %v1441_v41 = vmax.f32 %v1440_v4, %v1289_v1  ;;  %v1422_v40 = vmax.f32 %v1421_v51, %v1275_v42  ;;  %v1339_v32 = vmax.f32 %v1338_v23, %v1212_v56  ;;  %v9094_v53 = vld [vmem:[#allocation36_spill] sm:$0xff]  ;;  %v9096_v1 = vld [vmem:[#allocation30_spill] sm:$0xff] }
 0x168   :  { %v6481_v57 = vpop.permute.xlu0 %802  ;;  %v1260_v61 = vmul.f32 %v9090_v63, %v6145_v13  ;;  %v1322_v12 = vmul.f32 %v9091_v62, %v6160_v22  ;;  %v1213_v9 = vmul.f32 %v9092_v26, %v6152_v19  ;;  %v1229_v48 = vmul.f32 %v9093_v52, %v6152_v19  ;;  %v9095_v4 = vld [vmem:[#allocation24_spill] sm:$0xff]  ;;  %v6503_v38 = vpop.permute.xlu1 %932 }
 0x169   :  { %v1291_v49 = vmul.f32 %v9094_v53, %v6167_v24  ;;  %v1243_v36 = vmul.f32 %v9095_v4, %v6167_v24  ;;  %v1463_v42 = vmax.f32 %v1462_v2, %v1306_v18  ;;  %v1401_v51 = vmax.f32 %v1400_v43, %v1259_v7  ;;  %v9097_v4 = vld [vmem:[#allocation40_spill] sm:$0xff]  ;;  %v9098_v43 = vld [vmem:[#allocation37_spill] sm:$0xff] }
 0x16a   :  { %v1276_v56 = vmul.f32 %v6092_v60, %v6145_v13  ;;  %2522 = vbcast.lane.b32.xlu1 %v6487_v44, 264  ;;  %2518 = vbcast.lane.b32.xlu0 %v6487_v44, 256  ;;  %v1360_v26 = vmax.f32 %v1359_v59, %v1228_v55  ;;  %v1442_v23 = vmax.f32 %v1441_v41, %v1290_v50 }
 0x16b   :  { %v1244_v52 = vmul.f32 %v9096_v1, %v6145_v13  ;;  %v1380_v0 = vmax.f32 %v1379_v3, %v1243_v36  ;;  %v1340_v63 = vmax.f32 %v1339_v32, %v1213_v9  ;;  %v1402_v62 = vmax.f32 %v1401_v51, %v1260_v61  ;;  %v9099_v9 = vld [vmem:[#allocation12_spill] sm:$0xff]  ;;  %v9100_v51 = vld [vmem:[#allocation51_spill] sm:$0xff] }
 0x16c   :  { %v1484_v53 = vmax.f32 %v1483_v29, %v1322_v12  ;;  %v1214_v18 = vmul.f32 %v9097_v4, %v6132_v21  ;;  %v6513_v7 = vpop.permute.xlu0 %1062  ;;  %v1361_v2 = vmax.f32 %v1360_v26, %v1229_v48  ;;  %v1443_v60 = vmax.f32 %v1442_v23, %v1291_v49 }
 0x16d   :  { %v1245_v22 = vmul.f32 %v9098_v43, %v6152_v19  ;;  %v1307_v55 = vmul.f32 %v6104_v6, %v6167_v24  ;;  %v1423_v59 = vmax.f32 %v1422_v40, %v1276_v56  ;;  %v1261_v50 = vmul.f32 %v6114_v11, %v6152_v19  ;;  %v6533_v40 = vpop.permute.xlu1 %1192 }
 0x16e   :  { %2459 = vbcast.lane.b32.xlu1 %v6462_v39, 272  ;;  %2392 = vbcast.lane.b32.xlu0 %v6448_v58, 272  ;;  %v6525_v29 = vrot.slane %v6436_v54, %v9099_v9  ;;  %v1381_v48 = vmax.f32 %v1380_v0, %v1244_v52  ;;  %v1230_v41 = vmul.f32 %v6116_v16, %v6132_v21  ;;  %v9103_v0 = vld [vmem:[#allocation55_spill] sm:$0xff]  ;;  %v9134_v9 = vld [vmem:[#allocation82_spill] sm:$0xff] }
 0x16f   :  { %v1323_v3 = vmul.f32 %v6127_v10, %v6167_v24  ;;  %v1292_v6 = vmul.f32 %v6129_v8, %v6145_v13  ;;  %v1341_v11 = vmax.f32 %v1340_v63, %v1214_v18  ;;  %v1277_v32 = vmul.f32 %v6140_v17, %v6152_v19  ;;  %v9101_v17 = vld [vmem:[#allocation13_spill] sm:$0xff]  ;;  %v9104_v18 = vld [vmem:[#allocation58_spill] sm:$0xff] }
 0x170   :  { %v1246_v61 = vmul.f32 %v6142_v30, %v6132_v21  ;;  %v1215_v12 = vmul.f32 %v6154_v14, %v6138_v5  ;;  %v1382_v49 = vmax.f32 %v1381_v48, %v1245_v22  ;;  %v1464_v16 = vmax.f32 %v1463_v42, %v1307_v55  ;;  %v6547_v26 = vpop.permute.xlu0 %869  ;;  %v9102_v42 = vld [vmem:[#allocation54_spill] sm:$0xff]  ;;  %v9105_v55 = vld [vmem:[#allocation59_spill] sm:$0xff]  ;;  %v9107_v48 = vld [vmem:[#allocation60_spill] sm:$0xff] }
 0x171   :  { %v1308_v10 = vmul.f32 %v6156_v15, %v6145_v13  ;;  %v1262_v8 = vmul.f32 %v6169_v31, %v6132_v21  ;;  %v1403_v36 = vmax.f32 %v1402_v62, %v1261_v50  ;;  %v1231_v56 = vmul.f32 %v9100_v51, %v6138_v5  ;;  %v9113_v51 = vld [vmem:[#allocation66_spill] sm:$0xff] }
 0x172   :  { %2589 = vbcast.lane.b32.xlu1 %v6525_v29, 264  ;;  %2585 = vbcast.lane.b32.xlu0 %v6525_v29, 256  ;;  %v6553_v30 = vrot.slane %v6436_v54, %v9101_v17  ;;  %v1362_v14 = vmax.f32 %v1361_v2, %v1230_v41  ;;  %v1485_v22 = vmax.f32 %v1484_v53, %v1323_v3  ;;  %v6563_v2 = vpop.permute.xlu1 %999  ;;  %v9138_v24 = vld [vmem:[#allocation86_spill] sm:$0xff] }
 0x173   :  { %v1444_v15 = vmax.f32 %v1443_v60, %v1292_v6  ;;  %v1324_v31 = vmul.f32 %v9102_v42, %v6145_v13  ;;  %v1424_v23 = vmax.f32 %v1423_v59, %v1277_v32  ;;  %v1383_v1 = vmax.f32 %v1382_v49, %v1246_v61  ;;  %v9106_v60 = vld [vmem:[#allocation43_spill] sm:$0xff]  ;;  %v9108_v59 = vld [vmem:[#allocation61_spill] sm:$0xff]  ;;  %v9111_v49 = vld [vmem:[#allocation64_spill] sm:$0xff] }
 0x174   :  { %v1342_v52 = vmax.f32 %v1341_v11, %v1215_v12  ;;  %v1293_v63 = vmul.f32 %v9103_v0, %v6152_v19  ;;  %v1465_v62 = vmax.f32 %v1464_v16, %v1308_v10  ;;  %v1404_v4 = vmax.f32 %v1403_v36, %v1262_v8  ;;  %v9109_v11 = vld [vmem:[#allocation62_spill] sm:$0xff]  ;;  %v9110_v61 = vld [vmem:[#allocation63_spill] sm:$0xff]  ;;  %v9112_v8 = vld [vmem:[#allocation65_spill] sm:$0xff] }
 0x175   :  { %v1278_v43 = vmul.f32 %v9104_v18, %v6132_v21  ;;  %v1247_v50 = vmul.f32 %v9105_v55, %v6138_v5  ;;  %v1363_v53 = vmax.f32 %v1362_v14, %v1231_v56  ;;  %v1216_v41 = vmul.f32 %v9107_v48, %v9106_v60  ;;  %v9114_v14 = vld [vmem:[#allocation67_spill] sm:$0xff]  ;;  %v9115_v18 = vld [vmem:[#allocation44_spill] sm:$0xff] }
 0x176   :  { %v1309_v3 = vmul.f32 %v9108_v59, %v6152_v19  ;;  %2652 = vbcast.lane.b32.xlu1 %v6553_v30, 256  ;;  %2526 = vbcast.lane.b32.xlu0 %v6487_v44, 272  ;;  %v1486_v6 = vmax.f32 %v1485_v22, %v1324_v31  ;;  %v1263_v32 = vmul.f32 %v9109_v11, %v6138_v5  ;;  %v6583_v22 = vpop.permute.xlu0 %1129  ;;  %v9116_v55 = vld [vmem:[#allocation68_spill] sm:$0xff]  ;;  %v9117_v59 = vld [vmem:[#allocation69_spill] sm:$0xff] }
 0x177   :  { %v1232_v12 = vmul.f32 %v9110_v61, %v9106_v60  ;;  %v1325_v16 = vmul.f32 %v9111_v49, %v6152_v19  ;;  %v1445_v10 = vmax.f32 %v1444_v15, %v1293_v63  ;;  %v1294_v36 = vmul.f32 %v9112_v8, %v6132_v21  ;;  %v9118_v61 = vld [vmem:[#allocation70_spill] sm:$0xff] }
 0x178   :  { %v1279_v56 = vmul.f32 %v9113_v51, %v6138_v5  ;;  %v1248_v42 = vmul.f32 %v9114_v14, %v9106_v60  ;;  %v1425_v31 = vmax.f32 %v1424_v23, %v1278_v43  ;;  %v1384_v0 = vmax.f32 %v1383_v1, %v1247_v50  ;;  %v9119_v23 = vld [vmem:[#allocation71_spill] sm:$0xff]  ;;  %v6595_v43 = vpop.permute.xlu1 %936 }
 0x179   :  { %v1217_v48 = vmul.f32 %v9116_v55, %v9115_v18  ;;  %v1310_v11 = vmul.f32 %v9117_v59, %v6132_v21  ;;  %v1343_v15 = vmax.f32 %v1342_v52, %v1216_v41  ;;  %v1466_v63 = vmax.f32 %v1465_v62, %v1309_v3  ;;  %v9120_v52 = vld [vmem:[#allocation72_spill] sm:$0xff] }
 0x17a   :  { %v1264_v49 = vmul.f32 %v9118_v61, %v9106_v60  ;;  %2396 = vbcast.lane.b32.xlu1 %v6448_v58, 280  ;;  %2656 = vbcast.lane.b32.xlu0 %v6553_v30, 264  ;;  %v1405_v8 = vmax.f32 %v1404_v4, %v1263_v32  ;;  %v1364_v51 = vmax.f32 %v1363_v53, %v1232_v12  ;;  %v9121_v61 = vld [vmem:[#allocation73_spill] sm:$0xff]  ;;  %v9122_v4 = vld [vmem:[#allocation75_spill] sm:$0xff]  ;;  %v9123_v32 = vld [vmem:[#allocation74_spill] sm:$0xff] }
 0x17b   :  { %v1487_v14 = vmax.f32 %v1486_v6, %v1325_v16  ;;  %v1233_v1 = vmul.f32 %v9119_v23, %v9115_v18  ;;  %v1446_v50 = vmax.f32 %v1445_v10, %v1294_v36  ;;  %v1426_v55 = vmax.f32 %v1425_v31, %v1279_v56  ;;  %v6605_v16 = vpop.permute.xlu0 %1066  ;;  %v9124_v10 = vld [vmem:[#allocation14_spill] sm:$0xff]  ;;  %v9126_v31 = vld [vmem:[#allocation77_spill] sm:$0xff] }
 0x17c   :  { %v1385_v59 = vmax.f32 %v1384_v0, %v1248_v42  ;;  %v1326_v62 = vmul.f32 %v9120_v52, %v6132_v21  ;;  %v1344_v41 = vmax.f32 %v1343_v15, %v1217_v48  ;;  %v1467_v3 = vmax.f32 %v1466_v63, %v1310_v11  ;;  %v9125_v42 = vld [vmem:[#allocation41_spill] sm:$0xff]  ;;  %v9127_v48 = vld [vmem:[#allocation76_spill] sm:$0xff]  ;;  %v9128_v15 = vld [vmem:[#allocation79_spill] sm:$0xff] }
 0x17d   :  { %v1295_v17 = vmul.f32 %v9121_v61, %v6138_v5  ;;  %v1280_v53 = vmul.f32 %v9122_v4, %v9106_v60  ;;  %v1406_v6 = vmax.f32 %v1405_v8, %v1264_v49  ;;  %v1249_v12 = vmul.f32 %v9123_v32, %v9115_v18  ;;  %v9129_v8 = vld [vmem:[#allocation78_spill] sm:$0xff]  ;;  %v9130_v61 = vld [vmem:[#allocation80_spill] sm:$0xff] }
 0x17e   :  { %2593 = vbcast.lane.b32.xlu1 %v6525_v29, 272  ;;  %2463 = vbcast.lane.b32.xlu0 %v6462_v39, 280  ;;  %v6611_v36 = vrot.slane %v6436_v54, %v9124_v10  ;;  %v1365_v56 = vmax.f32 %v1364_v51, %v1233_v1  ;;  %v1218_v0 = vmul.f32 %v9126_v31, %v9125_v42  ;;  %v9131_v31 = vld [vmem:[#allocation81_spill] sm:$0xff]  ;;  %v6629_v10 = vpop.permute.xlu1 %1196 }
 0x17f   :  { %v1311_v11 = vmul.f32 %v9127_v48, %v6138_v5  ;;  %v1265_v63 = vmul.f32 %v9128_v15, %v9115_v18  ;;  %v1488_v49 = vmax.f32 %v1487_v14, %v1326_v62  ;;  %v1234_v23 = vmul.f32 %v9129_v8, %v9125_v42  ;;  %v9132_v62 = vld [vmem:[#allocation42_spill] sm:$0xff]  ;;  %v9133_v15 = vld [vmem:[#allocation83_spill] sm:$0xff] }
 0x180   :  { %v1327_v52 = vmul.f32 %v6305_v35, %v6138_v5  ;;  %v1296_v4 = vmul.f32 %v9130_v61, %v9106_v60  ;;  %v1447_v51 = vmax.f32 %v1446_v50, %v1295_v17  ;;  %v1427_v1 = vmax.f32 %v1426_v55, %v1280_v53 }
 0x181   :  { %v1281_v32 = vmul.f32 %v6309_v20, %v9115_v18  ;;  %v1250_v48 = vmul.f32 %v9131_v31, %v9125_v42  ;;  %v1386_v14 = vmax.f32 %v1385_v59, %v1249_v12  ;;  %v1219_v8 = vmul.f32 %v9133_v15, %v9132_v62  ;;  %v9135_v20 = vld [vmem:[#allocation85_spill] sm:$0xff]  ;;  %v9136_v59 = vld [vmem:[#allocation84_spill] sm:$0xff]  ;;  %v1004_v15 = vpop.permute.xlu0 %1003 }
 0x182   :  { %v1312_v35 = vmul.f32 %v9134_v9, %v9106_v60  ;;  %2723 = vbcast.lane.b32.xlu1 %v6611_v36, 264  ;;  %2719 = vbcast.lane.b32.xlu0 %v6611_v36, 256  ;;  %v1345_v17 = vmax.f32 %v1344_v41, %v1218_v0  ;;  %v1468_v50 = vmax.f32 %v1467_v3, %v1311_v11  ;;  %v9137_v9 = vld [vmem:[#allocation88_spill] sm:$0xff] }
 0x183   :  { %v1407_v55 = vmax.f32 %v1406_v6, %v1265_v63  ;;  %v1266_v53 = vmul.f32 %v9135_v20, %v9125_v42  ;;  %v1366_v61 = vmax.f32 %v1365_v56, %v1234_v23  ;;  %v1489_v31 = vmax.f32 %v1488_v49, %v1327_v52  ;;  %v9139_v56 = vld [vmem:[#allocation15_spill] sm:$0xff]  ;;  %v9140_v49 = vld [vmem:[#allocation89_spill] sm:$0xff]  ;;  %v9146_v20 = vld [vmem:[#allocation94_spill] sm:$0xff] }
 0x184   :  { %v1448_v5 = vmax.f32 %v1447_v51, %v1296_v4  ;;  %v1235_v12 = vmul.f32 %v9136_v59, %v9132_v62  ;;  %v1428_v21 = vmax.f32 %v1427_v1, %v1281_v32  ;;  %v1387_v19 = vmax.f32 %v1386_v14, %v1250_v48  ;;  %v9141_v52 = vld [vmem:[#allocation39_spill] sm:$0xff]  ;;  %v1134_v51 = vpop.permute.xlu1 %1133  ;;  %v9143_v32 = vld [vmem:[#allocation90_spill] sm:$0xff]  ;;  %v9144_v14 = vld [vmem:[#allocation93_spill] sm:$0xff] }
 0x185   :  { %v1328_v13 = vmul.f32 %v9137_v9, %v9106_v60  ;;  %v1297_v41 = vmul.f32 %v9138_v24, %v9115_v18  ;;  %v1346_v3 = vmax.f32 %v1345_v17, %v1219_v8  ;;  %v1469_v6 = vmax.f32 %v1468_v50, %v1312_v35  ;;  %v9142_v4 = vld [vmem:[#allocation91_spill] sm:$0xff]  ;;  %v9145_v35 = vld [vmem:[#allocation92_spill] sm:$0xff] }
 0x186   :  { %2660 = vbcast.lane.b32.xlu1 %v6553_v30, 272  ;;  %2530 = vbcast.lane.b32.xlu0 %v6487_v44, 280  ;;  %v6649_v0 = vrot.slane %v6436_v54, %v9139_v56  ;;  %v1408_v11 = vmax.f32 %v1407_v55, %v1266_v53  ;;  %v1282_v63 = vmul.f32 %v6346_v28, %v9125_v42 }
 0x187   :  { %v1251_v23 = vmul.f32 %v9140_v49, %v9132_v62  ;;  %v1220_v24 = vmul.f32 %v9142_v4, %v9141_v52  ;;  %v1367_v1 = vmax.f32 %v1366_v61, %v1235_v12  ;;  %v1313_v48 = vmul.f32 %v9143_v32, %v9115_v18  ;;  %v9147_v12 = vld [vmem:[#allocation38_spill] sm:$0xff]  ;;  %v1071_v49 = vpop.permute.xlu0 %1070 }
 0x188   :  { %v1267_v8 = vmul.f32 %v9144_v14, %v9132_v62  ;;  %v1236_v17 = vmul.f32 %v9145_v35, %v9141_v52  ;;  %v1490_v50 = vmax.f32 %v1489_v31, %v1328_v13  ;;  %v1449_v55 = vmax.f32 %v1448_v5, %v1297_v41 }
 0x189   :  { %v1329_v28 = vmul.f32 %v6391_v25, %v9115_v18  ;;  %v1298_v53 = vmul.f32 %v9146_v20, %v9125_v42  ;;  %v1283_v61 = vmul.f32 %v6429_v46, %v9132_v62  ;;  %v1252_v59 = vmul.f32 %v6411_v34, %v9141_v52 }
 0x18a   :  { %v1221_v9 = vmul.f32 %v6466_v37, %v9147_v12  ;;  %2790 = vbcast.lane.b32.xlu1 %v6649_v0, 264  ;;  %2786 = vbcast.lane.b32.xlu0 %v6649_v0, 256  ;;  %v1429_v5 = vmax.f32 %v1428_v21, %v1282_v63  ;;  %v1388_v13 = vmax.f32 %v1387_v19, %v1251_v23  ;;  %v1201_v21 = vpop.permute.xlu1 %1200 }
 0x18b   :  { %v1347_v25 = vmax.f32 %v1346_v3, %v1220_v24  ;;  %v1314_v31 = vmul.f32 %v6444_v45, %v9125_v42  ;;  %v1470_v41 = vmax.f32 %v1469_v6, %v1313_v48  ;;  %v1409_v4 = vmax.f32 %v1408_v11, %v1267_v8 }
 0x18c   :  { %v1368_v46 = vmax.f32 %v1367_v1, %v1236_v17  ;;  %v1268_v34 = vmul.f32 %v6503_v38, %v9141_v52  ;;  %v1491_v32 = vmax.f32 %v1490_v50, %v1329_v28  ;;  %v1450_v14 = vmax.f32 %v1449_v55, %v1298_v53  ;;  %v1138_v1 = vpop.permute.xlu0 %1137 }
 0x18d   :  { %v1237_v37 = vmul.f32 %v6481_v57, %v9147_v12  ;;  %v1299_v35 = vmul.f32 %v6513_v7, %v9132_v62  ;;  %v1430_v19 = vmax.f32 %v1429_v5, %v1283_v61  ;;  %v1389_v3 = vmax.f32 %v1388_v13, %v1252_v59 }
 0x18e   :  { %v1348_v63 = vmax.f32 %v1347_v25, %v1221_v9  ;;  %2467 = vbcast.lane.b32.xlu1 %v6462_v39, 288  ;;  %2400 = vbcast.lane.b32.xlu0 %v6448_v58, 288  ;;  %v1471_v45 = vmax.f32 %v1470_v41, %v1314_v31  ;;  %v1284_v38 = vmul.f32 %v6563_v2, %v9141_v52  ;;  %v1205_v28 = vpop.permute.xlu1 %1204 }
 0x18f   :  { %v1253_v6 = vmul.f32 %v6547_v26, %v9147_v12  ;;  %v1315_v57 = vmul.f32 %v6583_v22, %v9132_v62  ;;  %v1410_v11 = vmax.f32 %v1409_v4, %v1268_v34  ;;  %v1330_v7 = vmul.f32 %v6533_v40, %v9125_v42  ;;  %v9148_v40 = vld [vmem:[#allocation16_spill] sm:$0xff] }
 0x190   :  { %v1269_v23 = vmul.f32 %v6595_v43, %v9147_v12  ;;  %v1300_v24 = vmul.f32 %v6605_v16, %v9141_v52  ;;  %v1369_v48 = vmax.f32 %v1368_v46, %v1237_v37  ;;  %v1451_v8 = vmax.f32 %v1450_v14, %v1299_v35 }
 0x191   :  { %v1316_v2 = vmul.f32 %v1134_v51, %v9141_v52  ;;  %v1285_v26 = vmul.f32 %v1004_v15, %v9147_v12  ;;  %v1331_v22 = vmul.f32 %v6629_v10, %v9132_v62  ;;  %v1301_v17 = vmul.f32 %v1071_v49, %v9147_v12 }
 0x192   :  { %2727 = vbcast.lane.b32.xlu1 %v6611_v36, 272  ;;  %2597 = vbcast.lane.b32.xlu0 %v6525_v29, 280  ;;  %v6706_v43 = vrot.slane %v6436_v54, %v9148_v40  ;;  %v1431_v16 = vmax.f32 %v1430_v19, %v1284_v38  ;;  %v1390_v50 = vmax.f32 %v1389_v3, %v1253_v6  ;;  %v1370_v9 = vrot.slane %v1369_v48, 4 }
 0x193   :  { %v1472_v55 = vmax.f32 %v1471_v45, %v1315_v57  ;;  %v1317_v51 = vmul.f32 %v1138_v1, %v9147_v12  ;;  %v1492_v15 = vmax.f32 %v1491_v32, %v1330_v7  ;;  %v1411_v20 = vmax.f32 %v1410_v11, %v1269_v23 }
 0x194   :  { %v1452_v53 = vmax.f32 %v1451_v8, %v1300_v24  ;;  %v1332_v10 = vmul.f32 %v1201_v21, %v9141_v52  ;;  %v1432_v59 = vmax.f32 %v1431_v16, %v1285_v26  ;;  %v1333_v13 = vmul.f32 %v1205_v28, %v9147_v12 }
 0x195   :  { %v1473_v61 = vmax.f32 %v1472_v55, %v1316_v2  ;;  %v1493_v49 = vmax.f32 %v1492_v15, %v1331_v22  ;;  %v1391_v54 = vrot.slane %v1390_v50, 4  ;;  %v1349_v31 = vrot.slane %v1348_v63, 4 }
 0x196   :  { %v1453_v5 = vmax.f32 %v1452_v53, %v1301_v17  ;;  %2857 = vbcast.lane.b32.xlu1 %v6706_v43, 264  ;;  %2853 = vbcast.lane.b32.xlu0 %v6706_v43, 256  ;;  %v1412_v41 = vrot.slane %v1411_v20, 4  ;;  %v1433_v46 = vrot.slane %v1432_v59, 4  ;;  %v1371_v34 = vmax.f32 %v1369_v48, %v1370_v9 }
 0x197   :  { %v1474_v25 = vmax.f32 %v1473_v61, %v1317_v51  ;;  %v1494_v4 = vmax.f32 %v1493_v49, %v1332_v10  ;;  %v1392_v37 = vmax.f32 %v1390_v50, %v1391_v54  ;;  %v1350_v21 = vmax.f32 %v1348_v63, %v1349_v31 }
 0x198   :  { %v1454_v32 = vrot.slane %v1453_v5, 4  ;;  %v1413_v19 = vmax.f32 %v1411_v20, %v1412_v41  ;;  %v1434_v3 = vmax.f32 %v1432_v59, %v1433_v46  ;;  %v1372_v45 = vrot.slane %v1371_v34, 2 }
 0x199   :  { %v1495_v14 = vmax.f32 %v1494_v4, %v1333_v13  ;;  %v1475_v35 = vrot.slane %v1474_v25, 4  ;;  %v1393_v57 = vrot.slane %v1392_v37, 2  ;;  %v1351_v7 = vrot.slane %v1350_v21, 2 }
 0x19a   :  { %2664 = vbcast.lane.b32.xlu1 %v6553_v30, 280  ;;  %2534 = vbcast.lane.b32.xlu0 %v6487_v44, 288  ;;  %v1455_v38 = vmax.f32 %v1453_v5, %v1454_v32  ;;  %v1414_v23 = vrot.slane %v1413_v19, 2  ;;  %v1435_v24 = vrot.slane %v1434_v3, 2  ;;  %v1373_v1 = vmax.f32 %v1371_v34, %v1372_v45 }
 0x19b   :  { %v1496_v6 = vrot.slane %v1495_v14, 4  ;;  %v1476_v11 = vmax.f32 %v1474_v25, %v1475_v35  ;;  %v1394_v63 = vmax.f32 %v1392_v37, %v1393_v57  ;;  %v1352_v26 = vmax.f32 %v1350_v21, %v1351_v7  ;;  %v9149_v7 = vld [vmem:[#allocation87_spill] sm:$0xff] }
 0x19c   :  { %v1456_v48 = vrot.slane %v1455_v38, 2  ;;  %v1415_v22 = vmax.f32 %v1413_v19, %v1414_v23  ;;  %v1436_v17 = vmax.f32 %v1434_v3, %v1435_v24  ;;  %v1374_v16 = vrot.slane %v1373_v1, 1 }
 0x19d   :  { %v1497_v8 = vmax.f32 %v1495_v14, %v1496_v6  ;;  %v1477_v2 = vrot.slane %v1476_v11, 2  ;;  %v1395_v28 = vrot.slane %v1394_v63, 1  ;;  %v1353_v15 = vrot.slane %v1352_v26, 1 }
 0x19e   :  { %2404 = vbcast.lane.b32.xlu1 %v6448_v58, 296  ;;  %2794 = vbcast.lane.b32.xlu0 %v6649_v0, 272  ;;  %v1457_v50 = vmax.f32 %v1455_v38, %v1456_v48  ;;  %v1416_v20 = vrot.slane %v1415_v22, 1  ;;  %v1437_v53 = vrot.slane %v1436_v17, 1  ;;  %v1375_v10 = vmax.f32 %v1373_v1, %v1374_v16  ;;  %v5571_v16 = vld [vmem:[%s8875_s4 + $0x8] sm:$0xff]  }
 0x19f   :  { %v1498_v55 = vrot.slane %v1497_v8, 2  ;;  %v1478_v51 = vmax.f32 %v1476_v11, %v1477_v2  ;;  %v1396_v9 = vmax.f32 %v1394_v63, %v1395_v28  ;;  %v1354_v5 = vmax.f32 %v1352_v26, %v1353_v15  ;;  %v5573_v28 = vld [vmem:[%s8875_s4 + $0x10] sm:$0xff]  }
 0x1a0   :  { %v1458_v61 = vrot.slane %v1457_v50, 1  ;;  %v1417_v13 = vmax.f32 %v1415_v22, %v1416_v20  ;;  %v1438_v54 = vmax.f32 %v1436_v17, %v1437_v53  ;;  %v1503_v25 = vmax.f32 %v1375_v10, 0.0  ;;  %v1908_v15 = vld [vmem:[#allocation3 + $0x70] sm:$0xff]  ;;  %v5575_v20 = vld [vmem:[%s8875_s4 + $0x18] sm:$0xff]   ;;  %v1907_v10 = vld [vmem:[#allocation3 + $0x68] sm:$0xff] }
 0x1a1   :  { %v1499_v59 = vmax.f32 %v1497_v8, %v1498_v55  ;;  %v1479_v49 = vrot.slane %v1478_v51, 1  ;;  %v1504_v4 = vmax.f32 %v1396_v9, 0.0  ;;  %v1502_v34 = vmax.f32 %v1354_v5, 0.0  ;;  %v1909_v55 = vld [vmem:[#allocation3 + $0x78] sm:$0xff]  ;;  %v1906_v9 = vld [vmem:[#allocation3 + $0x60] sm:$0xff]  ;;  %v5580_v5 = vld [vmem:[%s8876_s5 + $0x28] sm:$0xff]  }
 0x1a2   :  { %2601 = vbcast.lane.b32.xlu1 %v6525_v29, 288  ;;  %2471 = vbcast.lane.b32.xlu0 %v6462_v39, 296  ;;  %v1459_v31 = vmax.f32 %v1457_v50, %v1458_v61  ;;  %v1505_v32 = vmax.f32 %v1417_v13, 0.0  ;;  %v1506_v14 = vmax.f32 %v1438_v54, 0.0  ;;  %v8930_v23 = vmax.f32 %v9149_v7, 0.0  ;;  %v5572_v50 = vld [vmem:[%s8876_s5 + $0x8] sm:$0xff]  }
 0x1a3   :  { %v1500_v41 = vrot.slane %v1499_v59, 1  ;;  %v1480_v46 = vmax.f32 %v1478_v51, %v1479_v49  ;;  %v1519_v37 = vsel %vm1518_vm3, %v1503_v25, %v1502_v34  ;;  %v5574_v51 = vld [vmem:[%s8876_s5 + $0x10] sm:$0xff]   ;;  %v5576_v53 = vld [vmem:[%s8876_s5 + $0x18] sm:$0xff]   ;;  %v5577_v61 = vld [vmem:[%s8875_s4 + $0x20] sm:$0xff]  }
 0x1a4   :  { %v1507_v35 = vmax.f32 %v1459_v31, 0.0  ;;  %v1521_v3 = vsel %vm1520_vm4, %v1504_v4, %v1519_v37  ;;  %v5579_v49 = vld [vmem:[%s8875_s4 + $0x28] sm:$0xff]   ;;  %v1905_v13 = vld [vmem:[#allocation3 + $0x58] sm:$0xff]  ;;  %v5581_v54 = vld [vmem:[%s8875_s4 + $0x30] sm:$0xff]  }
 0x1a5   :  { %v1501_v21 = vmax.f32 %v1499_v59, %v1500_v41  ;;  %v1508_v19 = vmax.f32 %v1480_v46, 0.0  ;;  %v1523_v45 = vsel %vm1522_vm5, %v1505_v32, %v1521_v3  ;;  %v5578_v59 = vld [vmem:[%s8876_s5 + $0x20] sm:$0xff]   ;;  %v5582_v25 = vld [vmem:[%s8876_s5 + $0x30] sm:$0xff]   ;;  %v5583_v41 = vld [vmem:[%s8875_s4 + $0x38] sm:$0xff]  }
 0x1a6   :  { %2861 = vbcast.lane.b32.xlu1 %v6706_v43, 272  ;;  %2731 = vbcast.lane.b32.xlu0 %v6611_v36, 280  ;;  %v1525_v38 = vsel %vm1524_vm6, %v1506_v14, %v1523_v45  ;;  %v1904_v31 = vld [vmem:[#allocation3 + $0x50] sm:$0xff]  ;;  %v5584_v4 = vld [vmem:[%s8876_s5 + $0x38] sm:$0xff]   ;;  %v1903_v46 = vld [vmem:[#allocation3 + $0x48] sm:$0xff] }
 0x1a7   :  { %v1509_v6 = vmax.f32 %v1501_v21, 0.0  ;;  %v1527_v57 = vsel %vm1526_vm7, %v1507_v35, %v1525_v38  ;;  %v1902_v34 = vld [vmem:[#allocation3 + $0x40] sm:$0xff]  ;;  %v1901_v32 = vld [vmem:[#allocation3 + $0x38] sm:$0xff]  ;;  %v1900_v14 = vld [vmem:[#allocation3 + $0x30] sm:$0xff] }
 0x1a8   :  { %v1529_v11 = vsel %vm1528_vm8, %v1508_v19, %v1527_v57  ;;  %v1899_v37 = vld [vmem:[#allocation3 + $0x28] sm:$0xff]  ;;  %v1898_v35 = vld [vmem:[#allocation3 + $0x20] sm:$0xff]  ;;  %v1897_v45 = vld [vmem:[#allocation3 + $0x18] sm:$0xff] }
 0x1a9   :  { %v1531_v1 = vsel %vm1530_vm9, %v1509_v6, %v1529_v11  ;;  %v1896_v6 = vld [vmem:[#allocation3 + $0x10] sm:$0xff]  ;;  %v1895_v11 = vld [vmem:[#allocation3 + $0x8] sm:$0xff] }
 0x1aa   :  { %2668 = vbcast.lane.b32.xlu1 %v6553_v30, 288  ;;  %2538 = vbcast.lane.b32.xlu0 %v6487_v44, 296 }
 0x1ae   :  { %2408 = vbcast.lane.b32.xlu1 %v6448_v58, 304  ;;  %2798 = vbcast.lane.b32.xlu0 %v6649_v0, 280 }
 0x1b2   :  { %2605 = vbcast.lane.b32.xlu1 %v6525_v29, 296  ;;  %2475 = vbcast.lane.b32.xlu0 %v6462_v39, 304 }
 0x1b6   :  { %2865 = vbcast.lane.b32.xlu1 %v6706_v43, 280  ;;  %2735 = vbcast.lane.b32.xlu0 %v6611_v36, 288 }
 0x1ba   :  { %2672 = vbcast.lane.b32.xlu1 %v6553_v30, 296  ;;  %2542 = vbcast.lane.b32.xlu0 %v6487_v44, 304 }
 0x1be   :  { %2412 = vbcast.lane.b32.xlu1 %v6448_v58, 312  ;;  %2802 = vbcast.lane.b32.xlu0 %v6649_v0, 288 }
 0x1c2   :  { %2609 = vbcast.lane.b32.xlu1 %v6525_v29, 304  ;;  %2479 = vbcast.lane.b32.xlu0 %v6462_v39, 312 }
 0x1c6   :  { %2869 = vbcast.lane.b32.xlu1 %v6706_v43, 288  ;;  %2739 = vbcast.lane.b32.xlu0 %v6611_v36, 296 }
 0x1ca   :  { %2676 = vbcast.lane.b32.xlu1 %v6553_v30, 304  ;;  %2546 = vbcast.lane.b32.xlu0 %v6487_v44, 312 }
 0x1ce   :  { %2416 = vbcast.lane.b32.xlu1 %v6448_v58, 320  ;;  %2806 = vbcast.lane.b32.xlu0 %v6649_v0, 296 }
 0x1d2   :  { %2613 = vbcast.lane.b32.xlu1 %v6525_v29, 312  ;;  %2483 = vbcast.lane.b32.xlu0 %v6462_v39, 320 }
 0x1d3   :  { %v630_v24 = vpop.f32.mrf.mxu1 }
 0x1d4   :  { %v1533_v48 = vmul.f32 %v1531_v1, %v630_v24  ;;  %v6836_v21 = vpop.permute.xlu1 %2388  ;;  %v6840_v19 = vpop.permute.xlu0 %2384  ;;  %v1894_v24 = vld [vmem:[#allocation3] sm:$0xff] }
 0x1d5   :  { %v5254_v8 = vpop.f32.mrf.mxu1 }
 0x1d6   :  { %v6741_v63 = vadd.f32 %v1533_v48, %v8930_v23  ;;  %2873 = vbcast.lane.b32.xlu1 %v6706_v43, 296  ;;  %2743 = vbcast.lane.b32.xlu0 %v6611_v36, 304  ;;  %v9151_v8 = vmov 0.0  }
 0x1d7   :  { %v633_v2 = vpop.f32.mrf.mxu1 }
 0x1d8   :  { %9150 = vst [vmem:[#allocation18_spill] sm:$0xff] %v6741_v63  ;;  %v1535_v26 = vpack.c.bf16 %v6741_v63, %v6741_v63  ;;  %v6842_v3 = vpop.permute.xlu1 %2455  ;;  %v6846_v38 = vpop.permute.xlu0 %2451 }
 0x1d9   :  { %v5255_v22 = vpop.f32.mrf.mxu1 }
 0x1da   :  { %5558 = vmatprep.subr.msk.bf16.mxu0 %vm1616_vm10, %v1535_v26  ;;  %5559 = vmatprep.subr.msk.bf16.mxu1 %vm1616_vm10, %v1535_v26  ;;  %v1618_v17 = vsel %vm1616_vm10, %v1535_v26, 0 }
 0x1db   :  { %5257 = vmatpush3.bf16.msra.mxu0 %v1618_v17  ;;  %5275 = vmatpush3.bf16.msra.mxu1 %v1618_v17 }
 0x1dc   :  { %5292 = vmatprep.subr.mxu0 %v1909_v55  ;;  %5348 = vmatprep.subr.mxu1 %v1909_v55  ;;  %v6848_v57 = vpop.permute.xlu1 %2522  ;;  %v6850_v1 = vpop.permute.xlu0 %2518 }
 0x1dd   :  { %2680 = vbcast.lane.b32.xlu1 %v6553_v30, 312  ;;  %2550 = vbcast.lane.b32.xlu0 %v6487_v44, 320 }
 0x1de   :  { %5259 = vmatmul.mubr.msk.bf16.vlgmr.msra.gmra.mxu0 %vm152_vm0, %v5571_v16  ;;  %5277 = vmatmul.mubr.msk.bf16.vlgmr.msra.gmra.mxu1 %vm152_vm0, %v5572_v50 }
 0x1df   :  { %5262 = vmatprep.mubr.msk.bf16.mxu0 %vm152_vm0, %v5573_v28  ;;  %5280 = vmatprep.mubr.msk.bf16.mxu1 %vm152_vm0, %v5574_v51 }
 0x1e0   :  { %5293 = vmatpush3.msra.mxu0 %v1909_v55  ;;  %5349 = vmatpush3.msra.mxu1 %v1909_v55  ;;  %v6854_v48 = vpop.permute.xlu1 %2459  ;;  %v6859_v2 = vpop.permute.xlu0 %2392 }
 0x1e1   :  { %5294 = vmatprep.subr.mxu0 %v1908_v15  ;;  %5350 = vmatprep.subr.mxu1 %v1908_v15 }
 0x1e2   :  { %5295 = vmatpush3.msra.mxu0 %v1908_v15  ;;  %5351 = vmatpush3.msra.mxu1 %v1908_v15 }
 0x1e3   :  { %5296 = vmatprep.subr.mxu0 %v1907_v10  ;;  %5352 = vmatprep.subr.mxu1 %v1907_v10 }
 0x1e4   :  { %5297 = vmatpush3.msra.mxu0 %v1907_v10  ;;  %5353 = vmatpush3.msra.mxu1 %v1907_v10  ;;  %v6861_v26 = vpop.permute.xlu1 %2589  ;;  %v6865_v22 = vpop.permute.xlu0 %2585 }
 0x1e5   :  { %5298 = vmatprep.subr.mxu0 %v1906_v9  ;;  %5354 = vmatprep.subr.mxu1 %v1906_v9 }
 0x1e6   :  { %5263 = vmatmul.mubr.msk.bf16.gmra.mxu0 %vm152_vm0, %v5575_v20  ;;  %5281 = vmatmul.mubr.msk.bf16.gmra.mxu1 %vm152_vm0, %v5576_v53 }
 0x1e7   :  { %5266 = vmatprep.mubr.msk.bf16.mxu0 %vm152_vm0, %v5577_v61  ;;  %5284 = vmatprep.mubr.msk.bf16.mxu1 %vm152_vm0, %v5578_v59 }
 0x1e8   :  { %5299 = vmatpush3.msra.mxu0 %v1906_v9  ;;  %5355 = vmatpush3.msra.mxu1 %v1906_v9  ;;  %v6869_v17 = vpop.permute.xlu1 %2652  ;;  %v6873_v16 = vpop.permute.xlu0 %2526 }
 0x1e9   :  { %5300 = vmatprep.subr.mxu0 %v1905_v13  ;;  %5356 = vmatprep.subr.mxu1 %v1905_v13 }
 0x1ea   :  { %5301 = vmatpush3.msra.mxu0 %v1905_v13  ;;  %5357 = vmatpush3.msra.mxu1 %v1905_v13  ;;  %v6919_v13 = vpop.f32.mrf.mxu0 }
 0x1eb   :  { %5302 = vmatprep.subr.mxu0 %v1904_v31  ;;  %5358 = vmatprep.subr.mxu1 %v1904_v31  ;;  %9157 = vst [vmem:[#allocation29_spill] sm:$0xff] %v6919_v13 }
 0x1ec   :  { %5303 = vmatpush3.msra.mxu0 %v1904_v31  ;;  %5359 = vmatpush3.msra.mxu1 %v1904_v31  ;;  %v6875_v50 = vpop.permute.xlu1 %2396  ;;  %v6879_v55 = vpop.permute.xlu0 %2656 }
 0x1ed   :  { %5304 = vmatprep.subr.mxu0 %v1903_v46  ;;  %5360 = vmatprep.subr.mxu1 %v1903_v46 }
 0x1ee   :  { %5267 = vmatmul.mubr.msk.bf16.gmra.mxu0 %vm152_vm0, %v5579_v49  ;;  %5285 = vmatmul.mubr.msk.bf16.gmra.mxu1 %vm152_vm0, %v5580_v5 }
 0x1ef   :  { %5270 = vmatprep.mubr.msk.bf16.mxu0 %vm152_vm0, %v5581_v54  ;;  %5288 = vmatprep.mubr.msk.bf16.mxu1 %vm152_vm0, %v5582_v25  ;;  %v6925_v25 = vpop.f32.mrf.mxu0 }
 0x1f0   :  { %5305 = vmatpush3.msra.mxu0 %v1903_v46  ;;  %5361 = vmatpush3.msra.mxu1 %v1903_v46  ;;  %v6883_v28 = vpop.permute.xlu1 %2593  ;;  %v6887_v51 = vpop.permute.xlu0 %2463  ;;  %9159 = vst [vmem:[#allocation32_spill] sm:$0xff] %v6925_v25 }
 0x1f1   :  { %2420 = vbcast.lane.b32.xlu1 %v6448_v58, 328  ;;  %2810 = vbcast.lane.b32.xlu0 %v6649_v0, 304 }
 0x1f2   :  { %5306 = vmatprep.subr.mxu0 %v1902_v34  ;;  %5362 = vmatprep.subr.mxu1 %v1902_v34 }
 0x1f3   :  { %5307 = vmatpush3.msra.mxu0 %v1902_v34  ;;  %5363 = vmatpush3.msra.mxu1 %v1902_v34 }
 0x1f4   :  { %5308 = vmatprep.subr.mxu0 %v1901_v32  ;;  %5364 = vmatprep.subr.mxu1 %v1901_v32  ;;  %v6889_v15 = vpop.permute.xlu1 %2723  ;;  %v6893_v20 = vpop.permute.xlu0 %2719 }
 0x1f5   :  { %5309 = vmatpush3.msra.mxu0 %v1901_v32  ;;  %5365 = vmatpush3.msra.mxu1 %v1901_v32 }
 0x1f6   :  { %5271 = vmatmul.mubr.msk.bf16.gmra.mxu0 %vm152_vm0, %v5583_v41  ;;  %5289 = vmatmul.mubr.msk.bf16.gmra.mxu1 %vm152_vm0, %v5584_v4  ;;  %v6931_v41 = vpop.f32.mrf.mxu0 }
 0x1f7   :  { %2617 = vbcast.lane.b32.xlu1 %v6525_v29, 320  ;;  %2487 = vbcast.lane.b32.xlu0 %v6462_v39, 328  ;;  %9161 = vst [vmem:[#allocation22_spill] sm:$0xff] %v6931_v41 }
 0x1f8   :  { %5310 = vmatprep.subr.mxu0 %v1900_v14  ;;  %5366 = vmatprep.subr.mxu1 %v1900_v14  ;;  %v6897_v53 = vpop.permute.xlu1 %2660  ;;  %v6901_v10 = vpop.permute.xlu0 %2530 }
 0x1f9   :  { %5311 = vmatpush3.msra.mxu0 %v1900_v14  ;;  %5367 = vmatpush3.msra.mxu1 %v1900_v14  ;;  %v6939_v46 = vpop.f32.mrf.mxu0 }
 0x1fa   :  { %5312 = vmatprep.subr.mxu0 %v1899_v37  ;;  %5368 = vmatprep.subr.mxu1 %v1899_v37  ;;  %9164 = vst [vmem:[#allocation33_spill] sm:$0xff] %v6939_v46 }
 0x1fb   :  { %5313 = vmatpush3.msra.mxu0 %v1899_v37  ;;  %5369 = vmatpush3.msra.mxu1 %v1899_v37 }
 0x1fc   :  { %2877 = vbcast.lane.b32.xlu1 %v6706_v43, 304  ;;  %2747 = vbcast.lane.b32.xlu0 %v6611_v36, 312  ;;  %v6903_v61 = vpop.permute.xlu1 %2790  ;;  %v6907_v59 = vpop.permute.xlu0 %2786 }
 0x1fd   :  { %5314 = vmatprep.subr.mxu0 %v1898_v35  ;;  %5370 = vmatprep.subr.mxu1 %v1898_v35  ;;  %9152 = vst [vmem:[#allocation23_spill] sm:$0xff] %v6903_v61  ;;  %9153 = vst [vmem:[#allocation26_spill] sm:$0xff] %v6907_v59 }
 0x1fe   :  { %5315 = vmatpush3.msra.mxu0 %v1898_v35  ;;  %5371 = vmatpush3.msra.mxu1 %v1898_v35 }
 0x1ff   :  { %5316 = vmatprep.subr.mxu0 %v1897_v45  ;;  %5372 = vmatprep.subr.mxu1 %v1897_v45 }
 0x200   :  { %2684 = vbcast.lane.b32.xlu1 %v6553_v30, 320  ;;  %2554 = vbcast.lane.b32.xlu0 %v6487_v44, 328  ;;  %v6911_v9 = vpop.permute.xlu1 %2467  ;;  %v6915_v49 = vpop.permute.xlu0 %2400 }
 0x201   :  { %5317 = vmatpush3.msra.mxu0 %v1897_v45  ;;  %5373 = vmatpush3.msra.mxu1 %v1897_v45  ;;  %9154 = vst [vmem:[#allocation17_spill] sm:$0xff] %v6911_v9  ;;  %9155 = vst [vmem:[#allocation20_spill] sm:$0xff] %v6915_v49 }
 0x202   :  { %5318 = vmatprep.subr.mxu0 %v1896_v6  ;;  %5374 = vmatprep.subr.mxu1 %v1896_v6 }
 0x203   :  { %5319 = vmatpush3.msra.mxu0 %v1896_v6  ;;  %5375 = vmatpush3.msra.mxu1 %v1896_v6 }
 0x204   :  { %2424 = vbcast.lane.b32.xlu1 %v6448_v58, 336  ;;  %2814 = vbcast.lane.b32.xlu0 %v6649_v0, 312  ;;  %v6917_v5 = vpop.permute.xlu1 %2727  ;;  %v6923_v54 = vpop.permute.xlu0 %2597 }
 0x205   :  { %5320 = vmatprep.subr.mxu0 %v1895_v11  ;;  %5376 = vmatprep.subr.mxu1 %v1895_v11  ;;  %9156 = vst [vmem:[#allocation19_spill] sm:$0xff] %v6917_v5  ;;  %9158 = vst [vmem:[#allocation25_spill] sm:$0xff] %v6923_v54  ;;  %v8934_v5 = vmax.f32 %v6925_v25, 0.0 }
 0x206   :  { %5321 = vmatpush3.msra.mxu0 %v1895_v11  ;;  %5377 = vmatpush3.msra.mxu1 %v1895_v11 }
 0x207   :  { %5322 = vmatprep.subr.mxu0 %v1894_v24  ;;  %5378 = vmatprep.subr.mxu1 %v1894_v24 }
 0x208   :  { %2621 = vbcast.lane.b32.xlu1 %v6525_v29, 328  ;;  %2491 = vbcast.lane.b32.xlu0 %v6462_v39, 336  ;;  %v6929_v31 = vpop.permute.xlu1 %2857  ;;  %v6935_v4 = vpop.permute.xlu0 %2853 }
 0x209   :  { %5323 = vmatpush3.msra.mxu0 %v1894_v24  ;;  %5379 = vmatpush3.msra.mxu1 %v1894_v24  ;;  %9160 = vst [vmem:[#allocation21_spill] sm:$0xff] %v6929_v31  ;;  %9162 = vst [vmem:[#allocation27_spill] sm:$0xff] %v6935_v4 }
 0x20a   :  { %5404 = vmatprep.subr.bf16.mxu0 %v9151_v8 }
 0x20c   :  { %2881 = vbcast.lane.b32.xlu1 %v6706_v43, 312  ;;  %2751 = vbcast.lane.b32.xlu0 %v6611_v36, 320  ;;  %v6943_v34 = vpop.permute.xlu0 %2534 }
 0x20d   :  { %9165 = vst [vmem:[#allocation35_spill] sm:$0xff] %v6943_v34 }
 0x210   :  { %2688 = vbcast.lane.b32.xlu1 %v6553_v30, 328  ;;  %2558 = vbcast.lane.b32.xlu0 %v6487_v44, 336  ;;  %v6955_v37 = vpop.permute.xlu0 %2794 }
 0x211   :  { %9169 = vst [vmem:[#allocation24_spill] sm:$0xff] %v6955_v37 }
 0x214   :  { %2428 = vbcast.lane.b32.xlu1 %v6448_v58, 344  ;;  %2818 = vbcast.lane.b32.xlu0 %v6649_v0, 320 }
 0x218   :  { %2625 = vbcast.lane.b32.xlu1 %v6525_v29, 336  ;;  %2495 = vbcast.lane.b32.xlu0 %v6462_v39, 344 }
 0x21c   :  { %2885 = vbcast.lane.b32.xlu1 %v6706_v43, 320  ;;  %2755 = vbcast.lane.b32.xlu0 %v6611_v36, 328 }
 0x220   :  { %2692 = vbcast.lane.b32.xlu1 %v6553_v30, 336  ;;  %2562 = vbcast.lane.b32.xlu0 %v6487_v44, 344 }
 0x224   :  { %2432 = vbcast.lane.b32.xlu1 %v6448_v58, 352  ;;  %2822 = vbcast.lane.b32.xlu0 %v6649_v0, 328 }
 0x228   :  { %2629 = vbcast.lane.b32.xlu1 %v6525_v29, 344  ;;  %2499 = vbcast.lane.b32.xlu0 %v6462_v39, 352 }
 0x22c   :  { %2889 = vbcast.lane.b32.xlu1 %v6706_v43, 328  ;;  %2759 = vbcast.lane.b32.xlu0 %v6611_v36, 336 }
 0x230   :  { %2696 = vbcast.lane.b32.xlu1 %v6553_v30, 344  ;;  %2566 = vbcast.lane.b32.xlu0 %v6487_v44, 352 }
 0x234   :  { %2436 = vbcast.lane.b32.xlu1 %v6448_v58, 360  ;;  %2826 = vbcast.lane.b32.xlu0 %v6649_v0, 336 }
 0x238   :  { %2633 = vbcast.lane.b32.xlu1 %v6525_v29, 352  ;;  %2503 = vbcast.lane.b32.xlu0 %v6462_v39, 360 }
 0x23c   :  { %2893 = vbcast.lane.b32.xlu1 %v6706_v43, 336  ;;  %2763 = vbcast.lane.b32.xlu0 %v6611_v36, 344 }
 0x240   :  { %2700 = vbcast.lane.b32.xlu1 %v6553_v30, 352  ;;  %2570 = vbcast.lane.b32.xlu0 %v6487_v44, 360 }
 0x244   :  { %2440 = vbcast.lane.b32.xlu1 %v6448_v58, 368  ;;  %2830 = vbcast.lane.b32.xlu0 %v6649_v0, 344 }
 0x248   :  { %2637 = vbcast.lane.b32.xlu1 %v6525_v29, 360  ;;  %2507 = vbcast.lane.b32.xlu0 %v6462_v39, 368 }
 0x24c   :  { %2897 = vbcast.lane.b32.xlu1 %v6706_v43, 344  ;;  %2767 = vbcast.lane.b32.xlu0 %v6611_v36, 352 }
 0x250   :  { %2704 = vbcast.lane.b32.xlu1 %v6553_v30, 360  ;;  %2574 = vbcast.lane.b32.xlu0 %v6487_v44, 368 }
 0x254   :  { %2444 = vbcast.lane.b32.xlu1 %v6448_v58, 376  ;;  %2834 = vbcast.lane.b32.xlu0 %v6649_v0, 352  ;;  %v6937_v58 = vpop.permute.xlu1 %2664 }
 0x255   :  { %9163 = vst [vmem:[#allocation28_spill] sm:$0xff] %v6937_v58 }
 0x258   :  { %2641 = vbcast.lane.b32.xlu1 %v6525_v29, 368  ;;  %2511 = vbcast.lane.b32.xlu0 %v6462_v39, 376  ;;  %v6945_v39 = vpop.f32.mrf.mxu0  ;;  %v6949_v32 = vpop.permute.xlu1 %2404 }
 0x259   :  { %9166 = vst [vmem:[#allocation31_spill] sm:$0xff] %v6945_v39  ;;  %9167 = vst [vmem:[#allocation34_spill] sm:$0xff] %v6949_v32  ;;  %v8936_v32 = vmax.f32 %v6939_v46, 0.0  ;;  %v9198_v46 = vld [vmem:[#allocation49_spill] sm:$0xff] }
 0x25a   :  { %v6951_v14 = vpop.f32.mrf.mxu0 }
 0x25b   :  { %9168 = vst [vmem:[#allocation36_spill] sm:$0xff] %v6951_v14 }
 0x25c   :  { %2901 = vbcast.lane.b32.xlu1 %v6706_v43, 352  ;;  %2771 = vbcast.lane.b32.xlu0 %v6611_v36, 360  ;;  %v6957_v35 = vpop.permute.xlu1 %2601 }
 0x25d   :  { %9170 = vst [vmem:[#allocation30_spill] sm:$0xff] %v6957_v35 }
 0x260   :  { %2708 = vbcast.lane.b32.xlu1 %v6553_v30, 368  ;;  %2578 = vbcast.lane.b32.xlu0 %v6487_v44, 376  ;;  %v6959_v44 = vpop.f32.mrf.mxu0  ;;  %v6969_v6 = vpop.permute.xlu1 %2861 }
 0x261   :  { %9171 = vst [vmem:[#allocation40_spill] sm:$0xff] %v6959_v44  ;;  %9174 = vst [vmem:[#allocation54_spill] sm:$0xff] %v6969_v6 }
 0x262   :  { %v6965_v45 = vpop.f32.mrf.mxu0 }
 0x263   :  { %9173 = vst [vmem:[#allocation51_spill] sm:$0xff] %v6965_v45 }
 0x264   :  { %2645 = vbcast.lane.b32.xlu1 %v6525_v29, 376  ;;  %2838 = vbcast.lane.b32.xlu0 %v6649_v0, 360  ;;  %v6963_v29 = vpop.permute.xlu0 %2471  ;;  %v6971_v11 = vpop.f32.mrf.mxu0 }
 0x265   :  { %9172 = vst [vmem:[#allocation37_spill] sm:$0xff] %v6963_v29  ;;  %9175 = vst [vmem:[#allocation55_spill] sm:$0xff] %v6971_v11  ;;  %v6977_v23 = vpop.permute.xlu1 %2668 }
 0x266   :  { %9177 = vst [vmem:[#allocation59_spill] sm:$0xff] %v6977_v23 }
 0x268   :  { %2905 = vbcast.lane.b32.xlu1 %v6706_v43, 360  ;;  %2775 = vbcast.lane.b32.xlu0 %v6611_v36, 368  ;;  %v6975_v24 = vpop.permute.xlu0 %2731 }
 0x269   :  { %9176 = vst [vmem:[#allocation58_spill] sm:$0xff] %v6975_v24  ;;  %v6985_v40 = vpop.permute.xlu1 %2408 }
 0x26a   :  { %9181 = vst [vmem:[#allocation63_spill] sm:$0xff] %v6985_v40 }
 0x26c   :  { %2842 = vbcast.lane.b32.xlu1 %v6649_v0, 368  ;;  %2712 = vbcast.lane.b32.xlu0 %v6553_v30, 376  ;;  %v6979_v30 = vpop.f32.mrf.mxu0  ;;  %v6981_v7 = vpop.permute.xlu0 %2538 }
 0x26d   :  { %9178 = vst [vmem:[#allocation60_spill] sm:$0xff] %v6979_v30  ;;  %9179 = vst [vmem:[#allocation61_spill] sm:$0xff] %v6981_v7  ;;  %v6991_v37 = vpop.permute.xlu1 %2605 }
 0x26e   :  { %v6983_v63 = vpop.f32.mrf.mxu0  ;;  %9184 = vst [vmem:[#allocation66_spill] sm:$0xff] %v6991_v37 }
 0x26f   :  { %9180 = vst [vmem:[#allocation62_spill] sm:$0xff] %v6983_v63 }
 0x270   :  { %2909 = vbcast.lane.b32.xlu1 %v6706_v43, 368  ;;  %2779 = vbcast.lane.b32.xlu0 %v6611_v36, 376  ;;  %v6987_v36 = vpop.f32.mrf.mxu0  ;;  %v6989_v56 = vpop.permute.xlu0 %2798 }
 0x271   :  { %9182 = vst [vmem:[#allocation64_spill] sm:$0xff] %v6987_v36  ;;  %9183 = vst [vmem:[#allocation65_spill] sm:$0xff] %v6989_v56  ;;  %v6999_v59 = vpop.permute.xlu1 %2865 }
 0x272   :  { %9188 = vst [vmem:[#allocation70_spill] sm:$0xff] %v6999_v59 }
 0x274   :  { %2913 = vbcast.lane.b32.xlu1 %v6706_v43, 376  ;;  %2846 = vbcast.lane.b32.xlu0 %v6649_v0, 376  ;;  %v6993_v43 = vpop.f32.mrf.mxu0  ;;  %v6995_v0 = vpop.permute.xlu0 %2475 }
 0x275   :  { %9185 = vst [vmem:[#allocation67_spill] sm:$0xff] %v6993_v43  ;;  %9186 = vst [vmem:[#allocation68_spill] sm:$0xff] %v6995_v0  ;;  %v7005_v23 = vpop.permute.xlu1 %2672 }
 0x276   :  { %v6997_v61 = vpop.f32.mrf.mxu0  ;;  %9191 = vst [vmem:[#allocation73_spill] sm:$0xff] %v7005_v23  ;;  %v8935_v23 = vmax.f32 %v6919_v13, 0.0 }
 0x277   :  { %9187 = vst [vmem:[#allocation69_spill] sm:$0xff] %v6997_v61 }
 0x278   :  { %v7001_v6 = vpop.f32.mrf.mxu0  ;;  %v7003_v31 = vpop.permute.xlu0 %2735 }
 0x279   :  { %9189 = vst [vmem:[#allocation71_spill] sm:$0xff] %v7001_v6  ;;  %9190 = vst [vmem:[#allocation72_spill] sm:$0xff] %v7003_v31  ;;  %v7015_v40 = vpop.permute.xlu1 %2412 }
 0x27a   :  { %v7007_v7 = vpop.f32.mrf.mxu0  ;;  %9194 = vst [vmem:[#allocation77_spill] sm:$0xff] %v7015_v40 }
 0x27b   :  { %9192 = vst [vmem:[#allocation75_spill] sm:$0xff] %v7007_v7 }
 0x27c   :  { %v7010_v24 = vpop.permute.xlu0 %2542 }
 0x27d   :  { %9193 = vst [vmem:[#allocation74_spill] sm:$0xff] %v7010_v24  ;;  %v7029_v49 = vpop.permute.xlu1 %2609 }
 0x27e   :  { %9196 = vst [vmem:[#allocation79_spill] sm:$0xff] %v7029_v49  ;;  %v8948_v49 = vmax.f32 %v6959_v44, 0.0  ;;  %v8955_v44 = vmax.f32 %v6997_v61, 0.0 }
 0x29e   :  { %v5260_v4 = vpop.f32.mrf.mxu0  ;;  %v5278_v56 = vpop.f32.mrf.mxu1 }
 0x2a0   :  { %v1654_v58 = vpop.f32.mrf.mxu0  ;;  %v1831_v54 = vpop.f32.mrf.mxu1 }
 0x2a1   :  { %v1910_v0 = vsub.f32 %v1654_v58, %v8934_v5  ;;  %v2103_v59 = vsub.f32 %v1831_v54, %v6190_v47  ;;  %v7022_v58 = vpop.permute.xlu0 %2802  ;;  %v1912_v54 = vsub.f32 %v5260_v4, %v8936_v32  ;;  %v2105_v5 = vsub.f32 %v5278_v56, %v6175_v33  ;;  %v9197_v4 = vld [vmem:[#allocation53_spill] sm:$0xff] }
 0x2a2   :  { %v5261_v31 = vpop.f32.mrf.mxu0  ;;  %v5279_v29 = vpop.f32.mrf.mxu1  ;;  %9195 = vst [vmem:[#allocation76_spill] sm:$0xff] %v7022_v58 }
 0x2a3   :  { %5324 = vmatprep.mubr.f32.mxu0 %v1910_v0  ;;  %5380 = vmatprep.mubr.f32.mxu1 %v2103_v59  ;;  %v8941_v59 = vmax.f32 %v6931_v41, 0.0  ;;  %v8940_v0 = vmax.f32 %v6951_v14, 0.0  ;;  %v2106_v32 = vsub.f32 %v5279_v29, %v9197_v4  ;;  %v9200_v29 = vld [vmem:[#allocation50_spill] sm:$0xff] }
 0x2a4   :  { %v1657_v35 = vpop.f32.mrf.mxu0  ;;  %v1834_v34 = vpop.f32.mrf.mxu1 }
 0x2a5   :  { %v1911_v24 = vsub.f32 %v1657_v35, %v8935_v23  ;;  %v2104_v25 = vsub.f32 %v1834_v34, %v6197_v27  ;;  %v1913_v34 = vsub.f32 %v5261_v31, %v8941_v59 }
 0x2a6   :  { %v5264_v40 = vpop.f32.mrf.mxu0  ;;  %v5282_v9 = vpop.f32.mrf.mxu1 }
 0x2a7   :  { %5325 = vmatmul.mubr.f32.vlgmr.msra.gmra.mxu0 %v1911_v24  ;;  %5381 = vmatmul.mubr.f32.vlgmr.msra.gmra.mxu1 %v2104_v25  ;;  %v8943_v25 = vmax.f32 %v6945_v39, 0.0  ;;  %v7038_v24 = vpop.permute.xlu0 %2479 }
 0x2a8   :  { %v1670_v35 = vpop.f32.mrf.mxu0  ;;  %v1847_v23 = vpop.f32.mrf.mxu1  ;;  %5327 = vmatprep.mubr.f32.mxu0 %v1912_v54  ;;  %5383 = vmatprep.mubr.f32.mxu1 %v2105_v5  ;;  %9199 = vst [vmem:[#allocation78_spill] sm:$0xff] %v7038_v24  ;;  %v8944_v5 = vmax.f32 %v6965_v45, 0.0  ;;  %v8947_v24 = vmax.f32 %v6979_v30, 0.0  ;;  %v8959_v30 = vmax.f32 %v6983_v63, 0.0 }
 0x2a9   :  { %v1914_v56 = vsub.f32 %v1670_v35, %v8940_v0  ;;  %v2107_v13 = vsub.f32 %v1847_v23, %v9198_v46  ;;  %v7044_v23 = vpop.permute.xlu1 %2869 }
 0x2aa   :  { %v5265_v58 = vpop.f32.mrf.mxu0  ;;  %v5283_v37 = vpop.f32.mrf.mxu1  ;;  %9201 = vst [vmem:[#allocation80_spill] sm:$0xff] %v7044_v23  ;;  %v1916_v0 = vsub.f32 %v5264_v40, %v8944_v5 }
 0x2ab   :  { %5328 = vmatmul.mubr.f32.gmra.mxu0 %v1913_v34  ;;  %5384 = vmatmul.mubr.f32.gmra.mxu1 %v2106_v32  ;;  %v9202_v34 = vld [vmem:[#allocation47_spill] sm:$0xff]  ;;  %v7057_v45 = vpop.permute.xlu0 %2739 }
 0x2ac   :  { %v1673_v54 = vpop.f32.mrf.mxu0  ;;  %v1850_v41 = vpop.f32.mrf.mxu1  ;;  %5330 = vmatprep.mubr.f32.mxu0 %v1914_v56  ;;  %5386 = vmatprep.mubr.f32.mxu1 %v2107_v13  ;;  %v2109_v32 = vsub.f32 %v5282_v9, %v9202_v34  ;;  %v9204_v9 = vld [vmem:[#allocation45_spill] sm:$0xff]  ;;  %9205 = vst [vmem:[#allocation81_spill] sm:$0xff] %v7057_v45 }
 0x2ad   :  { %v1915_v31 = vsub.f32 %v1673_v54, %v8943_v25  ;;  %v2108_v35 = vsub.f32 %v1850_v41, %v9200_v29  ;;  %v1917_v41 = vsub.f32 %v5265_v58, %v8948_v49  ;;  %v9203_v54 = vld [vmem:[#allocation48_spill] sm:$0xff] }
 0x2ae   :  { %v5268_v59 = vpop.f32.mrf.mxu0  ;;  %v5286_v14 = vpop.f32.mrf.mxu1  ;;  %v2110_v25 = vsub.f32 %v5283_v37, %v9203_v54 }
 0x2af   :  { %5331 = vmatmul.mubr.f32.gmra.mxu0 %v1915_v31  ;;  %5387 = vmatmul.mubr.f32.gmra.mxu1 %v2108_v35  ;;  %v8953_v31 = vmax.f32 %v6971_v11, 0.0  ;;  %v8952_v35 = vmax.f32 %v6987_v36, 0.0  ;;  %v2113_v49 = vsub.f32 %v5286_v14, %v9106_v60 }
 0x2b0   :  { %v1686_v13 = vpop.f32.mrf.mxu0  ;;  %v1863_v56 = vpop.f32.mrf.mxu1  ;;  %5333 = vmatprep.mubr.f32.mxu0 %v1916_v0  ;;  %5389 = vmatprep.mubr.f32.mxu1 %v2109_v32 }
 0x2b1   :  { %v1918_v40 = vsub.f32 %v1686_v13, %v8947_v24  ;;  %v2111_v5 = vsub.f32 %v1863_v56, %v9204_v9  ;;  %v7060_v0 = vpop.permute.xlu1 %2676  ;;  %v9207_v13 = vld [vmem:[#allocation46_spill] sm:$0xff]  ;;  %v1920_v24 = vsub.f32 %v5268_v59, %v8952_v35 }
 0x2b2   :  { %v5269_v39 = vpop.f32.mrf.mxu0  ;;  %v5287_v23 = vpop.f32.mrf.mxu1  ;;  %9206 = vst [vmem:[#allocation83_spill] sm:$0xff] %v7060_v0 }
 0x2b3   :  { %5334 = vmatmul.mubr.f32.gmra.mxu0 %v1917_v41  ;;  %5390 = vmatmul.mubr.f32.gmra.mxu1 %v2110_v25  ;;  %v2114_v59 = vsub.f32 %v5287_v23, %v9115_v18 }
 0x2b4   :  { %v1689_v58 = vpop.f32.mrf.mxu0  ;;  %v1866_v32 = vpop.f32.mrf.mxu1  ;;  %5336 = vmatprep.mubr.f32.mxu0 %v1918_v40  ;;  %5392 = vmatprep.mubr.f32.mxu1 %v2111_v5 }
 0x2b5   :  { %v1919_v37 = vsub.f32 %v1689_v58, %v8953_v31  ;;  %v2112_v56 = vsub.f32 %v1866_v32, %v9207_v13  ;;  %v7071_v40 = vpop.permute.xlu0 %2546  ;;  %v1921_v58 = vsub.f32 %v5269_v39, %v8959_v30  ;;  %v7079_v35 = vpop.permute.xlu1 %2416  ;;  %v8958_v31 = vmax.f32 %v6993_v43, 0.0 }
 0x2b6   :  { %v5272_v41 = vpop.f32.mrf.mxu0  ;;  %v5290_v25 = vpop.f32.mrf.mxu1 }
 0x2b7   :  { %5337 = vmatmul.mubr.f32.gmra.mxu0 %v1919_v37  ;;  %5393 = vmatmul.mubr.f32.gmra.mxu1 %v2112_v56 }
 0x2b8   :  { %v1702_v5 = vpop.f32.mrf.mxu0  ;;  %v1879_v11 = vpop.f32.mrf.mxu1  ;;  %5339 = vmatprep.mubr.f32.mxu0 %v1920_v24  ;;  %5395 = vmatprep.mubr.f32.mxu1 %v2113_v49  ;;  %v8957_v49 = vmax.f32 %v7007_v7, 0.0 }
 0x2b9   :  { %v1922_v14 = vsub.f32 %v1702_v5, %v8955_v44  ;;  %v2115_v32 = vsub.f32 %v1879_v11, %v9125_v42  ;;  %v2117_v5 = vsub.f32 %v5290_v25, %v9141_v52  ;;  %v7089_v44 = vpop.permute.xlu0 %2806 }
 0x2ba   :  { %v5273_v37 = vpop.f32.mrf.mxu0  ;;  %v5291_v56 = vpop.f32.mrf.mxu1  ;;  %v1924_v11 = vsub.f32 %v5272_v41, %v8957_v49 }
 0x2bb   :  { %5340 = vmatmul.mubr.f32.gmra.mxu0 %v1921_v58  ;;  %5396 = vmatmul.mubr.f32.gmra.mxu1 %v2114_v59  ;;  %v8956_v58 = vmax.f32 %v7001_v6, 0.0  ;;  %v7092_v59 = vpop.permute.xlu1 %2613 }
 0x2bc   :  { %v1705_v24 = vpop.f32.mrf.mxu0  ;;  %v1882_v63 = vpop.f32.mrf.mxu1  ;;  %5342 = vmatprep.mubr.f32.mxu0 %v1922_v14  ;;  %5398 = vmatprep.mubr.f32.mxu1 %v2115_v32  ;;  %9208 = vst [vmem:[#allocation82_spill] sm:$0xff] %v7092_v59 }
 0x2bd   :  { %v1923_v39 = vsub.f32 %v1705_v24, %v8958_v31  ;;  %v2116_v23 = vsub.f32 %v1882_v63, %v9132_v62  ;;  %v1925_v14 = vsub.f32 %v5273_v37, %v8956_v58  ;;  %v2118_v63 = vsub.f32 %v5291_v56, %v9147_v12  ;;  %v7097_v41 = vpop.permute.xlu0 %2483 }
 0x2bf   :  { %5343 = vmatmul.mubr.f32.gmra.mxu0 %v1923_v39  ;;  %5399 = vmatmul.mubr.f32.gmra.mxu1 %v2116_v23  ;;  %v7101_v25 = vpop.permute.xlu1 %2873 }
 0x2c0   :  { %5345 = vmatprep.mubr.f32.mxu0 %v1924_v11  ;;  %5401 = vmatprep.mubr.f32.mxu1 %v2117_v5 }
 0x2c1   :  { %v7103_v32 = vpop.permute.xlu0 %2743 }
 0x2c2   :  { %9209 = vst [vmem:[#allocation85_spill] sm:$0xff] %v7103_v32 }
 0x2c3   :  { %5346 = vmatmul.mubr.f32.gmra.mxu0 %v1925_v14  ;;  %5402 = vmatmul.mubr.f32.gmra.mxu1 %v2118_v63  ;;  %v7105_v24 = vpop.permute.xlu1 %2680 }
 0x2c4   :  { %5420 = vmatprep.mubr.msk.bf16.mxu0 %vm5641_vm1, %v9151_v8  ;;  %9210 = vst [vmem:[#allocation84_spill] sm:$0xff] %v7105_v24 }
 0x2c5   :  { %v7107_v39 = vpop.permute.xlu0 %2550 }
 0x2c6   :  { %9211 = vst [vmem:[#allocation88_spill] sm:$0xff] %v7107_v39 }
 0x2c7   :  { %v7109_v23 = vpop.permute.xlu1 %2420 }
 0x2c8   :  { %9212 = vst [vmem:[#allocation86_spill] sm:$0xff] %v7109_v23 }
 0x2c9   :  { %v7111_v37 = vpop.permute.xlu0 %2810 }
 0x2ca   :  { %9213 = vst [vmem:[#allocation89_spill] sm:$0xff] %v7111_v37 }
 0x2cb   :  { %v7113_v56 = vpop.permute.xlu1 %2617 }
 0x2cc   :  { %9214 = vst [vmem:[#allocation91_spill] sm:$0xff] %v7113_v56 }
 0x2cd   :  { %v7115_v11 = vpop.permute.xlu0 %2487 }
 0x2ce   :  { %9215 = vst [vmem:[#allocation90_spill] sm:$0xff] %v7115_v11 }
 0x2cf   :  { %v7117_v5 = vpop.permute.xlu1 %2877 }
 0x2d1   :  { %v7119_v14 = vpop.permute.xlu0 %2747 }
 0x2d2   :  { %9216 = vst [vmem:[#allocation93_spill] sm:$0xff] %v7119_v14 }
 0x2d3   :  { %v7121_v63 = vpop.permute.xlu1 %2684 }
 0x2d4   :  { %9217 = vst [vmem:[#allocation92_spill] sm:$0xff] %v7121_v63 }
 0x2d5   :  { %v7123_v58 = vpop.permute.xlu0 %2554 }
 0x2d6   :  { %9218 = vst [vmem:[#allocation94_spill] sm:$0xff] %v7123_v58 }
 0x2d7   :  { %v7125_v49 = vpop.permute.xlu1 %2424 }
 0x2d8   :  { %9219 = vst [vmem:[#allocation95_spill] sm:$0xff] %v7125_v49 }
 0x2d9   :  { %v7127_v31 = vpop.permute.xlu0 %2814 }
 0x2da   :  { %9220 = vst [vmem:[#allocation96_spill] sm:$0xff] %v7127_v31 }
 0x2db   :  { %v7129_v30 = vpop.permute.xlu1 %2621 }
 0x2dc   :  { %9221 = vst [vmem:[#allocation97_spill] sm:$0xff] %v7129_v30 }
 0x2dd   :  { %v7131_v6 = vpop.permute.xlu0 %2491 }
 0x2de   :  { %9222 = vst [vmem:[#allocation98_spill] sm:$0xff] %v7131_v6 }
 0x2df   :  { %v7133_v7 = vpop.permute.xlu1 %2881 }
 0x2e1   :  { %v7135_v43 = vpop.permute.xlu0 %2751 }
 0x2e2   :  { %9223 = vst [vmem:[#allocation99_spill] sm:$0xff] %v7135_v43 }
 0x2e3   :  { %v7137_v61 = vpop.permute.xlu1 %2688 }
 0x2e4   :  { %9224 = vst [vmem:[#allocation100_spill] sm:$0xff] %v7137_v61 }
 0x2e5   :  { %v7139_v36 = vpop.permute.xlu0 %2558 }
 0x2e6   :  { %9225 = vst [vmem:[#allocation101_spill] sm:$0xff] %v7139_v36 }
 0x2e7   :  { %v7141_v14 = vpop.permute.xlu1 %2428 }
 0x2e8   :  { %9226 = vst [vmem:[#allocation102_spill] sm:$0xff] %v7141_v14 }
 0x2e9   :  { %v7143_v11 = vpop.permute.xlu0 %2818 }
 0x2ea   :  { %9227 = vst [vmem:[#allocation103_spill] sm:$0xff] %v7143_v11 }
 0x2eb   :  { %v7145_v32 = vpop.permute.xlu1 %2625 }
 0x2ec   :  { %9228 = vst [vmem:[#allocation104_spill] sm:$0xff] %v7145_v32 }
 0x2ed   :  { %v7147_v45 = vpop.permute.xlu0 %2495 }
 0x2ee   :  { %9229 = vst [vmem:[#allocation105_spill] sm:$0xff] %v7147_v45 }
 0x2ef   :  { %v7149_v63 = vpop.permute.xlu1 %2885 }
 0x2f1   :  { %v7151_v24 = vpop.permute.xlu0 %2755 }
 0x2f2   :  { %9230 = vst [vmem:[#allocation106_spill] sm:$0xff] %v7151_v24 }
 0x2f3   :  { %v7153_v6 = vpop.permute.xlu1 %2692 }
 0x2f4   :  { %9231 = vst [vmem:[#allocation107_spill] sm:$0xff] %v7153_v6 }
 0x2f5   :  { %v7155_v0 = vpop.permute.xlu0 %2562 }
 0x2f6   :  { %9232 = vst [vmem:[#allocation108_spill] sm:$0xff] %v7155_v0 }
 0x2f7   :  { %v7157_v43 = vpop.permute.xlu1 %2432 }
 0x2f8   :  { %9233 = vst [vmem:[#allocation109_spill] sm:$0xff] %v7157_v43 }
 0x2f9   :  { %v7159_v61 = vpop.permute.xlu0 %2822 }
 0x2fa   :  { %9234 = vst [vmem:[#allocation110_spill] sm:$0xff] %v7159_v61 }
 0x2fb   :  { %v7161_v30 = vpop.permute.xlu1 %2629 }
 0x2fc   :  { %9235 = vst [vmem:[#allocation111_spill] sm:$0xff] %v7161_v30 }
 0x2fd   :  { %v7163_v14 = vpop.permute.xlu0 %2499 }
 0x2fe   :  { %9236 = vst [vmem:[#allocation112_spill] sm:$0xff] %v7163_v14 }
 0x2ff   :  { %v7165_v56 = vpop.permute.xlu1 %2889 }
 0x301   :  { %v7167_v32 = vpop.permute.xlu0 %2759 }
 0x302   :  { %9237 = vst [vmem:[#allocation113_spill] sm:$0xff] %v7167_v32 }
 0x303   :  { %v7169_v45 = vpop.permute.xlu1 %2696 }
 0x304   :  { %9238 = vst [vmem:[#allocation114_spill] sm:$0xff] %v7169_v45 }
 0x305   :  { %v7171_v59 = vpop.permute.xlu0 %2566 }
 0x306   :  { %9239 = vst [vmem:[#allocation115_spill] sm:$0xff] %v7171_v59 }
 0x307   :  { %v7173_v24 = vpop.permute.xlu1 %2436 }
 0x308   :  { %9240 = vst [vmem:[#allocation116_spill] sm:$0xff] %v7173_v24 }
 0x309   :  { %v7175_v6 = vpop.permute.xlu0 %2826 }
 0x30a   :  { %9241 = vst [vmem:[#allocation117_spill] sm:$0xff] %v7175_v6 }
 0x30b   :  { %v7177_v0 = vpop.permute.xlu1 %2633 }
 0x30c   :  { %9242 = vst [vmem:[#allocation118_spill] sm:$0xff] %v7177_v0 }
 0x30d   :  { %v7179_v43 = vpop.permute.xlu0 %2503 }
 0x30e   :  { %9243 = vst [vmem:[#allocation119_spill] sm:$0xff] %v7179_v43 }
 0x30f   :  { %v7181_v49 = vpop.permute.xlu1 %2893 }
 0x311   :  { %v7183_v30 = vpop.permute.xlu0 %2763 }
 0x312   :  { %9244 = vst [vmem:[#allocation120_spill] sm:$0xff] %v7183_v30 }
 0x313   :  { %v7185_v14 = vpop.permute.xlu1 %2700 }
 0x314   :  { %9245 = vst [vmem:[#allocation121_spill] sm:$0xff] %v7185_v14 }
 0x315   :  { %v7187_v23 = vpop.permute.xlu0 %2570 }
 0x316   :  { %9246 = vst [vmem:[#allocation122_spill] sm:$0xff] %v7187_v23 }
 0x317   :  { %v7189_v32 = vpop.permute.xlu1 %2440 }
 0x318   :  { %9247 = vst [vmem:[#allocation123_spill] sm:$0xff] %v7189_v32 }
 0x319   :  { %v7191_v45 = vpop.permute.xlu0 %2830 }
 0x31a   :  { %9248 = vst [vmem:[#allocation124_spill] sm:$0xff] %v7191_v45 }
 0x31b   :  { %v7193_v59 = vpop.permute.xlu1 %2637 }
 0x31c   :  { %9249 = vst [vmem:[#allocation125_spill] sm:$0xff] %v7193_v59 }
 0x31d   :  { %v7195_v24 = vpop.permute.xlu0 %2507 }
 0x31e   :  { %9250 = vst [vmem:[#allocation126_spill] sm:$0xff] %v7195_v24 }
 0x31f   :  { %v7197_v36 = vpop.permute.xlu1 %2897 }
 0x321   :  { %v7199_v0 = vpop.permute.xlu0 %2767 }
 0x322   :  { %9251 = vst [vmem:[#allocation127_spill] sm:$0xff] %v7199_v0 }
 0x323   :  { %v7201_v43 = vpop.permute.xlu1 %2704 }
 0x324   :  { %9252 = vst [vmem:[#allocation128_spill] sm:$0xff] %v7201_v43 }
 0x325   :  { %v7203_v58 = vpop.permute.xlu0 %2574 }
 0x326   :  { %9253 = vst [vmem:[#allocation129_spill] sm:$0xff] %v7203_v58 }
 0x327   :  { %v7205_v30 = vpop.permute.xlu1 %2444 }
 0x328   :  { %9254 = vst [vmem:[#allocation130_spill] sm:$0xff] %v7205_v30 }
 0x329   :  { %v7207_v14 = vpop.permute.xlu0 %2834 }
 0x32a   :  { %9255 = vst [vmem:[#allocation131_spill] sm:$0xff] %v7207_v14 }
 0x32b   :  { %v7210_v39 = vpop.permute.xlu1 %2641 }
 0x32c   :  { %9256 = vst [vmem:[#allocation132_spill] sm:$0xff] %v7210_v39 }
 0x32d   :  { %v7215_v0 = vpop.permute.xlu0 %2511 }
 0x32e   :  { %9257 = vst [vmem:[#allocation133_spill] sm:$0xff] %v7215_v0 }
 0x367   :  { %v5326_v23 = vpop.f32.mrf.mxu0 }
 0x368   :  { %v2072_v32 = vadd.f32 %v5326_v23, %v6197_v27  ;;  %v7230_v27 = vpop.permute.xlu1 %2901 }
 0x369   :  { %v1992_v59 = vpop.f32.mrf.mxu0 }
 0x36a   :  { %v7212_v45 = vmax.f32 %v2072_v32, 0.0  ;;  %v2071_v24 = vadd.f32 %v1992_v59, %v6190_v47 }
 0x36b   :  { %v5329_v6 = vpop.f32.mrf.mxu0 }
 0x36c   :  { %v2916_v43 = vmul.f32 %v6836_v21, %v7212_v45  ;;  %v2932_v30 = vmul.f32 %v6842_v3, %v7212_v45  ;;  %v7221_v58 = vmax.f32 %v2071_v24, 0.0  ;;  %v2948_v23 = vmul.f32 %v6848_v57, %v7212_v45  ;;  %v7260_v37 = vpop.permute.xlu1 %2708 }
 0x36d   :  { %v2002_v14 = vpop.f32.mrf.mxu0  ;;  %v2964_v32 = vmul.f32 %v6861_v26, %v7212_v45  ;;  %v2980_v59 = vmul.f32 %v6879_v55, %v7212_v45  ;;  %v2074_v47 = vadd.f32 %v5329_v6, %v9197_v4  ;;  %v7242_v55 = vmul.f32 %v6889_v15, %v7212_v45  ;;  %v7253_v15 = vpop.permute.xlu0 %2771 }
 0x36e   :  { %v2915_v21 = vmul.f32 %v6840_v19, %v7221_v58  ;;  %v2931_v3 = vmul.f32 %v6846_v38, %v7221_v58  ;;  %v2947_v24 = vmul.f32 %v6850_v1, %v7221_v58  ;;  %v2963_v57 = vmul.f32 %v6865_v22, %v7221_v58  ;;  %9260 = vst [vmem:[#allocation136_spill] sm:$0xff] %v7253_v15 }
 0x36f   :  { %v5332_v26 = vpop.f32.mrf.mxu0  ;;  %9258 = vst [vmem:[#allocation134_spill] sm:$0xff] %v7242_v55  ;;  %v2979_v6 = vmul.f32 %v6869_v17, %v7221_v58  ;;  %v7248_v19 = vmul.f32 %v6893_v20, %v7221_v58  ;;  %v2073_v38 = vadd.f32 %v2002_v14, %v6175_v33  ;;  %v7255_v8 = vmax.f32 %v2074_v47, 0.0 }
 0x370   :  { %v3043_v4 = vmax.f32 %v2915_v21, %v2916_v43  ;;  %v3064_v0 = vmax.f32 %v2931_v3, %v2932_v30  ;;  %v3085_v1 = vmax.f32 %v2947_v24, %v2948_v23  ;;  %v3106_v39 = vmax.f32 %v2963_v57, %v2964_v32 }
 0x371   :  { %9259 = vst [vmem:[#allocation135_spill] sm:$0xff] %v7248_v19  ;;  %v2012_v61 = vpop.f32.mrf.mxu0  ;;  %v3127_v22 = vmax.f32 %v2979_v6, %v2980_v59  ;;  %v7257_v31 = vmax.f32 %v2073_v38, 0.0  ;;  %v2076_v20 = vadd.f32 %v5332_v26, %v9200_v29  ;;  %v2918_v59 = vmul.f32 %v6875_v50, %v7255_v8  ;;  %v9290_v19 = vld [vmem:[#allocation54_spill] sm:$0xff] }
 0x372   :  { %v2075_v30 = vadd.f32 %v2012_v61, %v9198_v46  ;;  %v2934_v21 = vmul.f32 %v6887_v51, %v7255_v8 }
 0x373   :  { %v5335_v17 = vpop.f32.mrf.mxu0  ;;  %v2917_v14 = vmul.f32 %v6859_v2, %v7257_v31  ;;  %v2933_v23 = vmul.f32 %v6854_v48, %v7257_v31  ;;  %v2949_v47 = vmul.f32 %v6873_v16, %v7257_v31  ;;  %v2965_v32 = vmul.f32 %v6883_v28, %v7257_v31  ;;  %v7281_v16 = vpop.permute.xlu0 %2578 }
 0x374   :  { %v2981_v61 = vmul.f32 %v6897_v53, %v7257_v31  ;;  %v7277_v3 = vmax.f32 %v2076_v20, 0.0  ;;  %v2950_v28 = vmul.f32 %v6901_v10, %v7255_v8  ;;  %v7287_v51 = vmax.f32 %v2075_v30, 0.0  ;;  %v7289_v20 = vpop.permute.xlu1 %2645  ;;  %v9266_v30 = vld [vmem:[#allocation35_spill] sm:$0xff] }
 0x375   :  { %v2022_v43 = vpop.f32.mrf.mxu0  ;;  %v3044_v24 = vmax.f32 %v3043_v4, %v2917_v14  ;;  %v3065_v48 = vmax.f32 %v3064_v0, %v2933_v23  ;;  %v3086_v57 = vmax.f32 %v3085_v1, %v2949_v47  ;;  %v7279_v26 = vmax.f32 %v3106_v39, %v2965_v32  ;;  %v9263_v4 = vld [vmem:[#allocation66_spill] sm:$0xff]  ;;  %v9264_v23 = vld [vmem:[#allocation20_spill] sm:$0xff] }
 0x376   :  { %v7285_v50 = vmax.f32 %v3127_v22, %v2981_v61  ;;  %v7293_v0 = vmul.f32 %v9263_v4, %v7277_v3  ;;  %v2078_v1 = vadd.f32 %v5335_v17, %v9203_v54  ;;  %v2919_v10 = vmul.f32 %v9264_v23, %v7287_v51  ;;  %v9265_v22 = vld [vmem:[#allocation17_spill] sm:$0xff]  ;;  %v9268_v61 = vld [vmem:[#allocation34_spill] sm:$0xff] }
 0x377   :  { %v5338_v2 = vpop.f32.mrf.mxu0  ;;  %9261 = vst [vmem:[#allocation137_spill] sm:$0xff] %v7279_v26  ;;  %v3045_v38 = vmax.f32 %v3044_v24, %v2918_v59  ;;  %v3066_v53 = vmax.f32 %v3065_v48, %v2934_v21  ;;  %v3087_v39 = vmax.f32 %v3086_v57, %v2950_v28  ;;  %v2935_v47 = vmul.f32 %v9265_v22, %v7287_v51  ;;  %v9267_v59 = vld [vmem:[#allocation30_spill] sm:$0xff]  ;;  %v9269_v48 = vld [vmem:[#allocation37_spill] sm:$0xff]  ;;  %v7314_v11 = vpop.permute.xlu0 %2838  ;;  %v9279_v28 = vld [vmem:[#allocation28_spill] sm:$0xff] }
 0x378   :  { %9262 = vst [vmem:[#allocation138_spill] sm:$0xff] %v7285_v50  ;;  %v2951_v32 = vmul.f32 %v9266_v30, %v7287_v51  ;;  %v7304_v21 = vmul.f32 %v9267_v59, %v7287_v51  ;;  %v2920_v24 = vmul.f32 %v9268_v61, %v7277_v3  ;;  %v2936_v17 = vmul.f32 %v9269_v48, %v7277_v3  ;;  %v7319_v29 = vpop.permute.xlu1 %2905 }
 0x379   :  { %v2032_v6 = vpop.f32.mrf.mxu0  ;;  %v3046_v4 = vmax.f32 %v3045_v38, %v2919_v10  ;;  %v3067_v23 = vmax.f32 %v3066_v53, %v2935_v47  ;;  %v7316_v30 = vmax.f32 %v2078_v1, 0.0  ;;  %v2077_v59 = vadd.f32 %v2022_v43, %v9202_v34  ;;  %v9271_v53 = vld [vmem:[#allocation63_spill] sm:$0xff]  ;;  %v9272_v1 = vld [vmem:[#allocation68_spill] sm:$0xff]  ;;  %v9273_v43 = vld [vmem:[#allocation74_spill] sm:$0xff] }
 0x37a   :  { %v7312_v22 = vmax.f32 %v3087_v39, %v2951_v32  ;;  %v7352_v34 = vmul.f32 %v9279_v28, %v7255_v8  ;;  %v9285_v28 = vld [vmem:[#allocation27_spill] sm:$0xff] }
 0x37b   :  { %v5341_v14 = vpop.f32.mrf.mxu0  ;;  %v3047_v46 = vmax.f32 %v3046_v4, %v2920_v24  ;;  %v3068_v61 = vmax.f32 %v3067_v23, %v2936_v17  ;;  %v7321_v48 = vmax.f32 %v2077_v59, 0.0  ;;  %v7325_v38 = vmul.f32 %v7071_v40, %v7316_v30  ;;  %v7335_v32 = vpop.permute.xlu0 %2775 }
 0x37c   :  { %9270 = vst [vmem:[#allocation66_spill] sm:$0xff] %v7312_v22  ;;  %9274 = vst [vmem:[#allocation20_spill] sm:$0xff] %v7335_v32  ;;  %v2079_v23 = vadd.f32 %v2032_v6, %v9204_v9  ;;  %v7344_v59 = vpop.permute.xlu1 %2842  ;;  %v9281_v32 = vld [vmem:[#allocation58_spill] sm:$0xff]  ;;  %v9282_v6 = vld [vmem:[#allocation19_spill] sm:$0xff]  ;;  %v3027_v15 = vmul.f32 %v9285_v28, %v7221_v58 }
 0x37d   :  { %v2042_v57 = vpop.f32.mrf.mxu0  ;;  %v2921_v39 = vmul.f32 %v9271_v53, %v7321_v48  ;;  %v2937_v10 = vmul.f32 %v9272_v1, %v7321_v48  ;;  %v7333_v47 = vmul.f32 %v9273_v43, %v7321_v48  ;;  %v9277_v53 = vld [vmem:[#allocation25_spill] sm:$0xff]  ;;  %9280 = vst [vmem:[#allocation34_spill] sm:$0xff] %v7352_v34  ;;  %v7356_v17 = vmul.f32 %v9281_v32, %v7255_v8 }
 0x37e   :  { %v7348_v1 = vmul.f32 %v9277_v53, %v7255_v8  ;;  %v2081_v53 = vadd.f32 %v2042_v57, %v9106_v60  ;;  %v9286_v32 = vld [vmem:[#allocation61_spill] sm:$0xff] }
 0x37f   :  { %v5344_v54 = vpop.f32.mrf.mxu0  ;;  %v7339_v4 = vmax.f32 %v3047_v46, %v2921_v39  ;;  %v7341_v40 = vmax.f32 %v3068_v61, %v2937_v10  ;;  %v2080_v46 = vadd.f32 %v5338_v2, %v9207_v13  ;;  %v7359_v61 = vmax.f32 %v2079_v23, 0.0  ;;  %v7367_v9 = vpop.permute.xlu0 %2712  ;;  %v9288_v13 = vld [vmem:[#allocation59_spill] sm:$0xff] }
 0x380   :  { %9278 = vst [vmem:[#allocation30_spill] sm:$0xff] %v7348_v1  ;;  %v7363_v39 = vmul.f32 %v9282_v6, %v7257_v31  ;;  %v2082_v10 = vadd.f32 %v5341_v14, %v9115_v18  ;;  %9284 = vst [vmem:[#allocation63_spill] sm:$0xff] %v7367_v9  ;;  %v7373_v55 = vmul.f32 %v9286_v32, %v7277_v3  ;;  %v2910_v57 = vpop.permute.xlu1 %2909  ;;  %v9289_v18 = vld [vmem:[#allocation21_spill] sm:$0xff] }
 0x381   :  { %v2052_v33 = vpop.f32.mrf.mxu0  ;;  %9275 = vst [vmem:[#allocation17_spill] sm:$0xff] %v7339_v4  ;;  %9276 = vst [vmem:[#allocation35_spill] sm:$0xff] %v7341_v40  ;;  %v2084_v2 = vadd.f32 %v5344_v54, %v9132_v62  ;;  %v7380_v14 = vmul.f32 %v9288_v13, %v7287_v51  ;;  %v3028_v28 = vmul.f32 %v9289_v18, %v7212_v45 }
 0x382   :  { %9283 = vst [vmem:[#allocation37_spill] sm:$0xff] %v7363_v39  ;;  %9287 = vst [vmem:[#allocation68_spill] sm:$0xff] %v7373_v55  ;;  %v2083_v23 = vadd.f32 %v2052_v33, %v9125_v42  ;;  %v3029_v32 = vmul.f32 %v9290_v19, %v7257_v31  ;;  %v9291_v39 = vld [vmem:[#allocation77_spill] sm:$0xff]  ;;  %v9292_v33 = vld [vmem:[#allocation78_spill] sm:$0xff]  ;;  %v7399_v13 = vmul.f32 %v7079_v35, %v7359_v61  ;;  %v7407_v19 = vmax.f32 %v2081_v53, 0.0 }
 0x383   :  { %v5347_v24 = vpop.f32.mrf.mxu0  ;;  %v7389_v54 = vmul.f32 %v9291_v39, %v7316_v30  ;;  %v7403_v18 = vmul.f32 %v7097_v41, %v7359_v61  ;;  %v3190_v39 = vmax.f32 %v3027_v15, %v3028_v28  ;;  %v7417_v35 = vpop.permute.xlu0 %2779  ;;  %v9298_v41 = vld [vmem:[#allocation70_spill] sm:$0xff]  ;;  %v9299_v53 = vld [vmem:[#allocation80_spill] sm:$0xff] }
 0x384   :  { %v2086_v60 = vadd.f32 %v5347_v24, %v9147_v12  ;;  %9294 = vst [vmem:[#allocation25_spill] sm:$0xff] %v7399_v13  ;;  %v7405_v24 = vmax.f32 %v2082_v10, 0.0  ;;  %v7409_v12 = vmax.f32 %v2084_v2, 0.0  ;;  %v7411_v42 = vmax.f32 %v2083_v23, 0.0  ;;  %9297 = vst [vmem:[#allocation58_spill] sm:$0xff] %v7417_v35  ;;  %v2914_v35 = vpop.permute.xlu1 %2913 }
 0x385   :  { %v2062_v43 = vpop.f32.mrf.mxu0  ;;  %9295 = vst [vmem:[#allocation28_spill] sm:$0xff] %v7403_v18  ;;  %v3030_v10 = vmul.f32 %v9298_v41, %v7255_v8  ;;  %v3031_v50 = vmul.f32 %v9299_v53, %v7287_v51  ;;  %v3191_v15 = vmax.f32 %v3190_v39, %v3029_v32  ;;  %v3032_v2 = vmul.f32 %v7101_v25, %v7277_v3 }
 0x386   :  { %v2085_v6 = vadd.f32 %v2062_v43, %v9141_v52  ;;  %v7393_v43 = vmul.f32 %v9292_v33, %v7316_v30  ;;  %v7395_v52 = vmax.f32 %v2080_v46, 0.0  ;;  %v9296_v46 = vld [vmem:[#allocation26_spill] sm:$0xff]  ;;  %v7419_v9 = vmax.f32 %v2086_v60, 0.0 }
 0x387   :  { %v3011_v62 = vmul.f32 %v9296_v46, %v7221_v58  ;;  %v3033_v23 = vmul.f32 %v7117_v5, %v7321_v48  ;;  %v9301_v46 = vld [vmem:[#allocation24_spill] sm:$0xff]  ;;  %v3034_v41 = vmul.f32 %v7133_v7, %v7316_v30  ;;  %v3035_v53 = vmul.f32 %v7149_v63, %v7359_v61  ;;  %v2847_v18 = vpop.permute.xlu0 %2846 }
 0x388   :  { %9293 = vst [vmem:[#allocation74_spill] sm:$0xff] %v7393_v43  ;;  %v7413_v33 = vmax.f32 %v2085_v6, 0.0  ;;  %v9300_v6 = vld [vmem:[#allocation23_spill] sm:$0xff]  ;;  %v3013_v60 = vmul.f32 %v9301_v46, %v7257_v31  ;;  %v3036_v32 = vmul.f32 %v7165_v56, %v7395_v52  ;;  %v3192_v25 = vmax.f32 %v3191_v15, %v3030_v10  ;;  %v9303_v15 = vld [vmem:[#allocation76_spill] sm:$0xff]  ;;  %v9316_v43 = vld [vmem:[#allocation86_spill] sm:$0xff] }
 0x389   :  { %v3012_v28 = vmul.f32 %v9300_v6, %v7212_v45  ;;  %v3037_v5 = vmul.f32 %v7181_v49, %v7407_v19  ;;  %v7443_v39 = vmul.f32 %v7197_v36, %v7405_v24  ;;  %v7449_v7 = vmul.f32 %v7230_v27, %v7411_v42 }
 0x38a   :  { %v2304_v46 = vpack.c.bf16 %v7419_v9, %v7413_v33  ;;  %v7453_v63 = vmul.f32 %v7319_v29, %v7409_v12  ;;  %v7456_v56 = vmul.f32 %v2910_v57, %v7413_v33  ;;  %v3193_v49 = vmax.f32 %v3192_v25, %v3031_v50  ;;  %v9304_v57 = vld [vmem:[#allocation89_spill] sm:$0xff]  ;;  %v9305_v50 = vld [vmem:[#allocation96_spill] sm:$0xff] }
 0x38b   :  { %v3169_v6 = vmax.f32 %v3011_v62, %v3012_v28  ;;  %v7459_v10 = vmul.f32 %v2914_v35, %v7419_v9  ;;  %v9302_v62 = vld [vmem:[#allocation65_spill] sm:$0xff]  ;;  %v3015_v28 = vmul.f32 %v9303_v15, %v7287_v51  ;;  %v3016_v29 = vmul.f32 %v7089_v44, %v7277_v3  ;;  %v9308_v15 = vld [vmem:[#allocation110_spill] sm:$0xff] }
 0x38c   :  { %v3014_v36 = vmul.f32 %v9302_v62, %v7255_v8  ;;  %5405 = vmatpush3.bf16.msra.mxu0 %v2304_v46  ;;  %v3194_v27 = vmax.f32 %v3193_v49, %v3032_v2  ;;  %v3017_v13 = vmul.f32 %v9304_v57, %v7321_v48  ;;  %v3018_v35 = vmul.f32 %v9305_v50, %v7316_v30  ;;  %v9307_v62 = vld [vmem:[#allocation103_spill] sm:$0xff]  ;;  %v9309_v44 = vld [vmem:[#allocation117_spill] sm:$0xff]  ;;  %v9310_v57 = vld [vmem:[#allocation124_spill] sm:$0xff] }
 0x38d   :  { %v3170_v34 = vmax.f32 %v3169_v6, %v3013_v60  ;;  %v9306_v25 = vmov 0.0   ;;  %v3019_v26 = vmul.f32 %v9307_v62, %v7359_v61  ;;  %v3020_v60 = vmul.f32 %v9308_v15, %v7395_v52  ;;  %v9311_v50 = vld [vmem:[#allocation131_spill] sm:$0xff] }
 0x38e   :  { %5406 = vmatprep.subr.bf16.mxu0 %v9306_v25  ;;  %v2303_v2 = vpack.c.bf16 %v7409_v12, %v7411_v42  ;;  %v3195_v46 = vmax.f32 %v3194_v27, %v3033_v23  ;;  %v3021_v49 = vmul.f32 %v9309_v44, %v7407_v19  ;;  %v7482_v1 = vmul.f32 %v9310_v57, %v7405_v24 }
 0x38f   :  { %v3171_v6 = vmax.f32 %v3170_v34, %v3014_v36  ;;  %v7486_v22 = vmul.f32 %v9311_v50, %v7411_v42  ;;  %v7490_v62 = vmul.f32 %v7314_v11, %v7409_v12  ;;  %v7494_v34 = vmul.f32 %v7344_v59, %v7413_v33  ;;  %v9312_v11 = vld [vmem:[#allocation88_spill] sm:$0xff] }
 0x390   :  { %v7497_v23 = vmul.f32 %v2847_v18, %v7419_v9  ;;  %5407 = vmatpush3.bf16.msra.mxu0 %v2303_v2  ;;  %v3196_v27 = vmax.f32 %v3195_v46, %v3034_v41  ;;  %v2302_v15 = vpack.c.bf16 %v7405_v24, %v7407_v19  ;;  %v2301_v44 = vpack.c.bf16 %v7395_v52, %v7359_v61  ;;  %v9314_v46 = vld [vmem:[#allocation94_spill] sm:$0xff] }
 0x391   :  { %v3172_v36 = vmax.f32 %v3171_v6, %v3015_v28  ;;  %5408 = vmatprep.subr.bf16.mxu0 %v9306_v25  ;;  %v2955_v57 = vmul.f32 %v9312_v11, %v7359_v61  ;;  %v2300_v59 = vpack.c.bf16 %v7316_v30, %v7321_v48  ;;  %v2299_v18 = vpack.c.bf16 %v7277_v3, %v7287_v51  ;;  %v9315_v11 = vld [vmem:[#allocation101_spill] sm:$0xff] }
 0x392   :  { %v3197_v28 = vmax.f32 %v3196_v27, %v3035_v53  ;;  %v9313_v6 = vmax.f32 %v7325_v38, %v7333_v47  ;;  %v2956_v55 = vmul.f32 %v9314_v46, %v7395_v52  ;;  %v7523_v4 = vmul.f32 %v9316_v43, %v7395_v52  ;;  %v9317_v53 = vld [vmem:[#allocation79_spill] sm:$0xff] }
 0x393   :  { %v3173_v50 = vmax.f32 %v3172_v36, %v3016_v29  ;;  %v2957_v29 = vmul.f32 %v9315_v11, %v7407_v19  ;;  %v2969_v27 = vmul.f32 %v9317_v53, %v7321_v48  ;;  %v9318_v47 = vld [vmem:[#allocation95_spill] sm:$0xff]  ;;  %v9321_v46 = vmax.f32 %v7293_v0, %v7304_v21  ;;  %v9322_v11 = vld [vmem:[#allocation82_spill] sm:$0xff] }
 0x394   :  { %v3091_v2 = vmax.f32 %v9313_v6, %v2955_v57  ;;  %5409 = vmatpush3.bf16.msra.mxu0 %v2302_v15  ;;  %v3198_v38 = vmax.f32 %v3197_v28, %v3036_v32  ;;  %v7530_v57 = vmul.f32 %v9318_v47, %v7407_v19  ;;  %v2970_v40 = vmul.f32 %v9322_v11, %v7316_v30  ;;  %v9323_v32 = vld [vmem:[#allocation91_spill] sm:$0xff] }
 0x395   :  { %v3174_v36 = vmax.f32 %v3173_v50, %v3017_v13  ;;  %5410 = vmatprep.subr.bf16.mxu0 %v9306_v25  ;;  %v9320_v13 = vld [vmem:[#allocation108_spill] sm:$0xff]  ;;  %v3110_v43 = vmax.f32 %v9321_v46, %v2969_v27  ;;  %v2971_v28 = vmul.f32 %v9323_v32, %v7359_v61  ;;  %v9324_v47 = vld [vmem:[#allocation115_spill] sm:$0xff]  ;;  %v7549_v21 = vmul.f32 %v7281_v16, %v7419_v9 }
 0x396   :  { %9319 = vst [vmem:[#allocation19_spill] sm:$0xff] %v7530_v57  ;;  %v3092_v6 = vmax.f32 %v3091_v2, %v2956_v55  ;;  %v2958_v15 = vmul.f32 %v9320_v13, %v7405_v24  ;;  %v3199_v53 = vmax.f32 %v3198_v38, %v3037_v5  ;;  %v2959_v57 = vmul.f32 %v9324_v47, %v7411_v42  ;;  %v9325_v55 = vld [vmem:[#allocation122_spill] sm:$0xff]  ;;  %v9329_v46 = vld [vmem:[#allocation104_spill] sm:$0xff]  ;;  %v9330_v16 = vld [vmem:[#allocation83_spill] sm:$0xff] }
 0x397   :  { %v3175_v50 = vmax.f32 %v3174_v36, %v3018_v35  ;;  %v2960_v2 = vmul.f32 %v9325_v55, %v7409_v12  ;;  %v9326_v35 = vld [vmem:[#allocation129_spill] sm:$0xff]  ;;  %v3111_v36 = vmax.f32 %v3110_v43, %v2970_v40  ;;  %v2973_v11 = vmul.f32 %v9329_v46, %v7407_v19  ;;  %v9331_v43 = vld [vmem:[#allocation111_spill] sm:$0xff]  ;;  %v9333_v55 = vld [vmem:[#allocation84_spill] sm:$0xff] }
 0x398   :  { %v3093_v41 = vmax.f32 %v3092_v6, %v2957_v29  ;;  %5411 = vmatpush3.bf16.msra.mxu0 %v2301_v44  ;;  %v2961_v0 = vmul.f32 %v9326_v35, %v7413_v33  ;;  %v3200_v27 = vmax.f32 %v3199_v53, %v7443_v39  ;;  %v9327_v29 = vld [vmem:[#allocation97_spill] sm:$0xff]  ;;  %v2985_v32 = vmul.f32 %v9330_v16, %v7321_v48  ;;  %v9339_v16 = vld [vmem:[#allocation72_spill] sm:$0xff] }
 0x399   :  { %v3176_v13 = vmax.f32 %v3175_v50, %v3019_v26  ;;  %5412 = vmatprep.subr.bf16.mxu0 %v9306_v25  ;;  %v2972_v38 = vmul.f32 %v9327_v29, %v7395_v52  ;;  %v9328_v6 = vld [vmem:[#allocation73_spill] sm:$0xff]  ;;  %v3112_v50 = vmax.f32 %v3111_v36, %v2971_v28  ;;  %v9334_v36 = vld [vmem:[#allocation92_spill] sm:$0xff] }
 0x39a   :  { %v3094_v5 = vmax.f32 %v3093_v41, %v2958_v15  ;;  %v2984_v26 = vmul.f32 %v9328_v6, %v7277_v3  ;;  %v3201_v40 = vmax.f32 %v3200_v27, %v7449_v7  ;;  %v2974_v41 = vmul.f32 %v9331_v43, %v7405_v24  ;;  %v9336_v29 = vld [vmem:[#allocation132_spill] sm:$0xff] }
 0x39b   :  { %v3177_v44 = vmax.f32 %v3176_v13, %v3020_v60  ;;  %v3113_v47 = vmax.f32 %v3112_v50, %v2972_v38  ;;  %v9332_v60 = vld [vmem:[#allocation118_spill] sm:$0xff]  ;;  %v2986_v13 = vmul.f32 %v9333_v55, %v7316_v30  ;;  %v2987_v27 = vmul.f32 %v9334_v36, %v7359_v61  ;;  %v9347_v36 = vld [vmem:[#allocation121_spill] sm:$0xff] }
 0x39c   :  { %v3095_v39 = vmax.f32 %v3094_v5, %v2959_v57  ;;  %v3130_v15 = vmax.f32 %v2984_v26, %v7380_v14  ;;  %5413 = vmatpush3.bf16.msra.mxu0 %v2300_v59  ;;  %v2975_v28 = vmul.f32 %v9332_v60, %v7411_v42  ;;  %v3202_v35 = vmax.f32 %v3201_v40, %v7453_v63  ;;  %v9335_v59 = vld [vmem:[#allocation125_spill] sm:$0xff] }
 0x39d   :  { %v3178_v53 = vmax.f32 %v3177_v44, %v3021_v49  ;;  %5414 = vmatprep.subr.bf16.mxu0 %v9306_v25  ;;  %v3114_v49 = vmax.f32 %v3113_v47, %v2973_v11  ;;  %v2976_v5 = vmul.f32 %v9335_v59, %v7409_v12  ;;  %v2977_v38 = vmul.f32 %v9336_v29, %v7413_v33  ;;  %v9337_v44 = vld [vmem:[#allocation100_spill] sm:$0xff]  ;;  %v9343_v47 = vld [vmem:[#allocation109_spill] sm:$0xff] }
 0x39e   :  { %v3096_v7 = vmax.f32 %v3095_v39, %v2960_v2  ;;  %v3131_v57 = vmax.f32 %v3130_v15, %v2985_v32  ;;  %v3203_v6 = vmax.f32 %v3202_v35, %v7456_v56  ;;  %v2988_v2 = vmul.f32 %v9337_v44, %v7395_v52  ;;  %v9340_v39 = vld [vmem:[#allocation81_spill] sm:$0xff] }
 0x39f   :  { %v3179_v14 = vmax.f32 %v3178_v53, %v7482_v1  ;;  %v3115_v46 = vmax.f32 %v3114_v49, %v2974_v41  ;;  %v9338_v1 = vld [vmem:[#allocation107_spill] sm:$0xff]  ;;  %v2999_v32 = vmul.f32 %v9339_v16, %v7287_v51  ;;  %v3000_v43 = vmul.f32 %v9340_v39, %v7277_v3  ;;  %v9341_v15 = vld [vmem:[#allocation85_spill] sm:$0xff]  ;;  %v9342_v51 = vld [vmem:[#allocation102_spill] sm:$0xff] }
 0x3a0   :  { %v3097_v26 = vmax.f32 %v3096_v7, %v2961_v0  ;;  %v3132_v63 = vmax.f32 %v3131_v57, %v2986_v13  ;;  %5415 = vmatpush3.bf16.msra.mxu0 %v2299_v18  ;;  %v2989_v11 = vmul.f32 %v9338_v1, %v7407_v19  ;;  %v7587_v40 = vmax.f32 %v3203_v6, %v7459_v10  ;;  %v9346_v7 = vld [vmem:[#allocation114_spill] sm:$0xff]  ;;  %v9351_v6 = vld [vmem:[#allocation105_spill] sm:$0xff]  ;;  %v9358_v39 = vld [vmem:[#allocation35_spill] sm:$0xff] }
 0x3a1   :  { %v3180_v50 = vmax.f32 %v3179_v14, %v7486_v22  ;;  %5416 = vmatprep.subr.bf16.mxu0 %v9306_v25  ;;  %v3116_v18 = vmax.f32 %v3115_v46, %v2975_v28  ;;  %v3150_v41 = vmax.f32 %v2999_v32, %v7356_v17  ;;  %v3001_v53 = vmul.f32 %v9341_v15, %v7321_v48  ;;  %v9355_v16 = vld [vmem:[#allocation106_spill] sm:$0xff]  ;;  %v9360_v15 = vld [vmem:[#allocation68_spill] sm:$0xff] }
 0x3a2   :  { %v3098_v56 = vmax.f32 %v3097_v26, %v7549_v21  ;;  %v3133_v0 = vmax.f32 %v3132_v63, %v2987_v27  ;;  %v7599_v10 = vmul.f32 %v9342_v51, %v7405_v24  ;;  %v7603_v60 = vmul.f32 %v9343_v47, %v7411_v42  ;;  %v9344_v21 = vld [vmem:[#allocation90_spill] sm:$0xff]  ;;  %v9352_v63 = vld [vmem:[#allocation112_spill] sm:$0xff] }
 0x3a3   :  { %v3181_v22 = vmax.f32 %v3180_v50, %v7490_v62  ;;  %v2940_v55 = vmul.f32 %v9344_v21, %v7395_v52  ;;  %v9345_v17 = vpack.c.bf16 %v7255_v8, %v7257_v31  ;;  %v3117_v28 = vmax.f32 %v3116_v18, %v2976_v5  ;;  %v9350_v5 = vld [vmem:[#allocation98_spill] sm:$0xff]  ;;  %v9359_v18 = vld [vmem:[#allocation113_spill] sm:$0xff] }
 0x3a4   :  { %v3134_v3 = vmax.f32 %v3133_v0, %v2988_v2  ;;  %v2978_v48 = vmul.f32 %v7289_v20, %v7419_v9  ;;  %v3151_v13 = vmax.f32 %v3150_v41, %v3000_v43  ;;  %v2990_v57 = vmul.f32 %v9346_v7, %v7405_v24  ;;  %v9349_v20 = vld [vmem:[#allocation99_spill] sm:$0xff]  ;;  %v9356_v0 = vld [vmem:[#allocation17_spill] sm:$0xff]  ;;  %v9362_v47 = vld [vmem:[#allocation30_spill] sm:$0xff] }
 0x3a5   :  { %v3182_v62 = vmax.f32 %v3181_v22, %v7494_v34  ;;  %5417 = vmatpush3.bf16.msra.mxu0 %v9345_v17  ;;  %v2991_v27 = vmul.f32 %v9347_v36, %v7411_v42  ;;  %v9348_v34 = vld [vmem:[#allocation93_spill] sm:$0xff]  ;;  %v3118_v31 = vmax.f32 %v3117_v28, %v2977_v38  ;;  %v3003_v59 = vmul.f32 %v9349_v20, %v7359_v61  ;;  %v9354_v61 = vld [vmem:[#allocation128_spill] sm:$0xff]  ;;  %v9371_v20 = vld [vmem:[#allocation134_spill] sm:$0xff] }
 0x3a6   :  { %5418 = vmatprep.subr.bf16.mxu0 %v9306_v25  ;;  %v3135_v35 = vmax.f32 %v3134_v3, %v2989_v11  ;;  %v3002_v14 = vmul.f32 %v9348_v34, %v7316_v30  ;;  %v3152_v49 = vmax.f32 %v3151_v13, %v3001_v53  ;;  %v2941_v29 = vmul.f32 %v9350_v5, %v7407_v19  ;;  %v9361_v53 = vld [vmem:[#allocation66_spill] sm:$0xff]  ;;  %v9365_v17 = vld [vmem:[#allocation28_spill] sm:$0xff] }
 0x3a7   :  { %v7621_v8 = vmax.f32 %v3182_v62, %v7497_v23  ;;  %v2942_v26 = vmul.f32 %v9351_v6, %v7405_v24  ;;  %v2943_v44 = vmul.f32 %v9352_v63, %v7411_v42  ;;  %v9353_v30 = vpack.c.bf16 %v7212_v45, %v7221_v58  ;;  %v2296_v23 = vld [vmem:[%s8874_s3] sm:$0xf]  ;;  %v9357_v58 = vld [vmem:[#allocation74_spill] sm:$0xff] }
 0x3a8   :  { %v3136_v2 = vmax.f32 %v3135_v35, %v2990_v57  ;;  %v3119_v38 = vmax.f32 %v3118_v31, %v2978_v48  ;;  %v2992_v50 = vmul.f32 %v9354_v61, %v7409_v12  ;;  %v2993_v46 = vmul.f32 %v7260_v37, %v7413_v33  ;;  %v9363_v37 = vld [vmem:[#allocation137_spill] sm:$0xff]  ;;  %v9367_v48 = vld [vmem:[#allocation138_spill] sm:$0xff]  ;;  %v9368_v35 = vld [vmem:[#allocation63_spill] sm:$0xff] }
 0x3a9   :  { %5419 = vmatpush3.bf16.msra.mxu0 %v9353_v30  ;;  %v3153_v1 = vmax.f32 %v3152_v49, %v3002_v14  ;;  %v3004_v32 = vmul.f32 %v9355_v16, %v7395_v52  ;;  %v3049_v45 = vmax.f32 %v9356_v0, %v7389_v54  ;;  %v3070_v43 = vmax.f32 %v9358_v39, %v9357_v58  ;;  %v9364_v62 = vld [vmem:[#allocation25_spill] sm:$0xff]  ;;  %v9366_v54 = vld [vmem:[#allocation34_spill] sm:$0xff]  ;;  %v9370_v49 = vld [vmem:[#allocation135_spill] sm:$0xff] }
 0x3aa   :  { %v3137_v11 = vmax.f32 %v3136_v2, %v2991_v27  ;;  %v3005_v41 = vmul.f32 %v9359_v18, %v7407_v19  ;;  %v3089_v51 = vmax.f32 %v9361_v53, %v9360_v15  ;;  %v3108_v21 = vmax.f32 %v9363_v37, %v9362_v47  ;;  %v9369_v31 = vld [vmem:[#allocation37_spill] sm:$0xff]  ;;  %v9373_v63 = vld [vmem:[#allocation120_spill] sm:$0xff]  ;;  %v9374_v30 = vld [vmem:[#allocation127_spill] sm:$0xff] }
 0x3ab   :  { %v3154_v22 = vmax.f32 %v3153_v1, %v3003_v59  ;;  %v3050_v52 = vmax.f32 %v3049_v45, %v9364_v62  ;;  %v3071_v28 = vmax.f32 %v3070_v43, %v9365_v17  ;;  %v3129_v13 = vmax.f32 %v9367_v48, %v9366_v54  ;;  %v9383_v54 = vld [vmem:[#allocation58_spill] sm:$0xff] }
 0x3ac   :  { %5421 = vmatmul.mubr.bf16.vlgmr.msra.gmra.mxu0 %v2296_v23  ;;  %v3138_v3 = vmax.f32 %v3137_v11, %v2992_v50  ;;  %v2994_v7 = vmul.f32 %v9368_v35, %v7419_v9  ;;  %v3099_v19 = vmax.f32 %v3098_v56, %v3089_v51  ;;  %v3120_v36 = vmax.f32 %v3119_v38, %v3108_v21  ;;  %v9375_v56 = vld [vmem:[#allocation19_spill] sm:$0xff] }
 0x3ad   :  { %v3155_v57 = vmax.f32 %v3154_v22, %v3004_v32  ;;  %v3051_v34 = vmax.f32 %v3050_v52, %v7523_v4  ;;  %v3072_v14 = vmax.f32 %v3071_v28, %v2940_v55  ;;  %v9372_v59 = vmax.f32 %v9370_v49, %v9371_v20  ;;  %v9376_v4 = vld [vmem:[#allocation116_spill] sm:$0xff]  ;;  %v9377_v11 = vld [vmem:[#allocation123_spill] sm:$0xff] }
 0x3ae   :  { %v3139_v27 = vmax.f32 %v3138_v3, %v2993_v46  ;;  %v3006_v2 = vmul.f32 %v9373_v63, %v7405_v24  ;;  %v3007_v23 = vmul.f32 %v9374_v30, %v7411_v42  ;;  %v3100_v61 = vrot.slane %v3099_v19, 4  ;;  %v9378_v32 = vld [vmem:[#allocation119_spill] sm:$0xff]  ;;  %v9379_v24 = vld [vmem:[#allocation126_spill] sm:$0xff] }
 0x3af   :  { %v3149_v5 = vmax.f32 %v9372_v59, %v9369_v31  ;;  %v3156_v6 = vmax.f32 %v3155_v57, %v3005_v41  ;;  %v3052_v38 = vmax.f32 %v3051_v34, %v9375_v56  ;;  %v3073_v46 = vmax.f32 %v3072_v14, %v2941_v29  ;;  %v9380_v29 = vld [vmem:[#allocation136_spill] sm:$0xff] }
 0x3b0   :  { %v3140_v50 = vmax.f32 %v3139_v27, %v2994_v7  ;;  %v3121_v1 = vrot.slane %v3120_v36, 4  ;;  %v2928_v55 = vmul.f32 %v9376_v4, %v7409_v12  ;;  %v2929_v16 = vmul.f32 %v9377_v11, %v7413_v33  ;;  %v9381_v41 = vld [vmem:[#allocation20_spill] sm:$0xff] }
 0x3b1   :  { %v2944_v0 = vmul.f32 %v9378_v32, %v7409_v12  ;;  %v3157_v45 = vmax.f32 %v3156_v6, %v3006_v2  ;;  %v2945_v58 = vmul.f32 %v9379_v24, %v7413_v33  ;;  %v3053_v42 = vmax.f32 %v3052_v38, %v7599_v10 }
 0x3b2   :  { %v3074_v39 = vmax.f32 %v3073_v46, %v2942_v26  ;;  %v3141_v43 = vmax.f32 %v3140_v50, %v3129_v13  ;;  %v3008_v18 = vmul.f32 %v9380_v29, %v7409_v12  ;;  %v3009_v15 = vmul.f32 %v9381_v41, %v7413_v33  ;;  %v9382_v26 = vld [vmem:[#allocation130_spill] sm:$0xff] }
 0x3b3   :  { %v3158_v22 = vmax.f32 %v3157_v45, %v3007_v23  ;;  %v3101_v53 = vmax.f32 %v3099_v19, %v3100_v61  ;;  %v3054_v51 = vmax.f32 %v3053_v42, %v7603_v60  ;;  %v3122_v37 = vmax.f32 %v3120_v36, %v3121_v1  ;;  %v9384_v60 = vld [vmem:[#allocation133_spill] sm:$0xff] }
 0x3b4   :  { %v3075_v47 = vmax.f32 %v3074_v39, %v2943_v44  ;;  %v3142_v21 = vrot.slane %v3141_v43, 4  ;;  %v3184_v3 = vrot.slane %v7621_v8, 4  ;;  %v3205_v10 = vrot.slane %v7587_v40, 4 }
 0x3b5   :  { %v3159_v62 = vmax.f32 %v3158_v22, %v3008_v18  ;;  %v2930_v52 = vmul.f32 %v9382_v26, %v7419_v9  ;;  %v3055_v17 = vmax.f32 %v3054_v51, %v2928_v55  ;;  %v3010_v33 = vmul.f32 %v9383_v54, %v7419_v9 }
 0x3b6   :  { %v3076_v28 = vmax.f32 %v3075_v47, %v2944_v0  ;;  %v3102_v48 = vrot.slane %v3101_v53, 2  ;;  %v3143_v13 = vmax.f32 %v3141_v43, %v3142_v21  ;;  %v2946_v44 = vmul.f32 %v9384_v60, %v7419_v9  ;;  %v3693_v60 = vld [vmem:[%s8874_s3] sm:$0xf] }
 0x3b7   :  { %v3160_v12 = vmax.f32 %v3159_v62, %v3009_v15  ;;  %v3056_v35 = vmax.f32 %v3055_v17, %v2929_v16  ;;  %v3123_v57 = vrot.slane %v3122_v37, 2  ;;  %v3185_v19 = vmax.f32 %v7621_v8, %v3184_v3 }
 0x3b8   :  { %v3077_v7 = vmax.f32 %v3076_v28, %v2945_v58  ;;  %v3206_v27 = vmax.f32 %v7587_v40, %v3205_v10  ;;  %v3103_v31 = vmax.f32 %v3101_v53, %v3102_v48  ;;  %v3144_v49 = vrot.slane %v3143_v13, 2 }
 0x3b9   :  { %v3161_v36 = vmax.f32 %v3160_v12, %v3010_v33  ;;  %v3057_v34 = vmax.f32 %v3056_v35, %v2930_v52  ;;  %v3124_v63 = vmax.f32 %v3122_v37, %v3123_v57  ;;  %v3186_v2 = vrot.slane %v3185_v19, 2  ;;  %v3433_v35 = vld [vmem:[#allocation3 + $0xf0] sm:$0xff] }
 0x3ba   :  { %v3078_v14 = vmax.f32 %v3077_v7, %v2946_v44  ;;  %v3207_v23 = vrot.slane %v3206_v27, 2  ;;  %v3104_v50 = vrot.slane %v3103_v31, 1  ;;  %v3145_v56 = vmax.f32 %v3143_v13, %v3144_v49  ;;  %v5585_v13 = vld [vmem:[%s8875_s4] sm:$0xff]   ;;  %v3434_v44 = vld [vmem:[#allocation3 + $0xf8] sm:$0xff]  ;;  %v9385_v57 = vld [vmem:[#allocation10_spill] sm:$0xff] }
 0x3bb   :  { %v3162_v20 = vmax.f32 %v3161_v36, %v3149_v5  ;;  %v3058_v59 = vrot.slane %v3057_v34, 4  ;;  %v3125_v1 = vrot.slane %v3124_v63, 1  ;;  %v3187_v40 = vmax.f32 %v3185_v19, %v3186_v2  ;;  %5426 = vmatprep.mubr.msk.bf16.mxu1 %vm152_vm0, %v5585_v13  ;;  %5442 = vmatprep.subr.mxu0 %v3434_v44  ;;  %v3432_v36 = vld [vmem:[#allocation3 + $0xe8] sm:$0xff]  ;;  %v9387_v49 = vld [vmem:[#allocation11_spill] sm:$0xff]  ;;  %v9388_v2 = vld [vmem:[#allocation12_spill] sm:$0xff] }
 0x3bc   :  { %v3079_v6 = vrot.slane %v3078_v14, 4  ;;  %v3208_v55 = vmax.f32 %v3206_v27, %v3207_v23  ;;  %v3105_v5 = vmax.f32 %v3103_v31, %v3104_v50  ;;  %v3146_v32 = vrot.slane %v3145_v56, 1  ;;  %5443 = vmatpush3.msra.mxu0 %v3434_v44  ;;  %v9386_v27 = vld [vmem:[#allocation9_spill] sm:$0xff]  ;;  %v3430_v31 = vld [vmem:[#allocation3 + $0xd8] sm:$0xff]  ;;  %v3425_v50 = vld [vmem:[#allocation3 + $0xb0] sm:$0xff] }
 0x3bd   :  { %v3163_v30 = vrot.slane %v3162_v20, 4  ;;  %v3059_v9 = vmax.f32 %v3057_v34, %v3058_v59  ;;  %v3126_v58 = vmax.f32 %v3124_v63, %v3125_v1  ;;  %v3188_v42 = vrot.slane %v3187_v40, 1  ;;  %5444 = vmatprep.subr.mxu0 %v3433_v35  ;;  %v3429_v59 = vld [vmem:[#allocation3 + $0xd0] sm:$0xff]  ;;  %v3427_v63 = vld [vmem:[#allocation3 + $0xc0] sm:$0xff]  ;;  %v3426_v23 = vld [vmem:[#allocation3 + $0xb8] sm:$0xff] }
 0x3be   :  { %v3080_v61 = vmax.f32 %v3078_v14, %v3079_v6  ;;  %v3209_v29 = vrot.slane %v3208_v55, 1  ;;  %v3147_v18 = vmax.f32 %v3145_v56, %v3146_v32  ;;  %v3213_v41 = vmax.f32 %v3105_v5, 0.0  ;;  %5445 = vmatpush3.msra.mxu0 %v3433_v35  ;;  %v3431_v14 = vld [vmem:[#allocation3 + $0xe0] sm:$0xff]  ;;  %v3428_v6 = vld [vmem:[#allocation3 + $0xc8] sm:$0xff]  ;;  %v9391_v1 = vld [vmem:[#allocation15_spill] sm:$0xff] }
 0x3bf   :  { %v3164_v38 = vmax.f32 %v3162_v20, %v3163_v30  ;;  %v3060_v8 = vrot.slane %v3059_v9, 2  ;;  %v3214_v47 = vmax.f32 %v3126_v58, 0.0  ;;  %v3189_v37 = vmax.f32 %v3187_v40, %v3188_v42  ;;  %5446 = vmatprep.subr.mxu0 %v3432_v36  ;;  %v3424_v56 = vld [vmem:[#allocation3 + $0xa8] sm:$0xff] }
 0x3c0   :  { %v3081_v46 = vrot.slane %v3080_v61, 2  ;;  %v3210_v21 = vmax.f32 %v3208_v55, %v3209_v29  ;;  %v3215_v62 = vmax.f32 %v3147_v18, 0.0  ;;  %v7709_v7 = vunpack.c.l.bf16 %v3693_v60  ;;  %5447 = vmatpush3.msra.mxu0 %v3432_v36  ;;  %v9393_v32 = vld [vmem:[#allocation18_spill] sm:$0xff]  ;;  %v5589_v29 = vld [vmem:[%s8875_s4 + $0x20] sm:$0xff]  }
 0x3c1   :  { %v3165_v4 = vrot.slane %v3164_v38, 2  ;;  %v3061_v11 = vmax.f32 %v3059_v9, %v3060_v8  ;;  %v3217_v17 = vmax.f32 %v3189_v37, 0.0  ;;  %5448 = vmatprep.subr.mxu0 %v3431_v14  ;;  %v9389_v9 = vld [vmem:[#allocation13_spill] sm:$0xff]  ;;  %v9390_v8 = vld [vmem:[#allocation14_spill] sm:$0xff] }
 0x3c2   :  { %v3082_v16 = vmax.f32 %v3080_v61, %v3081_v46  ;;  %v3218_v12 = vmax.f32 %v3210_v21, 0.0  ;;  %v7713_v19 = vrot.slane %v7709_v7, %v9385_v57  ;;  %v7719_v34 = vrot.slane %v7709_v7, %v9386_v27  ;;  %5449 = vmatpush3.msra.mxu0 %v3431_v14  ;;  %v5590_v18 = vld [vmem:[%s8875_s4 + $0x28] sm:$0xff]  }
 0x3c3   :  { %v3166_v0 = vmax.f32 %v3164_v38, %v3165_v4  ;;  %v3062_v45 = vrot.slane %v3061_v11, 1  ;;  %v7725_v20 = vrot.slane %v7709_v7, %v9387_v49  ;;  %5450 = vmatprep.subr.mxu0 %v3430_v31  ;;  %v7733_v30 = vrot.slane %v7709_v7, %v9388_v2  ;;  %v3423_v38 = vld [vmem:[#allocation3 + $0xa0] sm:$0xff] }
 0x3c4   :  { %v3083_v24 = vrot.slane %v3082_v16, 1  ;;  %3720 = vbcast.lane.b32.xlu1 %v7713_v19, 264  ;;  %3716 = vbcast.lane.b32.xlu0 %v7713_v19, 256  ;;  %v7739_v61 = vrot.slane %v7709_v7, %v9389_v9  ;;  %v7749_v46 = vrot.slane %v7709_v7, %v9390_v8  ;;  %v7757_v40 = vrot.slane %v7709_v7, %v9391_v1  ;;  %v9392_v4 = vld [vmem:[#allocation16_spill] sm:$0xff] }
 0x3c5   :  { %v3167_v39 = vrot.slane %v3166_v0, 1  ;;  %v3063_v43 = vmax.f32 %v3061_v11, %v3062_v45  ;;  %5451 = vmatpush3.msra.mxu0 %v3430_v31  ;;  %v7767_v55 = vrot.slane %v7709_v7, %v9392_v4 }
 0x3c6   :  { %v3084_v22 = vmax.f32 %v3082_v16, %v3083_v24  ;;  %5452 = vmatprep.subr.mxu0 %v3429_v59 }
 0x3c7   :  { %v3168_v15 = vmax.f32 %v3166_v0, %v3167_v39  ;;  %v3211_v53 = vmax.f32 %v3063_v43, 0.0  ;;  %5453 = vmatpush3.msra.mxu0 %v3429_v59  ;;  %v5586_v39 = vld [vmem:[%s8875_s4 + $0x8] sm:$0xff]   ;;  %v5587_v43 = vld [vmem:[%s8875_s4 + $0x10] sm:$0xff]  }
 0x3c8   :  { %v3212_v51 = vmax.f32 %v3084_v22, 0.0  ;;  %3787 = vbcast.lane.b32.xlu1 %v7719_v34, 264  ;;  %3783 = vbcast.lane.b32.xlu0 %v7719_v34, 256  ;;  %v5588_v22 = vld [vmem:[%s8875_s4 + $0x18] sm:$0xff]  }
 0x3c9   :  { %v3216_v26 = vmax.f32 %v3168_v15, 0.0  ;;  %5454 = vmatprep.subr.mxu0 %v3428_v6  ;;  %v5592_v15 = vld [vmem:[%s8875_s4 + $0x38] sm:$0xff]  }
 0x3ca   :  { %v3227_v3 = vsel %vm1518_vm3, %v3212_v51, %v3211_v53  ;;  %5455 = vmatpush3.msra.mxu0 %v3428_v6 }
 0x3cb   :  { %v3228_v10 = vsel %vm1520_vm4, %v3213_v41, %v3227_v3  ;;  %5456 = vmatprep.subr.mxu0 %v3427_v63  ;;  %v5591_v41 = vld [vmem:[%s8875_s4 + $0x30] sm:$0xff]   ;;  %v3422_v3 = vld [vmem:[#allocation3 + $0x98] sm:$0xff] }
 0x3cc   :  { %v3229_v52 = vsel %vm1522_vm5, %v3214_v47, %v3228_v10  ;;  %3854 = vbcast.lane.b32.xlu1 %v7725_v20, 264  ;;  %3850 = vbcast.lane.b32.xlu0 %v7725_v20, 256  ;;  %v3421_v10 = vld [vmem:[#allocation3 + $0x90] sm:$0xff] }
 0x3cd   :  { %v3230_v28 = vsel %vm1524_vm6, %v3215_v62, %v3229_v52  ;;  %5457 = vmatpush3.msra.mxu0 %v3427_v63  ;;  %v3420_v52 = vld [vmem:[#allocation3 + $0x88] sm:$0xff] }
 0x3ce   :  { %v3231_v54 = vsel %vm1526_vm7, %v3216_v26, %v3230_v28  ;;  %5458 = vmatprep.subr.mxu0 %v3426_v23 }
 0x3cf   :  { %v3232_v33 = vsel %vm1528_vm8, %v3217_v17, %v3231_v54  ;;  %5459 = vmatpush3.msra.mxu0 %v3426_v23  ;;  %v3419_v17 = vld [vmem:[#allocation3 + $0x80] sm:$0xff]  ;;  %v5382_v23 = vpop.f32.mrf.mxu1 }
 0x3d0   :  { %v7700_v48 = vsel %vm1530_vm9, %v3218_v12, %v3232_v33  ;;  %3791 = vbcast.lane.b32.xlu1 %v7719_v34, 272  ;;  %3724 = vbcast.lane.b32.xlu0 %v7713_v19, 272 }
 0x3d1   :  { %5460 = vmatprep.subr.mxu0 %v3425_v50 }
 0x3d2   :  { %5461 = vmatpush3.msra.mxu0 %v3425_v50 }
 0x3d3   :  { %5462 = vmatprep.subr.mxu0 %v3424_v56 }
 0x3d4   :  { %3921 = vbcast.lane.b32.xlu1 %v7733_v30, 264  ;;  %3917 = vbcast.lane.b32.xlu0 %v7733_v30, 256 }
 0x3d5   :  { %5463 = vmatpush3.msra.mxu0 %v3424_v56 }
 0x3d6   :  { %5464 = vmatprep.subr.mxu0 %v3423_v38 }
 0x3d7   :  { %5465 = vmatpush3.msra.mxu0 %v3423_v38 }
 0x3d8   :  { %3984 = vbcast.lane.b32.xlu1 %v7739_v61, 256  ;;  %3858 = vbcast.lane.b32.xlu0 %v7725_v20, 272 }
 0x3d9   :  { %5466 = vmatprep.subr.mxu0 %v3422_v3 }
 0x3da   :  { %5467 = vmatpush3.msra.mxu0 %v3422_v3 }
 0x3db   :  { %5468 = vmatprep.subr.mxu0 %v3421_v10 }
 0x3dc   :  { %3728 = vbcast.lane.b32.xlu1 %v7713_v19, 280  ;;  %3988 = vbcast.lane.b32.xlu0 %v7739_v61, 264 }
 0x3dd   :  { %5469 = vmatpush3.msra.mxu0 %v3421_v10 }
 0x3de   :  { %5470 = vmatprep.subr.mxu0 %v3420_v52 }
 0x3df   :  { %5471 = vmatpush3.msra.mxu0 %v3420_v52 }
 0x3e0   :  { %3925 = vbcast.lane.b32.xlu1 %v7733_v30, 272  ;;  %3795 = vbcast.lane.b32.xlu0 %v7719_v34, 280 }
 0x3e1   :  { %5472 = vmatprep.subr.mxu0 %v3419_v17 }
 0x3e2   :  { %5473 = vmatpush3.msra.mxu0 %v3419_v17 }
 0x3e4   :  { %4055 = vbcast.lane.b32.xlu1 %v7749_v46, 264  ;;  %4051 = vbcast.lane.b32.xlu0 %v7749_v46, 256 }
 0x3e8   :  { %3992 = vbcast.lane.b32.xlu1 %v7739_v61, 272  ;;  %3862 = vbcast.lane.b32.xlu0 %v7725_v20, 280 }
 0x3ec   :  { %4122 = vbcast.lane.b32.xlu1 %v7757_v40, 264  ;;  %4118 = vbcast.lane.b32.xlu0 %v7757_v40, 256 }
 0x3f0   :  { %3799 = vbcast.lane.b32.xlu1 %v7719_v34, 288  ;;  %3732 = vbcast.lane.b32.xlu0 %v7713_v19, 288 }
 0x3f4   :  { %4059 = vbcast.lane.b32.xlu1 %v7749_v46, 272  ;;  %3929 = vbcast.lane.b32.xlu0 %v7733_v30, 280 }
 0x3f8   :  { %4189 = vbcast.lane.b32.xlu1 %v7767_v55, 264  ;;  %4185 = vbcast.lane.b32.xlu0 %v7767_v55, 256 }
 0x3fc   :  { %3996 = vbcast.lane.b32.xlu1 %v7739_v61, 280  ;;  %3866 = vbcast.lane.b32.xlu0 %v7725_v20, 288 }
 0x400   :  { %3736 = vbcast.lane.b32.xlu1 %v7713_v19, 296  ;;  %4126 = vbcast.lane.b32.xlu0 %v7757_v40, 272 }
 0x404   :  { %3933 = vbcast.lane.b32.xlu1 %v7733_v30, 288  ;;  %3803 = vbcast.lane.b32.xlu0 %v7719_v34, 296 }
 0x408   :  { %4193 = vbcast.lane.b32.xlu1 %v7767_v55, 272  ;;  %4063 = vbcast.lane.b32.xlu0 %v7749_v46, 280 }
 0x40c   :  { %4000 = vbcast.lane.b32.xlu1 %v7739_v61, 288  ;;  %3870 = vbcast.lane.b32.xlu0 %v7725_v20, 296 }
 0x410   :  { %3740 = vbcast.lane.b32.xlu1 %v7713_v19, 304  ;;  %4130 = vbcast.lane.b32.xlu0 %v7757_v40, 280 }
 0x414   :  { %3937 = vbcast.lane.b32.xlu1 %v7733_v30, 296  ;;  %3807 = vbcast.lane.b32.xlu0 %v7719_v34, 304 }
 0x418   :  { %4197 = vbcast.lane.b32.xlu1 %v7767_v55, 280  ;;  %4067 = vbcast.lane.b32.xlu0 %v7749_v46, 288 }
 0x41c   :  { %4004 = vbcast.lane.b32.xlu1 %v7739_v61, 296  ;;  %3874 = vbcast.lane.b32.xlu0 %v7725_v20, 304 }
 0x420   :  { %3744 = vbcast.lane.b32.xlu1 %v7713_v19, 312  ;;  %4134 = vbcast.lane.b32.xlu0 %v7757_v40, 288 }
 0x424   :  { %3941 = vbcast.lane.b32.xlu1 %v7733_v30, 304  ;;  %3811 = vbcast.lane.b32.xlu0 %v7719_v34, 312 }
 0x428   :  { %4201 = vbcast.lane.b32.xlu1 %v7767_v55, 288  ;;  %4071 = vbcast.lane.b32.xlu0 %v7749_v46, 296 }
 0x42c   :  { %4008 = vbcast.lane.b32.xlu1 %v7739_v61, 304  ;;  %3878 = vbcast.lane.b32.xlu0 %v7725_v20, 312 }
 0x430   :  { %3748 = vbcast.lane.b32.xlu1 %v7713_v19, 320  ;;  %4138 = vbcast.lane.b32.xlu0 %v7757_v40, 296 }
 0x434   :  { %3945 = vbcast.lane.b32.xlu1 %v7733_v30, 312  ;;  %3815 = vbcast.lane.b32.xlu0 %v7719_v34, 320 }
 0x436   :  { %v7857_v53 = vpop.permute.xlu1 %3720  ;;  %v7862_v51 = vpop.permute.xlu0 %3716 }
 0x438   :  { %4205 = vbcast.lane.b32.xlu1 %v7767_v55, 296  ;;  %4075 = vbcast.lane.b32.xlu0 %v7749_v46, 304 }
 0x43a   :  { %v7864_v47 = vpop.permute.xlu1 %3787  ;;  %v7868_v37 = vpop.permute.xlu0 %3783 }
 0x43c   :  { %4012 = vbcast.lane.b32.xlu1 %v7739_v61, 312  ;;  %3882 = vbcast.lane.b32.xlu0 %v7725_v20, 320 }
 0x43e   :  { %v7871_v21 = vpop.permute.xlu1 %3854  ;;  %v7876_v62 = vpop.permute.xlu0 %3850 }
 0x440   :  { %3752 = vbcast.lane.b32.xlu1 %v7713_v19, 328  ;;  %4142 = vbcast.lane.b32.xlu0 %v7757_v40, 304 }
 0x442   :  { %v7878_v26 = vpop.permute.xlu1 %3791  ;;  %v7882_v28 = vpop.permute.xlu0 %3724 }
 0x444   :  { %3949 = vbcast.lane.b32.xlu1 %v7733_v30, 320  ;;  %3819 = vbcast.lane.b32.xlu0 %v7719_v34, 328 }
 0x446   :  { %v7885_v12 = vpop.permute.xlu1 %3921  ;;  %v7890_v54 = vpop.permute.xlu0 %3917 }
 0x448   :  { %4209 = vbcast.lane.b32.xlu1 %v7767_v55, 304  ;;  %4079 = vbcast.lane.b32.xlu0 %v7749_v46, 312 }
 0x44a   :  { %v7892_v33 = vpop.permute.xlu1 %3984 }
 0x44c   :  { %4016 = vbcast.lane.b32.xlu1 %v7739_v61, 320  ;;  %3886 = vbcast.lane.b32.xlu0 %v7725_v20, 328 }
 0x44e   :  { %v7899_v13 = vpop.permute.xlu1 %3728 }
 0x450   :  { %3756 = vbcast.lane.b32.xlu1 %v7713_v19, 336  ;;  %4146 = vbcast.lane.b32.xlu0 %v7757_v40, 312 }
 0x452   :  { %v7906_v44 = vpop.permute.xlu1 %3925 }
 0x454   :  { %3953 = vbcast.lane.b32.xlu1 %v7733_v30, 328  ;;  %3823 = vbcast.lane.b32.xlu0 %v7719_v34, 336 }
 0x456   :  { %v7913_v7 = vpop.permute.xlu1 %4055 }
 0x458   :  { %4213 = vbcast.lane.b32.xlu1 %v7767_v55, 312  ;;  %4083 = vbcast.lane.b32.xlu0 %v7749_v46, 320 }
 0x45a   :  { %v7920_v36 = vpop.permute.xlu1 %3992 }
 0x45c   :  { %4020 = vbcast.lane.b32.xlu1 %v7739_v61, 328  ;;  %3890 = vbcast.lane.b32.xlu0 %v7725_v20, 336 }
 0x45e   :  { %v7927_v14 = vpop.permute.xlu1 %4122 }
 0x45f   :  { %9394 = vst [vmem:[#allocation27_spill] sm:$0xff] %v7927_v14 }
 0x460   :  { %3760 = vbcast.lane.b32.xlu1 %v7713_v19, 344  ;;  %4150 = vbcast.lane.b32.xlu0 %v7757_v40, 320 }
 0x462   :  { %v7934_v49 = vpop.permute.xlu1 %3799 }
 0x464   :  { %3957 = vbcast.lane.b32.xlu1 %v7733_v30, 336  ;;  %3827 = vbcast.lane.b32.xlu0 %v7719_v34, 344 }
 0x466   :  { %v7941_v6 = vpop.permute.xlu1 %4059 }
 0x467   :  { %9396 = vst [vmem:[#allocation59_spill] sm:$0xff] %v7941_v6 }
 0x468   :  { %4217 = vbcast.lane.b32.xlu1 %v7767_v55, 320  ;;  %4087 = vbcast.lane.b32.xlu0 %v7749_v46, 328 }
 0x46a   :  { %v7948_v2 = vpop.permute.xlu1 %4189 }
 0x46b   :  { %9398 = vst [vmem:[#allocation54_spill] sm:$0xff] %v7948_v2 }
 0x46c   :  { %v2339_v11 = vpop.f32.mrf.mxu0  ;;  %4024 = vbcast.lane.b32.xlu1 %v7739_v61, 336  ;;  %3894 = vbcast.lane.b32.xlu0 %v7725_v20, 344 }
 0x46d   :  { %v3235_v16 = vmul.f32 %v7700_v48, %v2339_v11  ;;  %v7896_v48 = vpop.permute.xlu0 %3858 }
 0x46e   :  { %v5422_v5 = vpop.f32.mrf.mxu0  ;;  %v7955_v50 = vpop.permute.xlu1 %3996 }
 0x46f   :  { %v7791_v0 = vadd.f32 %v3235_v16, %v9393_v32  ;;  %9400 = vst [vmem:[#allocation78_spill] sm:$0xff] %v7955_v50 }
 0x470   :  { %v2342_v45 = vpop.f32.mrf.mxu0  ;;  %3764 = vbcast.lane.b32.xlu1 %v7713_v19, 352  ;;  %4154 = vbcast.lane.b32.xlu0 %v7757_v40, 328 }
 0x471   :  { %v3237_v24 = vpack.c.bf16 %v7791_v0, %v7791_v0  ;;  %v7904_v60 = vpop.permute.xlu0 %3988 }
 0x472   :  { %v5423_v58 = vpop.f32.mrf.mxu0  ;;  %v7962_v38 = vpop.permute.xlu1 %3736 }
 0x473   :  { %5560 = vmatprep.subr.msk.bf16.mxu1 %vm1616_vm10, %v3237_v24  ;;  %v3319_v42 = vsel %vm1616_vm10, %v3237_v24, 0 }
 0x474   :  { %5425 = vmatpush3.bf16.msra.mxu1 %v3319_v42  ;;  %3961 = vbcast.lane.b32.xlu1 %v7733_v30, 344 }
 0x475   :  { %5498 = vmatprep.subr.bf16.mxu1 %v9306_v25  ;;  %3831 = vbcast.lane.b32.xlu0 %v7719_v34, 352  ;;  %v7910_v35 = vpop.permute.xlu0 %3795 }
 0x477   :  { %5427 = vmatmul.mubr.msk.bf16.vlgmr.msra.gmra.mxu1 %vm152_vm0, %v5586_v39 }
 0x478   :  { %5430 = vmatprep.mubr.msk.bf16.mxu1 %vm152_vm0, %v5587_v43  ;;  %4221 = vbcast.lane.b32.xlu1 %v7767_v55, 328 }
 0x479   :  { %4091 = vbcast.lane.b32.xlu0 %v7749_v46, 336  ;;  %v7918_v57 = vpop.permute.xlu0 %4051 }
 0x47c   :  { %4028 = vbcast.lane.b32.xlu1 %v7739_v61, 344 }
 0x47d   :  { %3898 = vbcast.lane.b32.xlu0 %v7725_v20, 352  ;;  %v7924_v27 = vpop.permute.xlu0 %3862 }
 0x47f   :  { %5431 = vmatmul.mubr.msk.bf16.gmra.mxu1 %vm152_vm0, %v5588_v22 }
 0x480   :  { %5434 = vmatprep.mubr.msk.bf16.mxu1 %vm152_vm0, %v5589_v29  ;;  %3768 = vbcast.lane.b32.xlu1 %v7713_v19, 360 }
 0x481   :  { %4158 = vbcast.lane.b32.xlu0 %v7757_v40, 336  ;;  %v7932_v31 = vpop.permute.xlu0 %4118 }
 0x482   :  { %9395 = vst [vmem:[#allocation61_spill] sm:$0xff] %v7932_v31 }
 0x484   :  { %3965 = vbcast.lane.b32.xlu1 %v7733_v30, 352 }
 0x485   :  { %3835 = vbcast.lane.b32.xlu0 %v7719_v34, 360  ;;  %v7938_v59 = vpop.permute.xlu0 %3732 }
 0x487   :  { %5435 = vmatmul.mubr.msk.bf16.gmra.mxu1 %vm152_vm0, %v5590_v18 }
 0x488   :  { %5438 = vmatprep.mubr.msk.bf16.mxu1 %vm152_vm0, %v5591_v41  ;;  %4225 = vbcast.lane.b32.xlu1 %v7767_v55, 336 }
 0x489   :  { %4095 = vbcast.lane.b32.xlu0 %v7749_v46, 344  ;;  %v7946_v63 = vpop.permute.xlu0 %3929 }
 0x48a   :  { %9397 = vst [vmem:[#allocation21_spill] sm:$0xff] %v7946_v63 }
 0x48c   :  { %4032 = vbcast.lane.b32.xlu1 %v7739_v61, 352 }
 0x48d   :  { %3902 = vbcast.lane.b32.xlu0 %v7725_v20, 360  ;;  %v7952_v9 = vpop.permute.xlu0 %4185 }
 0x48e   :  { %9399 = vst [vmem:[#allocation77_spill] sm:$0xff] %v7952_v9  ;;  %v9419_v9 = vld [vmem:[#allocation33_spill] sm:$0xff] }
 0x48f   :  { %5439 = vmatmul.mubr.msk.bf16.gmra.mxu1 %vm152_vm0, %v5592_v15 }
 0x490   :  { %5514 = vmatprep.mubr.msk.bf16.mxu1 %vm5641_vm1, %v9306_v25  ;;  %3772 = vbcast.lane.b32.xlu1 %v7713_v19, 368  ;;  %v9414_v25 = vld [vmem:[#allocation32_spill] sm:$0xff] }
 0x491   :  { %4162 = vbcast.lane.b32.xlu0 %v7757_v40, 344  ;;  %v7960_v56 = vpop.permute.xlu0 %3866 }
 0x494   :  { %3969 = vbcast.lane.b32.xlu1 %v7733_v30, 360 }
 0x495   :  { %3839 = vbcast.lane.b32.xlu0 %v7719_v34, 368  ;;  %v7966_v1 = vpop.permute.xlu0 %4126 }
 0x496   :  { %9401 = vst [vmem:[#allocation26_spill] sm:$0xff] %v7966_v1 }
 0x498   :  { %4229 = vbcast.lane.b32.xlu1 %v7767_v55, 344 }
 0x499   :  { %4099 = vbcast.lane.b32.xlu0 %v7749_v46, 352  ;;  %v7974_v11 = vpop.permute.xlu0 %3803 }
 0x49c   :  { %4036 = vbcast.lane.b32.xlu1 %v7739_v61, 360 }
 0x49d   :  { %3906 = vbcast.lane.b32.xlu0 %v7725_v20, 368  ;;  %v7980_v32 = vpop.permute.xlu0 %4063 }
 0x49e   :  { %9403 = vst [vmem:[#allocation80_spill] sm:$0xff] %v7980_v32 }
 0x4a0   :  { %3776 = vbcast.lane.b32.xlu1 %v7713_v19, 376  ;;  %v2185_v19 = vpop.f32.mrf.mxu1 }
 0x4a1   :  { %4166 = vbcast.lane.b32.xlu0 %v7757_v40, 352  ;;  %v7984_v58 = vpop.permute.xlu0 %3870 }
 0x4a2   :  { %9405 = vst [vmem:[#allocation24_spill] sm:$0xff] %v7984_v58 }
 0x4a4   :  { %3973 = vbcast.lane.b32.xlu1 %v7733_v30, 368 }
 0x4a5   :  { %3843 = vbcast.lane.b32.xlu0 %v7719_v34, 376  ;;  %v5385_v34 = vpop.f32.mrf.mxu1  ;;  %v7988_v39 = vpop.permute.xlu0 %4130 }
 0x4a6   :  { %9407 = vst [vmem:[#allocation76_spill] sm:$0xff] %v7988_v39  ;;  %v9415_v39 = vmax.f32 %v9414_v25, 0.0  ;;  %v9422_v25 = vld [vmem:[#allocation22_spill] sm:$0xff] }
 0x4a7   :  { %v2195_v8 = vpop.f32.mrf.mxu1 }
 0x4a8   :  { %4233 = vbcast.lane.b32.xlu1 %v7767_v55, 352  ;;  %v2264_v1 = vadd.f32 %v2185_v19, %v9415_v39  ;;  %v9423_v19 = vmax.f32 %v9422_v25, 0.0 }
 0x4a9   :  { %4103 = vbcast.lane.b32.xlu0 %v7749_v46, 360  ;;  %v5388_v4 = vpop.f32.mrf.mxu1  ;;  %v7994_v29 = vpop.permute.xlu0 %3807 }
 0x4aa   :  { %9408 = vst [vmem:[#allocation89_spill] sm:$0xff] %v7994_v29  ;;  %v2267_v39 = vadd.f32 %v5385_v34, %v9423_v19  ;;  %v9429_v34 = vld [vmem:[#allocation51_spill] sm:$0xff]  ;;  %v9431_v19 = vld [vmem:[#allocation40_spill] sm:$0xff] }
 0x4ab   :  { %v9430_v25 = vmax.f32 %v9429_v34, 0.0 }
 0x4ac   :  { %4040 = vbcast.lane.b32.xlu1 %v7739_v61, 368 }
 0x4ad   :  { %3910 = vbcast.lane.b32.xlu0 %v7725_v20, 376  ;;  %v7969_v20 = vpop.permute.xlu1 %3933  ;;  %v8000_v41 = vpop.permute.xlu0 %4067 }
 0x4ae   :  { %9410 = vst [vmem:[#allocation103_spill] sm:$0xff] %v8000_v41  ;;  %v2280_v41 = vmax.f32 %v2264_v1, 0.0 }
 0x4b0   :  { %3977 = vbcast.lane.b32.xlu1 %v7733_v30, 376  ;;  %v2205_v30 = vpop.f32.mrf.mxu1 }
 0x4b1   :  { %4170 = vbcast.lane.b32.xlu0 %v7757_v40, 360  ;;  %v7976_v16 = vpop.permute.xlu1 %4193  ;;  %v8008_v52 = vpop.permute.xlu0 %3874 }
 0x4b2   :  { %9402 = vst [vmem:[#allocation70_spill] sm:$0xff] %v7976_v16  ;;  %v5391_v5 = vpop.f32.mrf.mxu1  ;;  %9412 = vst [vmem:[#allocation117_spill] sm:$0xff] %v8008_v52  ;;  %v9416_v16 = vld [vmem:[#allocation29_spill] sm:$0xff]  ;;  %v9424_v52 = vld [vmem:[#allocation36_spill] sm:$0xff] }
 0x4b3   :  { %v9425_v29 = vmax.f32 %v9424_v52, 0.0 }
 0x4b4   :  { %4237 = vbcast.lane.b32.xlu1 %v7767_v55, 360  ;;  %v2215_v45 = vpop.f32.mrf.mxu1 }
 0x4b5   :  { %4107 = vbcast.lane.b32.xlu0 %v7749_v46, 368  ;;  %v7982_v24 = vpop.permute.xlu1 %4000  ;;  %v8018_v6 = vpop.permute.xlu0 %4134  ;;  %v2270_v52 = vadd.f32 %v2215_v45, %v9430_v25 }
 0x4b6   :  { %9404 = vst [vmem:[#allocation23_spill] sm:$0xff] %v7982_v24  ;;  %v9417_v24 = vmax.f32 %v9416_v16, 0.0  ;;  %9418 = vst [vmem:[#allocation131_spill] sm:$0xff] %v8018_v6 }
 0x4b8   :  { %4174 = vbcast.lane.b32.xlu1 %v7757_v40, 368  ;;  %v2265_v58 = vadd.f32 %v5382_v23, %v9417_v24 }
 0x4b9   :  { %4044 = vbcast.lane.b32.xlu0 %v7739_v61, 376  ;;  %v5394_v61 = vpop.f32.mrf.mxu1  ;;  %v7986_v42 = vpop.permute.xlu1 %3740 }
 0x4ba   :  { %9406 = vst [vmem:[#allocation65_spill] sm:$0xff] %v7986_v42  ;;  %v2281_v2 = vmax.f32 %v2265_v58, 0.0  ;;  %v2268_v42 = vadd.f32 %v2205_v30, %v9425_v29  ;;  %v8028_v24 = vpop.permute.xlu0 %3811 }
 0x4bc   :  { %4241 = vbcast.lane.b32.xlu1 %v7767_v55, 368  ;;  %v2284_v6 = vmax.f32 %v2268_v42, 0.0 }
 0x4bd   :  { %4111 = vbcast.lane.b32.xlu0 %v7749_v46, 376  ;;  %v2225_v46 = vpop.f32.mrf.mxu1  ;;  %v7992_v22 = vpop.permute.xlu1 %3937 }
 0x4bf   :  { %v7990_v43 = vpop.f32.mrf.mxu1 }
 0x4c0   :  { %4245 = vbcast.lane.b32.xlu1 %v7767_v55, 376 }
 0x4c1   :  { %4178 = vbcast.lane.b32.xlu0 %v7757_v40, 376  ;;  %v2235_v55 = vpop.f32.mrf.mxu1  ;;  %v7996_v40 = vpop.permute.xlu1 %4197 }
 0x4c2   :  { %9409 = vst [vmem:[#allocation96_spill] sm:$0xff] %v7996_v40 }
 0x4c3   :  { %v7998_v18 = vpop.f32.mrf.mxu1 }
 0x4c5   :  { %v8002_v15 = vpop.f32.mrf.mxu1  ;;  %v8004_v3 = vpop.permute.xlu1 %4004 }
 0x4c6   :  { %9411 = vst [vmem:[#allocation110_spill] sm:$0xff] %v8004_v3  ;;  %v9420_v3 = vmax.f32 %v9419_v9, 0.0 }
 0x4c7   :  { %v8006_v10 = vpop.f32.mrf.mxu1 }
 0x4c8   :  { %v2266_v32 = vadd.f32 %v2195_v8, %v9420_v3 }
 0x4c9   :  { %v8010_v17 = vpop.permute.xlu1 %3744  ;;  %v8014_v31 = vpop.f32.mrf.mxu1 }
 0x4ca   :  { %9413 = vst [vmem:[#allocation124_spill] sm:$0xff] %v8010_v17  ;;  %v2282_v23 = vmax.f32 %v2266_v32, 0.0 }
 0x4cd   :  { %v8022_v63 = vpop.permute.xlu1 %3941 }
 0x4ce   :  { %9421 = vst [vmem:[#allocation88_spill] sm:$0xff] %v8022_v63  ;;  %v2283_v63 = vmax.f32 %v2267_v39, 0.0 }
 0x4d1   :  { %v8030_v3 = vpop.permute.xlu1 %4201 }
 0x4d2   :  { %9426 = vst [vmem:[#allocation94_spill] sm:$0xff] %v8030_v3 }
 0x537   :  { %v5428_v40 = vpop.f32.mrf.mxu1 }
 0x538   :  { %v3437_v9 = vsub.f32 %v5428_v40, %v2282_v23  ;;  %v9432_v40 = vmax.f32 %v9431_v19, 0.0 }
 0x539   :  { %v3355_v50 = vpop.f32.mrf.mxu1 }
 0x53a   :  { %v3435_v14 = vsub.f32 %v3355_v50, %v2280_v41  ;;  %v9427_v50 = vld [vmem:[#allocation31_spill] sm:$0xff]  ;;  %v2271_v23 = vadd.f32 %v5391_v5, %v9432_v40  ;;  %v9439_v5 = vld [vmem:[#allocation64_spill] sm:$0xff] }
 0x53b   :  { %v5429_v17 = vpop.f32.mrf.mxu1  ;;  %v9428_v41 = vmax.f32 %v9427_v50, 0.0  ;;  %v8040_v50 = vpop.permute.xlu0 %4071  ;;  %v9440_v25 = vmax.f32 %v9439_v5, 0.0 }
 0x53c   :  { %5474 = vmatprep.mubr.f32.mxu0 %v3435_v14  ;;  %v3438_v14 = vsub.f32 %v5429_v17, %v2283_v63  ;;  %9435 = vst [vmem:[#allocation101_spill] sm:$0xff] %v8040_v50  ;;  %v9437_v17 = vld [vmem:[#allocation55_spill] sm:$0xff] }
 0x53d   :  { %v3358_v1 = vpop.f32.mrf.mxu1  ;;  %v2269_v58 = vadd.f32 %v5388_v4, %v9428_v41  ;;  %v2286_v4 = vmax.f32 %v2270_v52, 0.0  ;;  %v9438_v41 = vmax.f32 %v9437_v17, 0.0 }
 0x53e   :  { %v3436_v16 = vsub.f32 %v3358_v1, %v2281_v2  ;;  %v9433_v1 = vld [vmem:[#allocation60_spill] sm:$0xff] }
 0x53f   :  { %v5432_v8 = vpop.f32.mrf.mxu1  ;;  %v2285_v29 = vmax.f32 %v2269_v58, 0.0  ;;  %v9434_v3 = vmax.f32 %v9433_v1, 0.0  ;;  %v2273_v58 = vadd.f32 %v5394_v61, %v9438_v41  ;;  %v9443_v61 = vld [vmem:[#allocation69_spill] sm:$0xff] }
 0x540   :  { %5475 = vmatmul.mubr.f32.vlgmr.msra.gmra.mxu0 %v3436_v16  ;;  %v8042_v16 = vpop.permute.xlu1 %4008  ;;  %v9444_v1 = vmax.f32 %v9443_v61, 0.0 }
 0x541   :  { %v3371_v30 = vpop.f32.mrf.mxu1  ;;  %5477 = vmatprep.mubr.f32.mxu0 %v3437_v9  ;;  %v2272_v39 = vadd.f32 %v2225_v46, %v9434_v3  ;;  %9436 = vst [vmem:[#allocation86_spill] sm:$0xff] %v8042_v16  ;;  %v3441_v9 = vsub.f32 %v5432_v8, %v2286_v4  ;;  %v2274_v46 = vadd.f32 %v2235_v55, %v9440_v25  ;;  %v2289_v8 = vmax.f32 %v2273_v58, 0.0 }
 0x542   :  { %v3439_v32 = vsub.f32 %v3371_v30, %v2284_v6  ;;  %v2287_v6 = vmax.f32 %v2271_v23, 0.0 }
 0x543   :  { %v5433_v2 = vpop.f32.mrf.mxu1  ;;  %v2288_v34 = vmax.f32 %v2272_v39, 0.0  ;;  %v2276_v39 = vadd.f32 %v8002_v15, %v9444_v1  ;;  %v2290_v55 = vmax.f32 %v2274_v46, 0.0 }
 0x544   :  { %5478 = vmatmul.mubr.f32.gmra.mxu0 %v3438_v14  ;;  %v3442_v30 = vsub.f32 %v5433_v2, %v2287_v6  ;;  %v8048_v14 = vpop.permute.xlu0 %3878  ;;  %v8050_v19 = vpop.permute.xlu1 %3748  ;;  %v9445_v6 = vld [vmem:[#allocation67_spill] sm:$0xff] }
 0x545   :  { %v3374_v42 = vpop.f32.mrf.mxu1  ;;  %5480 = vmatprep.mubr.f32.mxu0 %v3439_v32  ;;  %v9446_v17 = vmax.f32 %v9445_v6, 0.0  ;;  %v2292_v58 = vmax.f32 %v2276_v39, 0.0 }
 0x546   :  { %v3440_v45 = vsub.f32 %v3374_v42, %v2285_v29  ;;  %v9441_v29 = vld [vmem:[#allocation62_spill] sm:$0xff] }
 0x547   :  { %v5436_v63 = vpop.f32.mrf.mxu1  ;;  %v9442_v40 = vmax.f32 %v9441_v29, 0.0  ;;  %v2277_v41 = vadd.f32 %v7998_v18, %v9446_v17 }
 0x548   :  { %5481 = vmatmul.mubr.f32.gmra.mxu0 %v3440_v45  ;;  %v3445_v42 = vsub.f32 %v5436_v63, %v2290_v55  ;;  %v8066_v46 = vpop.permute.xlu1 %3945 }
 0x549   :  { %v3387_v3 = vpop.f32.mrf.mxu1  ;;  %5483 = vmatprep.mubr.f32.mxu0 %v3441_v9  ;;  %v2275_v23 = vadd.f32 %v7990_v43, %v9442_v40  ;;  %v9447_v43 = vld [vmem:[#allocation75_spill] sm:$0xff]  ;;  %9449 = vst [vmem:[#allocation79_spill] sm:$0xff] %v8066_v46 }
 0x54a   :  { %v3443_v52 = vsub.f32 %v3387_v3, %v2288_v34  ;;  %v8061_v34 = vpop.permute.xlu0 %4138  ;;  %v9448_v5 = vmax.f32 %v9447_v43, 0.0 }
 0x54b   :  { %v5437_v32 = vpop.f32.mrf.mxu1  ;;  %v2291_v9 = vmax.f32 %v2275_v23, 0.0 }
 0x54c   :  { %5484 = vmatmul.mubr.f32.gmra.mxu0 %v3442_v30  ;;  %v2278_v15 = vadd.f32 %v8014_v31, %v9448_v5  ;;  %v8073_v39 = vpop.permute.xlu1 %4205 }
 0x54d   :  { %v3390_v4 = vpop.f32.mrf.mxu1  ;;  %5486 = vmatprep.mubr.f32.mxu0 %v3443_v52  ;;  %v3446_v3 = vsub.f32 %v5437_v32, %v2291_v9  ;;  %v2293_v52 = vmax.f32 %v2277_v41, 0.0 }
 0x54e   :  { %v3444_v2 = vsub.f32 %v3390_v4, %v2289_v8  ;;  %v9450_v8 = vld [vmem:[#allocation71_spill] sm:$0xff]  ;;  %v2294_v40 = vmax.f32 %v2278_v15, 0.0  ;;  %v8071_v1 = vpop.permute.xlu0 %3815 }
 0x54f   :  { %v5440_v45 = vpop.f32.mrf.mxu1  ;;  %v9451_v29 = vmax.f32 %v9450_v8, 0.0 }
 0x550   :  { %5487 = vmatmul.mubr.f32.gmra.mxu0 %v3444_v2  ;;  %v3449_v31 = vsub.f32 %v5440_v45, %v2294_v40 }
 0x551   :  { %v3403_v25 = vpop.f32.mrf.mxu1  ;;  %5489 = vmatprep.mubr.f32.mxu0 %v3445_v42  ;;  %v2279_v18 = vadd.f32 %v8006_v10, %v9451_v29  ;;  %v8078_v10 = vpop.permute.xlu1 %4012 }
 0x552   :  { %v3447_v63 = vsub.f32 %v3403_v25, %v2292_v58  ;;  %v8075_v4 = vpop.permute.xlu0 %4075  ;;  %9453 = vst [vmem:[#allocation108_spill] sm:$0xff] %v8078_v10 }
 0x553   :  { %v5441_v30 = vpop.f32.mrf.mxu1  ;;  %v2295_v55 = vmax.f32 %v2279_v18, 0.0  ;;  %9452 = vst [vmem:[#allocation95_spill] sm:$0xff] %v8075_v4 }
 0x554   :  { %5490 = vmatmul.mubr.f32.gmra.mxu0 %v3446_v3 }
 0x555   :  { %v3406_v23 = vpop.f32.mrf.mxu1  ;;  %5492 = vmatprep.mubr.f32.mxu0 %v3447_v63  ;;  %v3450_v32 = vsub.f32 %v5441_v30, %v2295_v55  ;;  %v8082_v42 = vpop.permute.xlu1 %3752 }
 0x556   :  { %v3448_v61 = vsub.f32 %v3406_v23, %v2293_v52  ;;  %v8080_v2 = vpop.permute.xlu0 %3882  ;;  %9455 = vst [vmem:[#allocation91_spill] sm:$0xff] %v8082_v42 }
 0x557   :  { %9454 = vst [vmem:[#allocation82_spill] sm:$0xff] %v8080_v2 }
 0x558   :  { %5493 = vmatmul.mubr.f32.gmra.mxu0 %v3448_v61 }
 0x559   :  { %5495 = vmatprep.mubr.f32.mxu0 %v3449_v31  ;;  %v8086_v45 = vpop.permute.xlu1 %3949 }
 0x55a   :  { %v8084_v9 = vpop.permute.xlu0 %4142  ;;  %9456 = vst [vmem:[#allocation115_spill] sm:$0xff] %v8086_v45  ;;  %v9494_v45 = vld [vmem:[#allocation57_spill] sm:$0xff] }
 0x55c   :  { %5496 = vmatmul.mubr.f32.gmra.mxu0 %v3450_v32 }
 0x55d   :  { %4680 = vmatprep.mubr.f32.mxu0 %v7791_v0  ;;  %v8090_v17 = vpop.permute.xlu1 %4209 }
 0x55e   :  { %v8088_v6 = vpop.permute.xlu0 %3819 }
 0x55f   :  { %9457 = vst [vmem:[#allocation122_spill] sm:$0xff] %v8088_v6 }
 0x561   :  { %v8094_v58 = vpop.permute.xlu1 %4016 }
 0x562   :  { %v8092_v41 = vpop.permute.xlu0 %4079  ;;  %9459 = vst [vmem:[#allocation97_spill] sm:$0xff] %v8094_v58 }
 0x563   :  { %9458 = vst [vmem:[#allocation129_spill] sm:$0xff] %v8092_v41 }
 0x565   :  { %v8098_v0 = vpop.permute.xlu1 %3756 }
 0x566   :  { %v8096_v43 = vpop.permute.xlu0 %3886  ;;  %9461 = vst [vmem:[#allocation104_spill] sm:$0xff] %v8098_v0 }
 0x567   :  { %9460 = vst [vmem:[#allocation73_spill] sm:$0xff] %v8096_v43 }
 0x569   :  { %v8102_v15 = vpop.permute.xlu1 %3953 }
 0x56a   :  { %v8100_v5 = vpop.permute.xlu0 %4146  ;;  %9462 = vst [vmem:[#allocation83_spill] sm:$0xff] %v8102_v15 }
 0x56d   :  { %v8106_v3 = vpop.permute.xlu1 %4213 }
 0x56e   :  { %v8104_v25 = vpop.permute.xlu0 %3823 }
 0x56f   :  { %9463 = vst [vmem:[#allocation111_spill] sm:$0xff] %v8104_v25 }
 0x571   :  { %v8110_v30 = vpop.permute.xlu1 %4020 }
 0x572   :  { %v8108_v63 = vpop.permute.xlu0 %4083  ;;  %9465 = vst [vmem:[#allocation84_spill] sm:$0xff] %v8110_v30 }
 0x573   :  { %9464 = vst [vmem:[#allocation118_spill] sm:$0xff] %v8108_v63 }
 0x575   :  { %v8114_v8 = vpop.permute.xlu1 %3760 }
 0x576   :  { %v8112_v52 = vpop.permute.xlu0 %3890  ;;  %9467 = vst [vmem:[#allocation125_spill] sm:$0xff] %v8114_v8 }
 0x577   :  { %9466 = vst [vmem:[#allocation92_spill] sm:$0xff] %v8112_v52 }
 0x579   :  { %v8118_v18 = vpop.permute.xlu1 %3957 }
 0x57a   :  { %v8116_v29 = vpop.permute.xlu0 %4150  ;;  %9468 = vst [vmem:[#allocation132_spill] sm:$0xff] %v8118_v18  ;;  %v4596_v18 = vld [vmem:[%s8882_s11 + $0xe0] sm:$0xff] }
 0x57d   :  { %v8122_v23 = vpop.permute.xlu1 %4217 }
 0x57e   :  { %v8120_v40 = vpop.permute.xlu0 %3827 }
 0x57f   :  { %9469 = vst [vmem:[#allocation100_spill] sm:$0xff] %v8120_v40 }
 0x581   :  { %v8126_v31 = vpop.permute.xlu1 %4024 }
 0x582   :  { %v8124_v61 = vpop.permute.xlu0 %4087  ;;  %9471 = vst [vmem:[#allocation72_spill] sm:$0xff] %v8126_v31 }
 0x583   :  { %9470 = vst [vmem:[#allocation107_spill] sm:$0xff] %v8124_v61 }
 0x585   :  { %v8130_v32 = vpop.permute.xlu1 %3764 }
 0x586   :  { %v8128_v55 = vpop.permute.xlu0 %3894  ;;  %9473 = vst [vmem:[#allocation85_spill] sm:$0xff] %v8130_v32 }
 0x587   :  { %9472 = vst [vmem:[#allocation81_spill] sm:$0xff] %v8128_v55  ;;  %v9495_v55 = vld [vmem:[#allocation56_spill] sm:$0xff] }
 0x589   :  { %v8134_v63 = vpop.permute.xlu1 %3961 }
 0x58a   :  { %v8132_v25 = vpop.permute.xlu0 %4154  ;;  %9474 = vst [vmem:[#allocation102_spill] sm:$0xff] %v8134_v63 }
 0x58d   :  { %v8138_v6 = vpop.permute.xlu1 %4221 }
 0x58e   :  { %v8136_v41 = vpop.permute.xlu0 %3831 }
 0x58f   :  { %9475 = vst [vmem:[#allocation109_spill] sm:$0xff] %v8136_v41 }
 0x591   :  { %v8142_v40 = vpop.permute.xlu1 %4028 }
 0x592   :  { %v8140_v8 = vpop.permute.xlu0 %4091  ;;  %9477 = vst [vmem:[#allocation114_spill] sm:$0xff] %v8142_v40 }
 0x593   :  { %9476 = vst [vmem:[#allocation90_spill] sm:$0xff] %v8140_v8 }
 0x595   :  { %v8146_v61 = vpop.permute.xlu1 %3768 }
 0x596   :  { %v8144_v4 = vpop.permute.xlu0 %3898  ;;  %9479 = vst [vmem:[#allocation93_spill] sm:$0xff] %v8146_v61 }
 0x597   :  { %9478 = vst [vmem:[#allocation121_spill] sm:$0xff] %v8144_v4 }
 0x599   :  { %v8150_v31 = vpop.permute.xlu1 %3965 }
 0x59a   :  { %v8148_v50 = vpop.permute.xlu0 %4158  ;;  %9480 = vst [vmem:[#allocation99_spill] sm:$0xff] %v8150_v31 }
 0x59d   :  { %v8154_v30 = vpop.permute.xlu1 %4225 }
 0x59e   :  { %v8152_v32 = vpop.permute.xlu0 %3835 }
 0x59f   :  { %9481 = vst [vmem:[#allocation98_spill] sm:$0xff] %v8152_v32  ;;  %v4599_v32 = vld [vmem:[%s8882_s11 + $0xf8] sm:$0xff] }
 0x5a0   :  { %5123 = vmatprep.subr.mxu0 %v4599_v32  ;;  %v4580_v32 = vld [vmem:[%s8882_s11 + $0x60] sm:$0xff] }
 0x5a1   :  { %v8158_v10 = vpop.permute.xlu1 %4032 }
 0x5a2   :  { %v8156_v58 = vpop.permute.xlu0 %4095  ;;  %9483 = vst [vmem:[#allocation112_spill] sm:$0xff] %v8158_v10  ;;  %v4598_v10 = vld [vmem:[%s8882_s11 + $0xf0] sm:$0xff] }
 0x5a3   :  { %9482 = vst [vmem:[#allocation105_spill] sm:$0xff] %v8156_v58  ;;  %v4583_v58 = vld [vmem:[%s8882_s11 + $0x78] sm:$0xff] }
 0x5a4   :  { %5124 = vmatpush3.msra.mxu0 %v4583_v58 }
 0x5a5   :  { %v8162_v8 = vpop.permute.xlu1 %3772  ;;  %5125 = vmatprep.subr.mxu0 %v4598_v10  ;;  %v4595_v10 = vld [vmem:[%s8882_s11 + $0xd8] sm:$0xff] }
 0x5a6   :  { %v8160_v63 = vpop.permute.xlu0 %3902  ;;  %9485 = vst [vmem:[#allocation106_spill] sm:$0xff] %v8162_v8  ;;  %v4582_v8 = vld [vmem:[%s8882_s11 + $0x70] sm:$0xff] }
 0x5a7   :  { %9484 = vst [vmem:[#allocation128_spill] sm:$0xff] %v8160_v63  ;;  %5126 = vmatpush3.msra.mxu0 %v4582_v8  ;;  %v4579_v8 = vld [vmem:[%s8882_s11 + $0x58] sm:$0xff] }
 0x5a9   :  { %v8166_v16 = vpop.permute.xlu1 %3969 }
 0x5aa   :  { %v8164_v40 = vpop.permute.xlu0 %4162  ;;  %9486 = vst [vmem:[#allocation17_spill] sm:$0xff] %v8166_v16  ;;  %v4581_v16 = vld [vmem:[%s8882_s11 + $0x68] sm:$0xff] }
 0x5ad   :  { %v8179_v31 = vpop.permute.xlu1 %4229 }
 0x5ae   :  { %v8168_v61 = vpop.permute.xlu0 %3839 }
 0x5af   :  { %9487 = vst [vmem:[#allocation74_spill] sm:$0xff] %v8168_v61  ;;  %v4597_v61 = vld [vmem:[%s8882_s11 + $0xe8] sm:$0xff] }
 0x5b0   :  { %5127 = vmatprep.subr.mxu0 %v4597_v61  ;;  %v4594_v61 = vld [vmem:[%s8882_s11 + $0xd0] sm:$0xff] }
 0x5b1   :  { %5128 = vmatpush3.msra.mxu0 %v4581_v16  ;;  %v8201_v15 = vpop.permute.xlu1 %4036  ;;  %v4578_v16 = vld [vmem:[%s8882_s11 + $0x50] sm:$0xff] }
 0x5b2   :  { %v8196_v58 = vpop.permute.xlu0 %4099  ;;  %9489 = vst [vmem:[#allocation113_spill] sm:$0xff] %v8201_v15  ;;  %5129 = vmatprep.subr.mxu0 %v4596_v18  ;;  %v4577_v18 = vld [vmem:[%s8882_s11 + $0x48] sm:$0xff] }
 0x5b3   :  { %9488 = vst [vmem:[#allocation35_spill] sm:$0xff] %v8196_v58  ;;  %5130 = vmatpush3.msra.mxu0 %v4580_v32  ;;  %v4593_v58 = vld [vmem:[%s8882_s11 + $0xc8] sm:$0xff] }
 0x5b4   :  { %5131 = vmatprep.subr.mxu0 %v4595_v10  ;;  %v4592_v10 = vld [vmem:[%s8882_s11 + $0xc0] sm:$0xff] }
 0x5b5   :  { %5132 = vmatpush3.msra.mxu0 %v4579_v8  ;;  %v8223_v15 = vpop.permute.xlu1 %3776  ;;  %v4576_v8 = vld [vmem:[%s8882_s11 + $0x40] sm:$0xff] }
 0x5b6   :  { %5133 = vmatprep.subr.mxu0 %v4594_v61  ;;  %v8218_v32 = vpop.permute.xlu0 %3906  ;;  %9491 = vst [vmem:[#allocation66_spill] sm:$0xff] %v8223_v15  ;;  %v4591_v61 = vld [vmem:[%s8882_s11 + $0xb8] sm:$0xff]  ;;  %v4590_v15 = vld [vmem:[%s8882_s11 + $0xb0] sm:$0xff] }
 0x5b7   :  { %9490 = vst [vmem:[#allocation68_spill] sm:$0xff] %v8218_v32  ;;  %5134 = vmatpush3.msra.mxu0 %v4578_v16  ;;  %v4575_v16 = vld [vmem:[%s8882_s11 + $0x38] sm:$0xff] }
 0x5b8   :  { %5135 = vmatprep.subr.mxu0 %v4593_v58  ;;  %v4574_v58 = vld [vmem:[%s8882_s11 + $0x30] sm:$0xff] }
 0x5b9   :  { %5136 = vmatpush3.msra.mxu0 %v4577_v18  ;;  %v8245_v32 = vpop.permute.xlu1 %3973 }
 0x5ba   :  { %5137 = vmatprep.subr.mxu0 %v4592_v10  ;;  %v8240_v18 = vpop.permute.xlu0 %4166  ;;  %v4589_v10 = vld [vmem:[%s8882_s11 + $0xa8] sm:$0xff]  ;;  %9492 = vst [vmem:[#allocation30_spill] sm:$0xff] %v8245_v32  ;;  %v4587_v32 = vld [vmem:[%s8882_s11 + $0x98] sm:$0xff] }
 0x5bb   :  { %5138 = vmatpush3.msra.mxu0 %v4576_v8  ;;  %v4573_v8 = vld [vmem:[%s8882_s11 + $0x28] sm:$0xff] }
 0x5bc   :  { %5139 = vmatprep.subr.mxu0 %v4591_v61  ;;  %v4588_v61 = vld [vmem:[%s8882_s11 + $0xa0] sm:$0xff] }
 0x5bd   :  { %5140 = vmatpush3.msra.mxu0 %v4575_v16  ;;  %v4572_v16 = vld [vmem:[%s8882_s11 + $0x20] sm:$0xff]  ;;  %v8267_v63 = vpop.permute.xlu1 %4233 }
 0x5be   :  { %5141 = vmatprep.subr.mxu0 %v4590_v15  ;;  %v4571_v15 = vld [vmem:[%s8882_s11 + $0x18] sm:$0xff] }
 0x5bf   :  { %5142 = vmatpush3.msra.mxu0 %v4574_v58  ;;  %v8262_v58 = vpop.permute.xlu0 %3843 }
 0x5c0   :  { %5143 = vmatprep.subr.mxu0 %v4589_v10  ;;  %9493 = vst [vmem:[#allocation137_spill] sm:$0xff] %v8262_v58  ;;  %v4586_v10 = vld [vmem:[%s8882_s11 + $0x90] sm:$0xff] }
 0x5c1   :  { %5144 = vmatpush3.msra.mxu0 %v4573_v8  ;;  %v4570_v8 = vld [vmem:[%s8882_s11 + $0x10] sm:$0xff]  ;;  %v8283_v52 = vpop.permute.xlu1 %4040 }
 0x5c2   :  { %5145 = vmatprep.subr.mxu0 %v4588_v61  ;;  %v4585_v61 = vld [vmem:[%s8882_s11 + $0x88] sm:$0xff]  ;;  %9497 = vst [vmem:[#allocation28_spill] sm:$0xff] %v8283_v52 }
 0x5c3   :  { %5146 = vmatpush3.msra.mxu0 %v4572_v16  ;;  %v8279_v42 = vpop.permute.xlu0 %4103 }
 0x5c4   :  { %5147 = vmatprep.subr.mxu0 %v4587_v32  ;;  %9496 = vst [vmem:[#allocation25_spill] sm:$0xff] %v8279_v42 }
 0x5c5   :  { %5148 = vmatpush3.msra.mxu0 %v4571_v15 }
 0x5c6   :  { %5149 = vmatprep.subr.mxu0 %v4586_v10 }
 0x5c7   :  { %5150 = vmatpush3.msra.mxu0 %v4570_v8  ;;  %v8319_v2 = vpop.permute.xlu0 %3910 }
 0x5c8   :  { %5151 = vmatprep.subr.mxu0 %v4585_v61 }
 0x600   :  { %v5476_v4 = vpop.f32.mrf.mxu0 }
 0x601   :  { %v3597_v58 = vadd.f32 %v5476_v4, %v9494_v45 }
 0x602   :  { %v3517_v16 = vpop.f32.mrf.mxu0 }
 0x603   :  { %v8276_v46 = vmax.f32 %v3597_v58, 0.0  ;;  %v3596_v0 = vadd.f32 %v3517_v16, %v9495_v55  ;;  %v9498_v58 = vld [vmem:[#allocation53_spill] sm:$0xff]  ;;  %v9500_v16 = vld [vmem:[#allocation52_spill] sm:$0xff] }
 0x604   :  { %v5479_v32 = vpop.f32.mrf.mxu0 }
 0x605   :  { %v4248_v15 = vmul.f32 %v7857_v53, %v8276_v46  ;;  %v4264_v43 = vmul.f32 %v7864_v47, %v8276_v46  ;;  %v4280_v4 = vmul.f32 %v7871_v21, %v8276_v46  ;;  %v8289_v45 = vmax.f32 %v3596_v0, 0.0 }
 0x606   :  { %v3599_v10 = vadd.f32 %v5479_v32, %v9498_v58  ;;  %v3527_v55 = vpop.f32.mrf.mxu0  ;;  %v4296_v8 = vmul.f32 %v7885_v12, %v8276_v46  ;;  %v4312_v61 = vmul.f32 %v7904_v60, %v8276_v46  ;;  %v8298_v53 = vmul.f32 %v7913_v7, %v8276_v46 }
 0x607   :  { %v3598_v47 = vadd.f32 %v3527_v55, %v9500_v16  ;;  %v4247_v21 = vmul.f32 %v7862_v51, %v8289_v45  ;;  %v4263_v0 = vmul.f32 %v7868_v37, %v8289_v45  ;;  %v4279_v32 = vmul.f32 %v7876_v62, %v8289_v45 }
 0x608   :  { %9499 = vst [vmem:[#allocation34_spill] sm:$0xff] %v8298_v53  ;;  %v4295_v12 = vmul.f32 %v7890_v54, %v8289_v45  ;;  %v5482_v58 = vpop.f32.mrf.mxu0  ;;  %v4311_v60 = vmul.f32 %v7892_v33, %v8289_v45  ;;  %v8313_v7 = vmul.f32 %v7918_v57, %v8289_v45  ;;  %v8315_v55 = vmax.f32 %v3599_v10, 0.0  ;;  %v8323_v33 = vpop.permute.xlu1 %3977 }
 0x609   :  { %v8317_v51 = vmax.f32 %v3598_v47, 0.0  ;;  %v4375_v16 = vmax.f32 %v4247_v21, %v4248_v15  ;;  %v4396_v37 = vmax.f32 %v4263_v0, %v4264_v43  ;;  %v4417_v42 = vmax.f32 %v4279_v32, %v4280_v4  ;;  %9502 = vst [vmem:[#allocation63_spill] sm:$0xff] %v8323_v33  ;;  %v9504_v0 = vld [vmem:[#allocation49_spill] sm:$0xff]  ;;  %v8352_v33 = vpop.permute.xlu0 %4170 }
 0x60a   :  { %9501 = vst [vmem:[#allocation138_spill] sm:$0xff] %v8313_v7  ;;  %v4438_v52 = vmax.f32 %v4295_v12, %v4296_v8  ;;  %v3537_v62 = vpop.f32.mrf.mxu0  ;;  %v4459_v54 = vmax.f32 %v4311_v60, %v4312_v61  ;;  %v4250_v57 = vmul.f32 %v7899_v13, %v8315_v55  ;;  %v4266_v10 = vmul.f32 %v7910_v35, %v8315_v55  ;;  %v9503_v35 = vld [vmem:[#allocation50_spill] sm:$0xff] }
 0x60b   :  { %v4249_v43 = vmul.f32 %v7882_v28, %v8317_v51  ;;  %v4265_v15 = vmul.f32 %v7878_v26, %v8317_v51  ;;  %v4281_v4 = vmul.f32 %v7896_v48, %v8317_v51  ;;  %v4297_v8 = vmul.f32 %v7906_v44, %v8317_v51 }
 0x60c   :  { %v5485_v47 = vpop.f32.mrf.mxu0  ;;  %v4282_v61 = vmul.f32 %v7924_v27, %v8315_v55  ;;  %v4313_v13 = vmul.f32 %v7920_v36, %v8317_v51  ;;  %v3601_v21 = vadd.f32 %v5482_v58, %v9503_v35  ;;  %v3600_v32 = vadd.f32 %v3537_v62, %v9504_v0  ;;  %v9507_v27 = vld [vmem:[#allocation48_spill] sm:$0xff]  ;;  %v9508_v0 = vld [vmem:[#allocation47_spill] sm:$0xff] }
 0x60d   :  { %v4376_v12 = vmax.f32 %v4375_v16, %v4249_v43  ;;  %v4397_v60 = vmax.f32 %v4396_v37, %v4265_v15  ;;  %v4418_v26 = vmax.f32 %v4417_v42, %v4281_v4  ;;  %v8343_v41 = vmax.f32 %v4438_v52, %v4297_v8  ;;  %v8355_v37 = vpop.permute.xlu1 %4237 }
 0x60e   :  { %v3547_v28 = vpop.f32.mrf.mxu0  ;;  %v8345_v48 = vmax.f32 %v4459_v54, %v4313_v13  ;;  %v8347_v53 = vmax.f32 %v3601_v21, 0.0  ;;  %v8349_v44 = vmax.f32 %v3600_v32, 0.0  ;;  %v3603_v7 = vadd.f32 %v5485_v47, %v9507_v27  ;;  %v9512_v21 = vld [vmem:[#allocation89_spill] sm:$0xff] }
 0x60f   :  { %9505 = vst [vmem:[#allocation37_spill] sm:$0xff] %v8343_v41  ;;  %v4377_v58 = vmax.f32 %v4376_v12, %v4250_v57  ;;  %v4398_v35 = vmax.f32 %v4397_v60, %v4266_v10  ;;  %v4419_v62 = vmax.f32 %v4418_v26, %v4282_v61  ;;  %v3602_v16 = vadd.f32 %v3547_v28, %v9508_v0  ;;  %v9513_v28 = vld [vmem:[#allocation117_spill] sm:$0xff]  ;;  %v9535_v41 = vld [vmem:[#allocation38_spill] sm:$0xff] }
 0x610   :  { %9506 = vst [vmem:[#allocation135_spill] sm:$0xff] %v8345_v48  ;;  %v5488_v36 = vpop.f32.mrf.mxu0  ;;  %v8359_v42 = vmul.f32 %v7992_v22, %v8347_v53  ;;  %v4251_v54 = vmul.f32 %v7938_v59, %v8349_v44  ;;  %v4267_v47 = vmul.f32 %v7934_v49, %v8349_v44  ;;  %v4283_v57 = vmul.f32 %v7960_v56, %v8349_v44  ;;  %v9515_v0 = vld [vmem:[#allocation45_spill] sm:$0xff] }
 0x611   :  { %v8369_v10 = vmul.f32 %v7969_v20, %v8349_v44  ;;  %v4252_v43 = vmul.f32 %v7962_v38, %v8347_v53  ;;  %v4268_v22 = vmul.f32 %v7974_v11, %v8347_v53  ;;  %v8375_v15 = vmax.f32 %v3603_v7, 0.0  ;;  %v9510_v38 = vld [vmem:[#allocation65_spill] sm:$0xff]  ;;  %v8389_v11 = vpop.permute.xlu0 %4107  ;;  %v8397_v27 = vpop.permute.xlu1 %4174 }
 0x612   :  { %v3557_v52 = vpop.f32.mrf.mxu0  ;;  %v8377_v4 = vmax.f32 %v3602_v16, 0.0  ;;  %v4378_v8 = vmax.f32 %v4377_v58, %v4251_v54  ;;  %v4399_v56 = vmax.f32 %v4398_v35, %v4267_v47  ;;  %v8381_v61 = vmax.f32 %v4419_v62, %v4283_v57  ;;  %9511 = vst [vmem:[#allocation120_spill] sm:$0xff] %v8389_v11  ;;  %v9516_v47 = vld [vmem:[#allocation54_spill] sm:$0xff]  ;;  %v9527_v11 = vld [vmem:[#allocation77_spill] sm:$0xff] }
 0x613   :  { %v8385_v20 = vmul.f32 %v8048_v14, %v8375_v15  ;;  %v3604_v16 = vadd.f32 %v3557_v52, %v9515_v0  ;;  %v4360_v57 = vmul.f32 %v9516_v47, %v8276_v46  ;;  %v9524_v52 = vld [vmem:[#allocation80_spill] sm:$0xff]  ;;  %v9525_v0 = vld [vmem:[#allocation43_spill] sm:$0xff]  ;;  %v4359_v48 = vmul.f32 %v9527_v11, %v8289_v45 }
 0x614   :  { %v5491_v59 = vpop.f32.mrf.mxu0  ;;  %9509 = vst [vmem:[#allocation134_spill] sm:$0xff] %v8381_v61  ;;  %v4253_v13 = vmul.f32 %v9510_v38, %v8377_v4  ;;  %v4269_v32 = vmul.f32 %v9512_v21, %v8377_v4  ;;  %v8395_v12 = vmul.f32 %v9513_v28, %v8377_v4  ;;  %v4379_v60 = vmax.f32 %v4378_v8, %v4252_v43  ;;  %v9517_v38 = vld [vmem:[#allocation27_spill] sm:$0xff]  ;;  %v9523_v28 = vld [vmem:[#allocation44_spill] sm:$0xff] }
 0x615   :  { %v4400_v26 = vmax.f32 %v4399_v56, %v4268_v22  ;;  %v4344_v43 = vmul.f32 %v9517_v38, %v8276_v46  ;;  %v9518_v22 = vld [vmem:[#allocation21_spill] sm:$0xff]  ;;  %v9520_v56 = vld [vmem:[#allocation78_spill] sm:$0xff]  ;;  %v8425_v49 = vpop.permute.xlu0 %4044 }
 0x616   :  { %v3567_v7 = vpop.f32.mrf.mxu0  ;;  %v8401_v35 = vmax.f32 %v4379_v60, %v4253_v13  ;;  %v8412_v8 = vmul.f32 %v9518_v22, %v8315_v55  ;;  %v8416_v21 = vmul.f32 %v9520_v56, %v8315_v55  ;;  %v9522_v13 = vld [vmem:[#allocation46_spill] sm:$0xff]  ;;  %v3607_v60 = vadd.f32 %v5491_v59, %v9523_v28  ;;  %v9528_v56 = vld [vmem:[#allocation59_spill] sm:$0xff]  ;;  %v9532_v28 = vld [vmem:[#allocation41_spill] sm:$0xff] }
 0x617   :  { %v8403_v62 = vmax.f32 %v4400_v26, %v4269_v32  ;;  %v3605_v32 = vadd.f32 %v5488_v36, %v9522_v13  ;;  %v8422_v26 = vmul.f32 %v9524_v52, %v8315_v55  ;;  %v3606_v47 = vadd.f32 %v3567_v7, %v9525_v0  ;;  %v9526_v38 = vld [vmem:[#allocation42_spill] sm:$0xff]  ;;  %v9530_v36 = vld [vmem:[#allocation24_spill] sm:$0xff]  ;;  %v4242_v52 = vpop.permute.xlu1 %4241  ;;  %v9533_v0 = vld [vmem:[#allocation23_spill] sm:$0xff] }
 0x618   :  { %v5494_v58 = vpop.f32.mrf.mxu0  ;;  %9519 = vst [vmem:[#allocation19_spill] sm:$0xff] %v8412_v8  ;;  %9521 = vst [vmem:[#allocation116_spill] sm:$0xff] %v8416_v21  ;;  %v8432_v21 = vmul.f32 %v9528_v56, %v8317_v51  ;;  %v8436_v59 = vmul.f32 %v9530_v36, %v8347_v53  ;;  %v8438_v13 = vmax.f32 %v3604_v16, 0.0  ;;  %v9536_v8 = vld [vmem:[#allocation70_spill] sm:$0xff]  ;;  %v8454_v16 = vmul.f32 %v8028_v24, %v8375_v15 }
 0x619   :  { %9514 = vst [vmem:[#allocation127_spill] sm:$0xff] %v8403_v62  ;;  %v3609_v14 = vadd.f32 %v5494_v58, %v9526_v38  ;;  %v8443_v58 = vmul.f32 %v9533_v0, %v8349_v44  ;;  %v9534_v38 = vld [vmem:[#allocation124_spill] sm:$0xff]  ;;  %v4361_v36 = vmul.f32 %v9536_v8, %v8317_v51  ;;  %v9538_v0 = vld [vmem:[#allocation39_spill] sm:$0xff]  ;;  %v4522_v62 = vmax.f32 %v4359_v48, %v4360_v57  ;;  %v9544_v48 = vld [vmem:[#allocation94_spill] sm:$0xff] }
 0x61a   :  { %v3577_v54 = vpop.f32.mrf.mxu0  ;;  %9529 = vst [vmem:[#allocation123_spill] sm:$0xff] %v8432_v21  ;;  %9531 = vst [vmem:[#allocation119_spill] sm:$0xff] %v8436_v59  ;;  %v8447_v11 = vmul.f32 %v9534_v38, %v8375_v15  ;;  %v8461_v59 = vmax.f32 %v3606_v47, 0.0  ;;  %v8469_v8 = vmul.f32 %v8050_v19, %v8438_v13  ;;  %v4363_v57 = vmul.f32 %v9544_v48, %v8349_v44 }
 0x61b   :  { %v3608_v7 = vadd.f32 %v3577_v54, %v9532_v28  ;;  %9537 = vst [vmem:[#allocation126_spill] sm:$0xff] %v8454_v16  ;;  %v8456_v54 = vmax.f32 %v3605_v32, 0.0  ;;  %v8458_v28 = vmax.f32 %v3607_v60, 0.0  ;;  %v8463_v38 = vmax.f32 %v3609_v14, 0.0  ;;  %v9541_v60 = vld [vmem:[#allocation61_spill] sm:$0xff]  ;;  %v8481_v14 = vpop.permute.xlu0 %4111 }
 0x61c   :  { %v5497_v22 = vpop.f32.mrf.mxu0  ;;  %9540 = vst [vmem:[#allocation136_spill] sm:$0xff] %v8469_v8  ;;  %v4343_v16 = vmul.f32 %v9541_v60, %v8289_v45  ;;  %9543 = vst [vmem:[#allocation130_spill] sm:$0xff] %v8481_v14  ;;  %v4523_v19 = vmax.f32 %v4522_v62, %v4361_v36  ;;  %v4369_v62 = vmul.f32 %v8154_v30, %v8461_v59 }
 0x61d   :  { %v3611_v56 = vadd.f32 %v5497_v22, %v9535_v41  ;;  %v9539_v41 = vld [vmem:[#allocation96_spill] sm:$0xff]  ;;  %v8471_v24 = vmax.f32 %v3608_v7, 0.0  ;;  %v4365_v7 = vmul.f32 %v8090_v17, %v8377_v4  ;;  %v8499_v48 = vmul.f32 %v8138_v6, %v8456_v54 }
 0x61e   :  { %v3587_v21 = vpop.f32.mrf.mxu0  ;;  %v4362_v22 = vmul.f32 %v9539_v41, %v8315_v55  ;;  %v4366_v41 = vmul.f32 %v8106_v3, %v8375_v15  ;;  %v8505_v17 = vmul.f32 %v8179_v31, %v8458_v28  ;;  %v4501_v36 = vmax.f32 %v4343_v16, %v4344_v43 }
 0x61f   :  { %v3610_v61 = vadd.f32 %v3587_v21, %v9538_v0  ;;  %v8479_v21 = vmul.f32 %v8071_v1, %v8438_v13  ;;  %v8483_v47 = vmax.f32 %v3611_v56, 0.0  ;;  %v4246_v0 = vpop.permute.xlu1 %4245  ;;  %v9545_v1 = vld [vmem:[#allocation26_spill] sm:$0xff]  ;;  %v4367_v56 = vmul.f32 %v8122_v23, %v8438_v13 }
 0x620   :  { %v4345_v60 = vmul.f32 %v9545_v1, %v8317_v51  ;;  %v8509_v3 = vmul.f32 %v8267_v63, %v8471_v24  ;;  %v8515_v6 = vmul.f32 %v8355_v37, %v8463_v38  ;;  %v4348_v63 = vmul.f32 %v8061_v34, %v8347_v53 }
 0x621   :  { %v8473_v32 = vmax.f32 %v3610_v61, 0.0  ;;  %9542 = vst [vmem:[#allocation20_spill] sm:$0xff] %v8479_v21  ;;  %v4364_v61 = vmul.f32 %v8073_v39, %v8347_v53  ;;  %v4524_v39 = vmax.f32 %v4523_v19, %v4362_v22  ;;  %v8518_v1 = vmul.f32 %v4246_v0, %v8483_v47  ;;  %v9546_v22 = vld [vmem:[#allocation76_spill] sm:$0xff]  ;;  %v9547_v19 = vld [vmem:[#allocation131_spill] sm:$0xff]  ;;  %v4179_v21 = vpop.permute.xlu0 %4178 }
 0x622   :  { %v4346_v31 = vmul.f32 %v9546_v22, %v8315_v55  ;;  %v4347_v14 = vmul.f32 %v9547_v19, %v8349_v44  ;;  %v4349_v43 = vmul.f32 %v8084_v9, %v8377_v4  ;;  %v4502_v16 = vmax.f32 %v4501_v36, %v4345_v60 }
 0x623   :  { %v3636_v23 = vpack.c.bf16 %v8483_v47, %v8473_v32  ;;  %v4525_v30 = vmax.f32 %v4524_v39, %v4363_v57  ;;  %v8529_v37 = vmul.f32 %v4242_v52, %v8473_v32  ;;  %v4350_v57 = vmul.f32 %v8100_v5, %v8375_v15 }
 0x624   :  { %v4351_v39 = vmul.f32 %v8116_v29, %v8438_v13  ;;  %v9548_v22 = vmov 0.0   ;;  %v8538_v34 = vmul.f32 %v8132_v25, %v8456_v54  ;;  %v4353_v9 = vmul.f32 %v8148_v50, %v8461_v59 }
 0x625   :  { %5499 = vmatpush3.bf16.msra.mxu1 %v3636_v23  ;;  %v4526_v0 = vmax.f32 %v4525_v30, %v4364_v61  ;;  %v4503_v60 = vmax.f32 %v4502_v16, %v4346_v31  ;;  %v3635_v52 = vpack.c.bf16 %v8463_v38, %v8471_v24  ;;  %v8546_v5 = vmul.f32 %v8164_v40, %v8458_v28  ;;  %v9549_v40 = vld [vmem:[#allocation109_spill] sm:$0xff] }
 0x626   :  { %5500 = vmatprep.subr.bf16.mxu1 %v9548_v22  ;;  %v8550_v29 = vmul.f32 %v8240_v18, %v8471_v24  ;;  %v8554_v25 = vmul.f32 %v8352_v33, %v8463_v38  ;;  %v8558_v50 = vmul.f32 %v8397_v27, %v8473_v32  ;;  %v8561_v36 = vmul.f32 %v4179_v21, %v8483_v47  ;;  %v9551_v27 = vld [vmem:[#allocation82_spill] sm:$0xff] }
 0x627   :  { %v4527_v61 = vmax.f32 %v4526_v0, %v4365_v7  ;;  %v4504_v7 = vmax.f32 %v4503_v60, %v4347_v14  ;;  %v8565_v23 = vmul.f32 %v9549_v40, %v8471_v24  ;;  %v3634_v18 = vpack.c.bf16 %v8458_v28, %v8461_v59  ;;  %v9554_v40 = vld [vmem:[#allocation92_spill] sm:$0xff] }
 0x628   :  { %v3633_v33 = vpack.c.bf16 %v8456_v54, %v8438_v13  ;;  %v4287_v31 = vmul.f32 %v9551_v27, %v8438_v13  ;;  %v3632_v14 = vpack.c.bf16 %v8375_v15, %v8377_v4  ;;  %v3631_v19 = vpack.c.bf16 %v8347_v53, %v8349_v44 }
 0x629   :  { %5501 = vmatpush3.bf16.msra.mxu1 %v3635_v52  ;;  %9550 = vst [vmem:[#allocation58_spill] sm:$0xff] %v8565_v23  ;;  %v4528_v30 = vmax.f32 %v4527_v61, %v4366_v41  ;;  %v4505_v21 = vmax.f32 %v4504_v7, %v4348_v63  ;;  %v9552_v0 = vmax.f32 %v8385_v20, %v8395_v12  ;;  %v9553_v52 = vld [vmem:[#allocation73_spill] sm:$0xff]  ;;  %v9555_v23 = vld [vmem:[#allocation91_spill] sm:$0xff]  ;;  %v9557_v12 = vld [vmem:[#allocation104_spill] sm:$0xff] }
 0x62a   :  { %5502 = vmatprep.subr.bf16.mxu1 %v9548_v22  ;;  %v4288_v61 = vmul.f32 %v9553_v52, %v8456_v54  ;;  %v4289_v63 = vmul.f32 %v9554_v40, %v8461_v59  ;;  %v8591_v8 = vmul.f32 %v9555_v23, %v8456_v54  ;;  %v9560_v23 = vmax.f32 %v8359_v42, %v8369_v10  ;;  %v9561_v40 = vld [vmem:[#allocation79_spill] sm:$0xff] }
 0x62b   :  { %v4529_v16 = vmax.f32 %v4528_v30, %v4367_v56  ;;  %v4423_v60 = vmax.f32 %v9552_v0, %v4287_v31  ;;  %v4506_v7 = vmax.f32 %v4505_v21, %v4349_v43  ;;  %v9556_v56 = vld [vmem:[#allocation88_spill] sm:$0xff]  ;;  %v8599_v31 = vmul.f32 %v9557_v12, %v8461_v59  ;;  %v9563_v12 = vld [vmem:[#allocation121_spill] sm:$0xff] }
 0x62c   :  { %v4301_v30 = vmul.f32 %v9556_v56, %v8377_v4  ;;  %v4302_v56 = vmul.f32 %v9561_v40, %v8375_v15  ;;  %v8618_v10 = vmul.f32 %v8319_v2, %v8483_v47  ;;  %v9569_v2 = vld [vmem:[#allocation86_spill] sm:$0xff] }
 0x62d   :  { %5503 = vmatpush3.bf16.msra.mxu1 %v3634_v18  ;;  %v4530_v20 = vmax.f32 %v4529_v16, %v8499_v48  ;;  %9558 = vst [vmem:[#allocation133_spill] sm:$0xff] %v8599_v31  ;;  %v4424_v43 = vmax.f32 %v4423_v60, %v4288_v61  ;;  %v9559_v18 = vld [vmem:[#allocation81_spill] sm:$0xff]  ;;  %v4507_v0 = vmax.f32 %v4506_v7, %v4350_v57  ;;  %v9562_v48 = vld [vmem:[#allocation115_spill] sm:$0xff]  ;;  %v9564_v60 = vld [vmem:[#allocation128_spill] sm:$0xff] }
 0x62e   :  { %5504 = vmatprep.subr.bf16.mxu1 %v9548_v22  ;;  %v4290_v21 = vmul.f32 %v9559_v18, %v8458_v28  ;;  %v4442_v52 = vmax.f32 %v9560_v23, %v4301_v30  ;;  %v4303_v16 = vmul.f32 %v9562_v48, %v8438_v13  ;;  %v4291_v31 = vmul.f32 %v9563_v12, %v8471_v24  ;;  %v9565_v57 = vld [vmem:[#allocation68_spill] sm:$0xff] }
 0x62f   :  { %v4531_v27 = vmax.f32 %v4530_v20, %v4369_v62  ;;  %v4425_v41 = vmax.f32 %v4424_v43, %v4289_v63  ;;  %v4292_v61 = vmul.f32 %v9564_v60, %v8463_v38  ;;  %v4508_v18 = vmax.f32 %v4507_v0, %v4351_v39  ;;  %v9566_v63 = vld [vmem:[#allocation83_spill] sm:$0xff]  ;;  %v9567_v43 = vld [vmem:[#allocation110_spill] sm:$0xff]  ;;  %v9568_v23 = vld [vmem:[#allocation132_spill] sm:$0xff] }
 0x630   :  { %v4293_v42 = vmul.f32 %v9565_v57, %v8473_v32  ;;  %v4443_v7 = vmax.f32 %v4442_v52, %v4302_v56  ;;  %v4304_v20 = vmul.f32 %v9566_v63, %v8456_v54  ;;  %v4316_v39 = vmul.f32 %v9567_v43, %v8347_v53  ;;  %v9572_v60 = vld [vmem:[#allocation108_spill] sm:$0xff]  ;;  %v9575_v63 = vld [vmem:[#allocation30_spill] sm:$0xff] }
 0x631   :  { %5505 = vmatpush3.bf16.msra.mxu1 %v3633_v33  ;;  %v4532_v30 = vmax.f32 %v4531_v27, %v8505_v17  ;;  %v4426_v62 = vmax.f32 %v4425_v41, %v4290_v21  ;;  %v4509_v33 = vmax.f32 %v4508_v18, %v8538_v34  ;;  %v4305_v40 = vmul.f32 %v9568_v23, %v8461_v59  ;;  %v9570_v41 = vld [vmem:[#allocation102_spill] sm:$0xff]  ;;  %v9571_v34 = vld [vmem:[#allocation99_spill] sm:$0xff] }
 0x632   :  { %5506 = vmatprep.subr.bf16.mxu1 %v9548_v22  ;;  %v4444_v0 = vmax.f32 %v4443_v7, %v4303_v16  ;;  %v4317_v52 = vmul.f32 %v9569_v2, %v8377_v4  ;;  %v4306_v21 = vmul.f32 %v9570_v41, %v8458_v28  ;;  %v4462_v56 = vmax.f32 %v4316_v39, %v8443_v58  ;;  %v9573_v7 = vld [vmem:[#allocation97_spill] sm:$0xff]  ;;  %v9578_v2 = vld [vmem:[#allocation103_spill] sm:$0xff] }
 0x633   :  { %v4533_v17 = vmax.f32 %v4532_v30, %v8509_v3  ;;  %v4427_v27 = vmax.f32 %v4426_v62, %v4291_v31  ;;  %v4510_v48 = vmax.f32 %v4509_v33, %v4353_v9  ;;  %v4307_v16 = vmul.f32 %v9571_v34, %v8471_v24 }
 0x634   :  { %v4445_v12 = vmax.f32 %v4444_v0, %v4304_v20  ;;  %v4318_v18 = vmul.f32 %v9572_v60, %v8375_v15  ;;  %v4463_v31 = vmax.f32 %v4462_v56, %v4317_v52  ;;  %v4319_v30 = vmul.f32 %v9573_v7, %v8438_v13  ;;  %v9580_v56 = vld [vmem:[#allocation95_spill] sm:$0xff] }
 0x635   :  { %5507 = vmatpush3.bf16.msra.mxu1 %v3632_v14  ;;  %v4534_v57 = vmax.f32 %v4533_v17, %v8515_v6  ;;  %v4428_v3 = vmax.f32 %v4427_v27, %v4292_v61  ;;  %v4511_v58 = vmax.f32 %v4510_v48, %v8546_v5  ;;  %v9574_v14 = vld [vmem:[#allocation17_spill] sm:$0xff]  ;;  %v4309_v20 = vmul.f32 %v9575_v63, %v8473_v32  ;;  %v9576_v61 = vld [vmem:[#allocation84_spill] sm:$0xff] }
 0x636   :  { %5508 = vmatprep.subr.bf16.mxu1 %v9548_v22  ;;  %v4446_v9 = vmax.f32 %v4445_v12, %v4305_v40  ;;  %v4308_v62 = vmul.f32 %v9574_v14, %v8463_v38  ;;  %v4464_v6 = vmax.f32 %v4463_v31, %v4318_v18  ;;  %v4320_v33 = vmul.f32 %v9576_v61, %v8456_v54  ;;  %v9577_v5 = vld [vmem:[#allocation72_spill] sm:$0xff]  ;;  %v9579_v27 = vld [vmem:[#allocation101_spill] sm:$0xff]  ;;  %v9586_v31 = vld [vmem:[#allocation114_spill] sm:$0xff] }
 0x637   :  { %v4535_v43 = vmax.f32 %v4534_v57, %v8529_v37  ;;  %v8649_v39 = vmax.f32 %v4428_v3, %v4293_v42  ;;  %v4512_v0 = vmax.f32 %v4511_v58, %v8550_v29  ;;  %v4321_v40 = vmul.f32 %v9577_v5, %v8461_v59  ;;  %v9582_v12 = vld [vmem:[#allocation85_spill] sm:$0xff] }
 0x638   :  { %v4447_v23 = vmax.f32 %v4446_v9, %v4306_v21  ;;  %v4331_v52 = vmul.f32 %v9578_v2, %v8349_v44  ;;  %v4465_v42 = vmax.f32 %v4464_v6, %v4319_v30  ;;  %v4332_v29 = vmul.f32 %v9579_v27, %v8347_v53  ;;  %v9587_v30 = vld [vmem:[#allocation112_spill] sm:$0xff] }
 0x639   :  { %5509 = vmatpush3.bf16.msra.mxu1 %v3631_v19  ;;  %v8659_v17 = vmax.f32 %v4535_v43, %v8518_v1  ;;  %v4430_v37 = vmax.f32 %v8649_v39, %v8618_v10  ;;  %v4513_v19 = vmax.f32 %v4512_v0, %v8554_v25  ;;  %v4333_v44 = vmul.f32 %v9580_v56, %v8377_v4  ;;  %v9581_v1 = vld [vmem:[#allocation125_spill] sm:$0xff]  ;;  %v9583_v10 = vld [vmem:[#allocation122_spill] sm:$0xff]  ;;  %v9590_v43 = vld [vmem:[#allocation111_spill] sm:$0xff] }
 0x63a   :  { %5510 = vmatprep.subr.bf16.mxu1 %v9548_v22  ;;  %v4448_v41 = vmax.f32 %v4447_v23, %v4307_v16  ;;  %v4482_v21 = vmax.f32 %v4331_v52, %v8422_v26  ;;  %v8672_v48 = vmul.f32 %v9581_v1, %v8458_v28  ;;  %v8676_v34 = vmul.f32 %v9582_v12, %v8471_v24  ;;  %v9585_v16 = vld [vmem:[#allocation63_spill] sm:$0xff]  ;;  %v9591_v6 = vld [vmem:[#allocation100_spill] sm:$0xff]  ;;  %v9592_v0 = vld [vmem:[#allocation113_spill] sm:$0xff] }
 0x63b   :  { %v8680_v60 = vmul.f32 %v9583_v10, %v8456_v54  ;;  %v4466_v53 = vmax.f32 %v4465_v42, %v4320_v33  ;;  %v4514_v25 = vmax.f32 %v4513_v19, %v8558_v50  ;;  %v9584_v26 = vpack.c.bf16 %v8315_v55, %v8317_v51  ;;  %v9588_v50 = vld [vmem:[#allocation129_spill] sm:$0xff]  ;;  %v4615_v52 = vld [vmem:[%s8882_s11 + $0x178] sm:$0xff]  ;;  %v9600_v1 = vld [vmem:[#allocation134_spill] sm:$0xff] }
 0x63c   :  { %v4449_v4 = vmax.f32 %v4448_v41, %v4308_v62  ;;  %v4310_v18 = vmul.f32 %v9585_v16, %v8483_v47  ;;  %v4483_v57 = vmax.f32 %v4482_v21, %v4332_v29  ;;  %v4322_v7 = vmul.f32 %v9586_v31, %v8458_v28  ;;  %v9589_v62 = vld [vmem:[#allocation118_spill] sm:$0xff]  ;;  %v9597_v19 = vld [vmem:[#allocation127_spill] sm:$0xff] }
 0x63d   :  { %5511 = vmatpush3.bf16.msra.mxu1 %v9584_v26  ;;  %v4467_v3 = vmax.f32 %v4466_v53, %v4321_v40  ;;  %v4323_v58 = vmul.f32 %v9587_v30, %v8471_v24  ;;  %v4334_v9 = vmul.f32 %v9588_v50, %v8375_v15  ;;  %v8696_v55 = vmax.f32 %v4514_v25, %v8561_v36  ;;  %v3628_v36 = vld [vmem:[%s8874_s3] sm:$0xf]  ;;  %v9596_v29 = vld [vmem:[#allocation126_spill] sm:$0xff]  ;;  %v9601_v10 = vld [vmem:[#allocation19_spill] sm:$0xff] }
 0x63e   :  { %5512 = vmatprep.subr.bf16.mxu1 %v9548_v22  ;;  %v4450_v51 = vmax.f32 %v4449_v4, %v4309_v20  ;;  %v4484_v14 = vmax.f32 %v4483_v57, %v4333_v44  ;;  %v4335_v63 = vmul.f32 %v9589_v62, %v8438_v13  ;;  %v4273_v39 = vmul.f32 %v9590_v43, %v8461_v59  ;;  %v9594_v20 = vld [vmem:[#allocation28_spill] sm:$0xff]  ;;  %v9599_v44 = vld [vmem:[#allocation119_spill] sm:$0xff]  ;;  %v9602_v53 = vld [vmem:[#allocation37_spill] sm:$0xff] }
 0x63f   :  { %v8704_v61 = vmul.f32 %v9591_v6, %v8458_v28  ;;  %v4468_v33 = vmax.f32 %v4467_v3, %v4322_v7  ;;  %v4324_v23 = vmul.f32 %v9592_v0, %v8463_v38  ;;  %v9593_v15 = vpack.c.bf16 %v8276_v46, %v8289_v45  ;;  %v9595_v45 = vld [vmem:[#allocation107_spill] sm:$0xff]  ;;  %v9604_v4 = vld [vmem:[#allocation20_spill] sm:$0xff]  ;;  %v4613_v30 = vld [vmem:[%s8882_s11 + $0x168] sm:$0xff] }
 0x640   :  { %v4451_v13 = vmax.f32 %v4450_v51, %v4310_v18  ;;  %v4325_v5 = vmul.f32 %v9594_v20, %v8473_v32  ;;  %v4326_v40 = vmul.f32 %v8425_v49, %v8483_v47  ;;  %v4485_v2 = vmax.f32 %v4484_v14, %v4334_v9  ;;  %v9598_v49 = vld [vmem:[#allocation90_spill] sm:$0xff]  ;;  %v9605_v18 = vld [vmem:[#allocation116_spill] sm:$0xff]  ;;  %v9606_v57 = vld [vmem:[#allocation135_spill] sm:$0xff] }
 0x641   :  { %5513 = vmatpush3.bf16.msra.mxu1 %v9593_v15  ;;  %v4469_v46 = vmax.f32 %v4468_v33, %v4323_v58  ;;  %v4336_v42 = vmul.f32 %v9595_v45, %v8456_v54  ;;  %v4381_v27 = vmax.f32 %v8401_v35, %v8447_v11  ;;  %v4402_v41 = vmax.f32 %v9597_v19, %v9596_v29  ;;  %v4614_v54 = vld [vmem:[%s8882_s11 + $0x170] sm:$0xff]  ;;  %v9603_v35 = vld [vmem:[#allocation136_spill] sm:$0xff]  ;;  %v9611_v6 = vld [vmem:[#allocation105_spill] sm:$0xff] }
 0x642   :  { %5518 = vmatprep.subr.mxu1 %v9548_v22  ;;  %v4486_v21 = vmax.f32 %v4485_v2, %v4335_v63  ;;  %v4337_v56 = vmul.f32 %v9598_v49, %v8461_v59  ;;  %v4421_v12 = vmax.f32 %v9600_v1, %v9599_v44  ;;  %v4440_v25 = vmax.f32 %v9602_v53, %v9601_v10  ;;  %v9607_v51 = vld [vmem:[#allocation123_spill] sm:$0xff]  ;;  %v9608_v14 = vld [vmem:[#allocation138_spill] sm:$0xff]  ;;  %v9614_v2 = vld [vmem:[#allocation93_spill] sm:$0xff] }
 0x643   :  { %v4470_v26 = vmax.f32 %v4469_v46, %v4324_v23  ;;  %v4382_v11 = vmax.f32 %v4381_v27, %v9603_v35  ;;  %v4403_v16 = vmax.f32 %v4402_v41, %v9604_v4  ;;  %v4461_v3 = vmax.f32 %v9606_v57, %v9605_v18  ;;  %v9609_v62 = vld [vmem:[#allocation34_spill] sm:$0xff]  ;;  %v9612_v0 = vld [vmem:[#allocation35_spill] sm:$0xff]  ;;  %v9618_v49 = vld [vmem:[#allocation25_spill] sm:$0xff] }
 0x644   :  { %5515 = vmatmul.mubr.bf16.vlgmr.msra.gmra.mxu1 %v3628_v36  ;;  %v4487_v59 = vmax.f32 %v4486_v21, %v4336_v42  ;;  %v4431_v31 = vmax.f32 %v4430_v37, %v4421_v12  ;;  %v4452_v7 = vmax.f32 %v4451_v13, %v4440_v25  ;;  %v9610_v63 = vmax.f32 %v9608_v14, %v9609_v62  ;;  %v9613_v36 = vld [vmem:[#allocation133_spill] sm:$0xff]  ;;  %v9619_v44 = vld [vmem:[#allocation120_spill] sm:$0xff]  ;;  %v4610_v10 = vld [vmem:[%s8882_s11 + $0x150] sm:$0xff] }
 0x645   :  { %5519 = vmatpush3.msra.mxu1 %v4615_v52  ;;  %5550 = vmatprep.mubr.msk.f32.mxu1 %vm5641_vm1, %v9548_v22  ;;  %v4471_v58 = vmax.f32 %v4470_v26, %v4325_v5  ;;  %v4383_v50 = vmax.f32 %v4382_v11, %v8591_v8  ;;  %v4404_v9 = vmax.f32 %v4403_v16, %v8680_v60  ;;  %v4612_v8 = vld [vmem:[%s8882_s11 + $0x160] sm:$0xff]  ;;  %v9620_v53 = vld [vmem:[#allocation58_spill] sm:$0xff]  ;;  %v4516_v26 = vrot.slane %v8696_v55, 4 }
 0x646   :  { %5520 = vmatprep.subr.mxu1 %v9548_v22  ;;  %v8753_v43 = vmax.f32 %v9610_v63, %v9607_v51  ;;  %v4488_v37 = vmax.f32 %v4487_v59, %v4337_v56  ;;  %v4338_v33 = vmul.f32 %v9611_v6, %v8458_v28  ;;  %v4339_v23 = vmul.f32 %v9612_v0, %v8471_v24  ;;  %v9615_v28 = vld [vmem:[#allocation106_spill] sm:$0xff] }
 0x647   :  { %5521 = vmatpush3.msra.mxu1 %v4614_v54  ;;  %v4432_v15 = vrot.slane %v4431_v31, 4  ;;  %v4472_v60 = vmax.f32 %v4471_v58, %v4326_v40  ;;  %v4384_v13 = vmax.f32 %v4383_v50, %v9613_v36  ;;  %v4405_v20 = vmax.f32 %v4404_v9, %v4273_v39  ;;  %v9616_v24 = vld [vmem:[#allocation98_spill] sm:$0xff]  ;;  %v4611_v40 = vld [vmem:[%s8882_s11 + $0x158] sm:$0xff] }
 0x648   :  { %5522 = vmatprep.subr.mxu1 %v9548_v22  ;;  %v4453_v5 = vrot.slane %v4452_v7, 4  ;;  %v4260_v52 = vmul.f32 %v9614_v2, %v8463_v38  ;;  %v4261_v46 = vmul.f32 %v9615_v28, %v8473_v32  ;;  %v4276_v45 = vmul.f32 %v9616_v24, %v8463_v38  ;;  %v9617_v39 = vld [vmem:[#allocation74_spill] sm:$0xff] }
 0x649   :  { %5523 = vmatpush3.msra.mxu1 %v4613_v30  ;;  %v4489_v42 = vmax.f32 %v4488_v37, %v4338_v33  ;;  %v4277_v27 = vmul.f32 %v9617_v39, %v8473_v32  ;;  %v4385_v29 = vmax.f32 %v4384_v13, %v8672_v48  ;;  %v4406_v19 = vmax.f32 %v4405_v20, %v8704_v61  ;;  %v9621_v11 = vld [vmem:[#allocation66_spill] sm:$0xff]  ;;  %v9623_v30 = vld [vmem:[#allocation137_spill] sm:$0xff]  ;;  %v4607_v37 = vld [vmem:[%s8882_s11 + $0x138] sm:$0xff] }
 0x64a   :  { %5524 = vmatprep.subr.mxu1 %v9548_v22  ;;  %v4473_v41 = vmax.f32 %v4472_v60, %v4461_v3  ;;  %v4340_v56 = vmul.f32 %v9618_v49, %v8463_v38  ;;  %v4341_v1 = vmul.f32 %v9619_v44, %v8473_v32  ;;  %v4433_v12 = vmax.f32 %v4431_v31, %v4432_v15  ;;  %v4609_v32 = vld [vmem:[%s8882_s11 + $0x148] sm:$0xff]  ;;  %v4602_v44 = vld [vmem:[%s8882_s11 + $0x110] sm:$0xff] }
 0x64b   :  { %5525 = vmatpush3.msra.mxu1 %v4612_v8  ;;  %v4490_v21 = vmax.f32 %v4489_v42, %v4339_v23  ;;  %v4386_v48 = vmax.f32 %v4385_v29, %v8676_v34  ;;  %v4407_v61 = vmax.f32 %v4406_v19, %v9620_v53  ;;  %v4454_v25 = vmax.f32 %v4452_v7, %v4453_v5  ;;  %v9622_v57 = vld [vmem:[#allocation130_spill] sm:$0xff]  ;;  %v4608_v7 = vld [vmem:[%s8882_s11 + $0x140] sm:$0xff]  ;;  %v4603_v29 = vld [vmem:[%s8882_s11 + $0x118] sm:$0xff] }
 0x64c   :  { %5526 = vmatprep.subr.mxu1 %v9548_v22  ;;  %v4474_v54 = vrot.slane %v4473_v41, 4  ;;  %v4537_v35 = vrot.slane %v8659_v17, 4  ;;  %v4262_v4 = vmul.f32 %v9621_v11, %v8483_v47  ;;  %v4342_v3 = vmul.f32 %v9622_v57, %v8483_v47  ;;  %v4605_v20 = vld [vmem:[%s8882_s11 + $0x128] sm:$0xff] }
 0x64d   :  { %5527 = vmatpush3.msra.mxu1 %v4611_v40  ;;  %v4491_v38 = vmax.f32 %v4490_v21, %v4340_v56  ;;  %v4387_v34 = vmax.f32 %v4386_v48, %v4260_v52  ;;  %v4408_v16 = vmax.f32 %v4407_v61, %v4276_v45  ;;  %v4434_v59 = vrot.slane %v4433_v12, 2  ;;  %v4601_v61 = vld [vmem:[%s8882_s11 + $0x108] sm:$0xff] }
 0x64e   :  { %5528 = vmatprep.subr.mxu1 %v9548_v22  ;;  %v4475_v31 = vmax.f32 %v4473_v41, %v4474_v54  ;;  %v4278_v58 = vmul.f32 %v9623_v30, %v8483_v47  ;;  %v4455_v51 = vrot.slane %v4454_v25, 2  ;;  %v4517_v14 = vmax.f32 %v8696_v55, %v4516_v26  ;;  %v4606_v55 = vld [vmem:[%s8882_s11 + $0x130] sm:$0xff] }
 0x64f   :  { %5529 = vmatpush3.msra.mxu1 %v4610_v10  ;;  %v4492_v18 = vmax.f32 %v4491_v38, %v4341_v1  ;;  %v4388_v50 = vmax.f32 %v4387_v34, %v4261_v46  ;;  %v4409_v9 = vmax.f32 %v4408_v16, %v4277_v27  ;;  %v4538_v63 = vmax.f32 %v8659_v17, %v4537_v35  ;;  %v4604_v46 = vld [vmem:[%s8882_s11 + $0x120] sm:$0xff] }
 0x650   :  { %5530 = vmatprep.subr.mxu1 %v9548_v22  ;;  %v4435_v0 = vmax.f32 %v4433_v12, %v4434_v59  ;;  %v4476_v47 = vrot.slane %v4475_v31, 2  ;;  %v4456_v8 = vmax.f32 %v4454_v25, %v4455_v51  ;;  %v4518_v60 = vrot.slane %v4517_v14, 2 }
 0x651   :  { %5531 = vmatpush3.msra.mxu1 %v4609_v32  ;;  %v4493_v62 = vmax.f32 %v4492_v18, %v4342_v3  ;;  %v4389_v6 = vmax.f32 %v4388_v50, %v4262_v4  ;;  %v4410_v33 = vmax.f32 %v4409_v9, %v4278_v58  ;;  %v4539_v13 = vrot.slane %v4538_v63, 2  ;;  %v4600_v32 = vld [vmem:[%s8882_s11 + $0x100] sm:$0xff] }
 0x652   :  { %5532 = vmatprep.subr.mxu1 %v9548_v22  ;;  %v4436_v2 = vrot.slane %v4435_v0, 1  ;;  %v4477_v52 = vmax.f32 %v4475_v31, %v4476_v47  ;;  %v4457_v42 = vrot.slane %v4456_v8, 1  ;;  %v4519_v40 = vmax.f32 %v4517_v14, %v4518_v60 }
 0x653   :  { %5533 = vmatpush3.msra.mxu1 %v4608_v7  ;;  %v4494_v23 = vmax.f32 %v4493_v62, %v8753_v43  ;;  %v4390_v17 = vrot.slane %v4389_v6, 4  ;;  %v4411_v15 = vrot.slane %v4410_v33, 4  ;;  %v4540_v27 = vmax.f32 %v4538_v63, %v4539_v13  ;;  %v9624_v7 = vld [vmem:[#allocation87_spill] sm:$0xff] }
 0x654   :  { %5534 = vmatprep.subr.mxu1 %v9548_v22  ;;  %v4437_v21 = vmax.f32 %v4435_v0, %v4436_v2  ;;  %v4478_v49 = vrot.slane %v4477_v52, 1  ;;  %v4458_v10 = vmax.f32 %v4456_v8, %v4457_v42  ;;  %v4520_v48 = vrot.slane %v4519_v40, 1  ;;  %v4568_v0 = vld [vmem:[%s8882_s11] sm:$0xff] }
 0x655   :  { %5535 = vmatpush3.msra.mxu1 %v4607_v37  ;;  %v4495_v36 = vrot.slane %v4494_v23, 4  ;;  %v4391_v43 = vmax.f32 %v4389_v6, %v4390_v17  ;;  %v4412_v5 = vmax.f32 %v4410_v33, %v4411_v15  ;;  %v4541_v26 = vrot.slane %v4540_v27, 1  ;;  %v4569_v6 = vld [vmem:[%s8882_s11 + $0x8] sm:$0xff]  ;;  %v4584_v33 = vld [vmem:[%s8882_s11 + $0x80] sm:$0xff] }
 0x656   :  { %5536 = vmatprep.subr.mxu1 %v9548_v22  ;;  %v4479_v38 = vmax.f32 %v4477_v52, %v4478_v49  ;;  %v4545_v35 = vmax.f32 %v4437_v21, 0.0  ;;  %v4546_v16 = vmax.f32 %v4458_v10, 0.0  ;;  %v4521_v18 = vmax.f32 %v4519_v40, %v4520_v48  ;;  %5152 = vmatpush3.msra.mxu0 %v4569_v6 }
 0x657   :  { %5537 = vmatpush3.msra.mxu1 %v4606_v55  ;;  %v4496_v28 = vmax.f32 %v4494_v23, %v4495_v36  ;;  %v4392_v24 = vrot.slane %v4391_v43, 2  ;;  %v4413_v45 = vrot.slane %v4412_v5, 2  ;;  %v4542_v57 = vmax.f32 %v4540_v27, %v4541_v26  ;;  %5153 = vmatprep.subr.mxu0 %v4584_v33  ;;  %v4831_v36 = vld [vmem:[%s8878_s7] sm:$0x3]  ;;  %s5613_s7 = scalar_lea.vmem %s4846_s19, 32 }
 0x658   :  { %5538 = vmatprep.subr.mxu1 %v9548_v22  ;;  %v4547_v59 = vmax.f32 %v4479_v38, 0.0  ;;  %v9625_v30 = vmax.f32 %v9624_v7, 0.0  ;;  %v4549_v9 = vmax.f32 %v4521_v18, 0.0  ;;  %5154 = vmatpush3.msra.mxu0 %v4568_v0  ;;  %v5642_v13 = vmov 0   ;;  %p5614_p5 = scmp.ne.s32.totalorder %s4846_s19, %s5613_s7  ;;  %p5619_p7 = scmp.lt.s32.totalorder %s5613_s7, %s5613_s7 }
 0x659   :  { %5539 = vmatpush3.msra.mxu1 %v4605_v20  ;;  %v4497_v39 = vrot.slane %v4496_v28, 2  ;;  %v4393_v19 = vmax.f32 %v4391_v43, %v4392_v24  ;;  %v4414_v41 = vmax.f32 %v4412_v5, %v4413_v45  ;;  %v4550_v14 = vmax.f32 %v4542_v57, 0.0  ;;  %5553 = vmatprep.subr.mxu0 %v9548_v22 }
 0x65a   :  { %5540 = vmatprep.subr.mxu1 %v9548_v22  ;;  %5568 = vset.pattern.permute.xlu0 %v5642_v13  ;;  %p5620_p8 = por %p5619_p7, %p5618_p6 }
 0x65b   :  { %5541 = vmatpush3.msra.mxu1 %v4604_v46  ;;  %v4498_v56 = vmax.f32 %v4496_v28, %v4497_v39  ;;  %v4394_v1 = vrot.slane %v4393_v19, 1  ;;  %v4415_v12 = vrot.slane %v4414_v41, 1  ;;  %4834 = vperm.xlu0 %5568, %v4831_v36   ;;  %v4757_v28 = vld [vmem:[%s8877_s6] sm:$0x3] }
 0x65c   :  { %5542 = vmatprep.subr.mxu1 %v9548_v22  ;;  %p5621_p9 = pnand %p5620_p8, %p5614_p5 }
 0x65d   :  { %5543 = vmatpush3.msra.mxu1 %v4603_v29  ;;  %v4499_v53 = vrot.slane %v4498_v56, 1  ;;  %v4395_v25 = vmax.f32 %v4393_v19, %v4394_v1  ;;  %v4416_v54 = vmax.f32 %v4414_v41, %v4415_v12 }
 0x65e   :  { %5544 = vmatprep.subr.mxu1 %v9548_v22 }
 0x65f   :  { %5545 = vmatpush3.msra.mxu1 %v4602_v44  ;;  %v4500_v11 = vmax.f32 %v4498_v56, %v4499_v53  ;;  %v4543_v4 = vmax.f32 %v4395_v25, 0.0  ;;  %v4544_v34 = vmax.f32 %v4416_v54, 0.0 }
 0x660   :  { %5546 = vmatprep.subr.mxu1 %v9548_v22 }
 0x661   :  { %5547 = vmatpush3.msra.mxu1 %v4601_v61  ;;  %v4559_v3 = vsel %vm1518_vm3, %v4544_v34, %v4543_v4  ;;  %v4548_v58 = vmax.f32 %v4500_v11, 0.0 }
 0x662   :  { %5548 = vmatprep.subr.mxu1 %v9548_v22  ;;  %v4560_v31 = vsel %vm1520_vm4, %v4545_v35, %v4559_v3 }
 0x663   :  { %5549 = vmatpush3.msra.mxu1 %v4600_v32  ;;  %v4561_v50 = vsel %vm1522_vm5, %v4546_v16, %v4560_v31 }
 0x664   :  { %5551 = vmatmul.mubr.f32.vlgmr.msra.gmra.mxu1 %v9625_v30  ;;  %v4562_v51 = vsel %vm1524_vm6, %v4547_v59, %v4561_v50 }
 0x665   :  { %v4563_v62 = vsel %vm1526_vm7, %v4548_v58, %v4562_v51 }
 0x666   :  { %v4564_v63 = vsel %vm1528_vm8, %v4549_v9, %v4563_v62 }
 0x667   :  { %v4565_v37 = vsel %vm1530_vm9, %v4550_v14, %v4564_v63 }
 0x704   :  { %v3671_v47 = vpop.f32.mrf.mxu1 }
 0x705   :  { %v4567_v23 = vmul.f32 %v4565_v37, %v3671_v47 }
 0x706   :  { %v5516_v55 = vpop.f32.mrf.mxu1 }
 0x707   :  { %4681 = vmatmul.mubr.f32.vlgmr.msra.gmra.mxu0 %v4567_v23 }
 0x708   :  { %v3674_v17 = vpop.f32.mrf.mxu1  ;;  %5555 = vmatprep.mubr.msk.f32.mxu0 %vm5641_vm1, %v9548_v22  ;;  %v4835_v22 = vpop.permute.xlu0 %4834 }
 0x70a   :  { %v5517_v15 = vpop.f32.mrf.mxu1 }
 0x724   :  { %v4752_v8 = vpop.f32.mrf.mxu1 }
 0x726   :  { %v5552_v60 = vpop.f32.mrf.mxu1 }
 0x7c7   :  { %v5155_v20 = vpop.f32.mrf.mxu0 }
 0x7c9   :  { %v5156_v43 = vpop.f32.mrf.mxu0 }
 0x7ca   :  { %v5157_v5 = vadd.f32 %v5156_v43, %v5155_v20 }
 0x7cc   :  { %v4753_v2 = vadd.f32 %v5157_v5, %v4752_v8 }
 0x7ce   :  { %v4756_v52 = vmax.f32 %v4753_v2, 0.0 }
 0x7d0   :  { %5554 = vmatpush3.msra.mxu0 %v4756_v52 }
 0x7d1   :  { %5556 = vmatmul.mubr.msk.f32.vlgmr.msra.gmra.mxu0 %vm152_vm0, %v4757_v28 }
 0x891   :  { %v4827_v46 = vpop.f32.mrf.mxu0 }
 0x892   :  { %v4837_v24 = vmul.f32 %v4835_v22, %v4827_v46 }
 0x893   :  { %v5557_v45 = vpop.f32.mrf.mxu0 }
 0x894   :  { %4838 = vst [vmem:[#allocation6] sm:$0x3] %v4837_v24 }
 0x895   :  { %5624 = shalt.err (!%p5621_p9)
}
 0x896   :  { %4848 = dma.vmem_to_hbm [thread:$0]  %s4846_s19, 32, %s8883_s12, [#allocation5]  }
 0x897   :  { %5635 = dma.done.wait [#allocation5], 32  }
 0x898   :  { %5636 = vsyncadd [#allocation5], 4294967264 }
 0x899   :  { %4852 = vsyncpa [#allocation4], 1 }
 0x89a   :  { %4853 = vsyncpa [#allocation5], 1 }

</bundles_post_ra>
